<compile_context>
chip_gen: v7x
topology: tpu7x:2x2x1
jax: 0.10.0
libtpu: 0.0.40
codegen_flags: <defaults>
</compile_context>

<pallas_src>
import functools

import jax
import jax.numpy as jnp
from jax.experimental import pallas as pl
from jax.experimental.pallas import tpu as pltpu


def _round_up(x, m):
    return ((x + m - 1) // m) * m


# ---------------------------------------------------------------------------
# Pallas kernels
# ---------------------------------------------------------------------------
def _conv_gemm_kernel(a_ref, b_ref, o_ref, sum_ref, ssq_ref, acc_ref, *, activation):
    """One (M-tile, K-tile) step of the im2col GEMM.

    Accumulates into an f32 VMEM scratch across the K grid axis; on the last K
    step applies the fused activation, stores the bf16 output tile and emits
    per-channel sum / sum-of-squares (pre-activation for BN layers, which run
    with activation == "none").
    """
    k = pl.program_id(1)

    @pl.when(k == 0)
    def _():
        acc_ref[...] = jnp.zeros_like(acc_ref)

    acc_ref[...] += jnp.dot(a_ref[...], b_ref[...],
                            preferred_element_type=jnp.float32)

    @pl.when(k == pl.num_programs(1) - 1)
    def _():
        acc = acc_ref[...]
        if activation == "leaky":
            acc = jnp.where(acc > 0, acc, 0.2 * acc)
        o_ref[...] = acc.astype(o_ref.dtype)
        sum_ref[...] = jnp.sum(acc, axis=0, keepdims=True)[None]
        ssq_ref[...] = jnp.sum(acc * acc, axis=0, keepdims=True)[None]


def _scale_shift_lrelu_kernel(y_ref, sc_ref, sh_ref, o_ref):
    """BatchNorm affine (precomputed per-channel scale/shift) + LeakyReLU(0.2)."""
    y = y_ref[...].astype(jnp.float32)
    v = y * sc_ref[...] + sh_ref[...]
    o_ref[...] = jnp.where(v > 0, v, 0.2 * v).astype(o_ref.dtype)


def _final_sigmoid_kernel(a_ref, b_ref, o_ref):
    """Tiny full-shape GEMM (M == batch) with fused sigmoid."""
    acc = jnp.dot(a_ref[...], b_ref[...], preferred_element_type=jnp.float32)
    e = jnp.exp(-acc)                            # EUP
    sig = pl.reciprocal(1.0 + e, approx=True)    # EUP reciprocal, not VPU divide
    o_ref[...] = jnp.clip(sig, 0.0, 1.0)         # guard approx overshoot of 1.0


# ---------------------------------------------------------------------------
# Kernel wrappers
# ---------------------------------------------------------------------------
def conv_gemm(patches, w_packed, activation="none", tm=512):
    """patches: [M, K] float, w_packed: [Kp, OCp] bf16 (lane-/K-padded).

    Returns (y_padded [Mp, OCp] bf16, ch_sum [OCp] f32, ch_ssq [OCp] f32, tm).
    Rows >= M and channels >= true OC of y_padded are zero padding; the zero
    rows contribute nothing to the channel stats.
    """
    M, K = patches.shape
    Kp, OCp = w_packed.shape
    tm = min(tm, _round_up(M, 8))
    Mp = _round_up(M, tm)
    kt = min(Kp, 512)
    n_m, n_k = Mp // tm, Kp // kt

    patches = jnp.pad(patches.astype(jnp.bfloat16), ((0, Mp - M), (0, Kp - K)))

    y, s, s2 = pl.pallas_call(
        functools.partial(_conv_gemm_kernel, activation=activation),
        out_shape=(
            jax.ShapeDtypeStruct((Mp, OCp), jnp.bfloat16),
            jax.ShapeDtypeStruct((n_m, 1, OCp), jnp.float32),
            jax.ShapeDtypeStruct((n_m, 1, OCp), jnp.float32),
        ),
        grid_spec=pltpu.PrefetchScalarGridSpec(
            num_scalar_prefetch=0,
            grid=(n_m, n_k),
            in_specs=[
                pl.BlockSpec((tm, kt), lambda i, k: (i, k)),
                pl.BlockSpec((kt, OCp), lambda i, k: (k, 0)),
            ],
            out_specs=(
                pl.BlockSpec((tm, OCp), lambda i, k: (i, 0)),
                pl.BlockSpec((1, 1, OCp), lambda i, k: (i, 0, 0)),
                pl.BlockSpec((1, 1, OCp), lambda i, k: (i, 0, 0)),
            ),
            scratch_shapes=[pltpu.VMEM((tm, OCp), jnp.float32)],
        ),
        compiler_params=pltpu.CompilerParams(
            dimension_semantics=("parallel", "arbitrary")),
    )(patches, w_packed)

    return y, jnp.sum(s, axis=(0, 1)), jnp.sum(s2, axis=(0, 1)), tm


def bn_lrelu_apply(y_pad, ch_sum, ch_ssq, m_true, gamma, beta, tm, eps=1e-5):
    """Training-mode BatchNorm (batch statistics, biased var) + LeakyReLU(0.2)."""
    Mp, OCp = y_pad.shape
    oc = gamma.shape[0]
    mean = ch_sum / m_true
    var = jnp.maximum(ch_ssq / m_true - mean * mean, 0.0)
    gamma_p = jnp.pad(gamma.astype(jnp.float32), (0, OCp - oc))
    beta_p = jnp.pad(beta.astype(jnp.float32), (0, OCp - oc))
    scale = gamma_p * jax.lax.rsqrt(var + eps)
    shift = beta_p - mean * scale
    return pl.pallas_call(
        _scale_shift_lrelu_kernel,
        out_shape=jax.ShapeDtypeStruct((Mp, OCp), jnp.bfloat16),
        grid_spec=pltpu.PrefetchScalarGridSpec(
            num_scalar_prefetch=0,
            grid=(Mp // tm,),
            in_specs=[
                pl.BlockSpec((tm, OCp), lambda i: (i, 0)),
                pl.BlockSpec((1, OCp), lambda i: (0, 0)),
                pl.BlockSpec((1, OCp), lambda i: (0, 0)),
            ],
            out_specs=pl.BlockSpec((tm, OCp), lambda i: (i, 0)),
        ),
        compiler_params=pltpu.CompilerParams(dimension_semantics=("parallel",)),
    )(y_pad, scale.reshape(1, OCp), shift.reshape(1, OCp))


# ---------------------------------------------------------------------------
# Plain-JAX glue: im2col patch extraction and weight repacking
# ---------------------------------------------------------------------------
def im2col(x_nhwc, kh, kw, stride, pad):
    n, h, w, c = x_nhwc.shape
    xp = jnp.pad(x_nhwc, ((0, 0), (pad, pad), (pad, pad), (0, 0)))
    oh = (h + 2 * pad - kh) // stride + 1
    ow = (w + 2 * pad - kw) // stride + 1
    cols = []
    for i in range(kh):
        for j in range(kw):
            cols.append(xp[:, i:i + stride * oh:stride, j:j + stride * ow:stride, :])
    cols = jnp.stack(cols, axis=3)  # [N, OH, OW, KH*KW, C]
    return cols.reshape(n * oh * ow, kh * kw * c), oh, ow


def repack_weight(w_oihw):
    """PyTorch [OC, IC, KH, KW] -> bf16 GEMM [(KH*KW*IC)p, OCp], lane-padded."""
    oc, ic, kh, kw = w_oihw.shape
    w = jnp.transpose(w_oihw, (2, 3, 1, 0)).reshape(kh * kw * ic, oc)
    K = kh * kw * ic
    Kp = _round_up(K, 128)
    if Kp > 512:
        Kp = _round_up(Kp, 512)      # K is grid-tiled in 512-wide chunks
    OCp = _round_up(oc, 128)
    return jnp.pad(w, ((0, Kp - K), (0, OCp - oc))).astype(jnp.bfloat16)


# ---------------------------------------------------------------------------
# The discriminator forward pass
# ---------------------------------------------------------------------------
def discriminator_forward(x_nchw, params, ndf):
    n = x_nchw.shape[0]
    x = jnp.transpose(x_nchw, (0, 2, 3, 1)).astype(jnp.bfloat16)  # NHWC bf16

    # conv1 (nc -> ndf, 4, s2, p1) + LeakyReLU(0.2)
    p, oh, ow = im2col(x, 4, 4, 2, 1)
    m = n * oh * ow
    y, _, _, _ = conv_gemm(p, params["w1"], activation="leaky")
    x = y[:m, :ndf].reshape(n, oh, ow, ndf)

    # conv2..conv4 (4, s2, p1) + BatchNorm (batch stats) + LeakyReLU(0.2)
    for wk, gk, bk in (("w2", "g2", "b2"), ("w3", "g3", "b3"), ("w4", "g4", "b4")):
        p, oh, ow = im2col(x, 4, 4, 2, 1)
        m = n * oh * ow
        y, s, s2, tm = conv_gemm(p, params[wk], activation="none")
        z = bn_lrelu_apply(y, s, s2, m, params[gk], params[bk], tm)
        oc = params[gk].shape[0]
        x = z[:m, :oc].reshape(n, oh, ow, oc)

    # conv5 (ndf*8 -> 1, 4, s1, p0) + Sigmoid.  M == batch for 64x64 input, so
    # run a single tiny full-shape block instead of padding M to a big tile.
    p, oh, ow = im2col(x, 4, 4, 1, 0)
    m = n * oh * ow
    w5 = params["w5"]
    Kp, OCp = w5.shape
    mp = _round_up(m, 8)
    p = jnp.pad(p.astype(jnp.bfloat16), ((0, mp - m), (0, Kp - p.shape[1])))
    out = pl.pallas_call(
        _final_sigmoid_kernel,
        out_shape=jax.ShapeDtypeStruct((mp, OCp), jnp.float32),
    )(p, w5)
    out = out[:m, :1].reshape(n, oh, ow, 1)
    return jnp.transpose(out, (0, 3, 1, 2))  # NCHW: [N, 1, 1, 1]


def init_params(key, nc, ndf):
    ks = jax.random.split(key, 5)
    std = 0.02  # DCGAN-style deterministic init

    def conv_w(k, oc, ic):
        return repack_weight(std * jax.random.normal(k, (oc, ic, 4, 4), jnp.float32))

    return {
        "w1": conv_w(ks[0], ndf, nc),
        "w2": conv_w(ks[1], ndf * 2, ndf),
        "g2": jnp.ones((ndf * 2,), jnp.float32),
        "b2": jnp.zeros((ndf * 2,), jnp.float32),
        "w3": conv_w(ks[2], ndf * 4, ndf * 2),
        "g3": jnp.ones((ndf * 4,), jnp.float32),
        "b3": jnp.zeros((ndf * 4,), jnp.float32),
        "w4": conv_w(ks[3], ndf * 8, ndf * 4),
        "g4": jnp.ones((ndf * 8,), jnp.float32),
        "b4": jnp.zeros((ndf * 8,), jnp.float32),
        "w5": conv_w(ks[4], 1, ndf * 8),
    }


if __name__ == "__main__":
    # DCGAN discriminator requires 64x64 spatial input (4 stride-2 convs -> 4x4,
    # then a valid 4x4 conv -> 1x1).
    batch, nc, ndf, hw = 2, 3, 8, 64
    key = jax.random.PRNGKey(0)
    k_x, k_p = jax.random.split(key)
    x = jax.random.normal(k_x, (batch, nc, hw, hw), jnp.float32)
    params = init_params(k_p, nc, ndf)

    fwd = jax.jit(discriminator_forward, static_argnames=("ndf",))
    out = jax.block_until_ready(fwd(x, params, ndf=ndf))
    assert out.shape == (batch, 1, 1, 1), out.shape
    assert bool(jnp.all(jnp.isfinite(out))) and bool(jnp.all((out >= 0) & (out <= 1)))
    print("KERNEL_OK")
</pallas_src>

<mosaic_0001>
module attributes {stable_mosaic.version = 11 : i64} {
  func.func @_conv_gemm_kernel(%arg0: i32, %arg1: i32, %arg2: memref<512x128xbf16, #tpu.memory_space<vmem>>, %arg3: memref<128x128xbf16, #tpu.memory_space<vmem>>, %arg4: memref<512x128xbf16, #tpu.memory_space<vmem>>, %arg5: memref<1x1x128xf32, #tpu.memory_space<vmem>>, %arg6: memref<1x1x128xf32, #tpu.memory_space<vmem>>, %arg7: memref<512x128xf32, #tpu.memory_space<vmem>>) attributes {dimension_semantics = [#tpu.dimension_semantics<parallel>, #tpu.dimension_semantics<arbitrary>], iteration_bounds = array<i64: 4, 1>, scalar_prefetch = 0 : i64, scratch_operands = 1 : i64, tpu.core_type = #tpu.core_type<tc>, window_params = [{transform_indices = @transform_0, window_bounds = array<i64: 512, 128>}, {transform_indices = @transform_1, window_bounds = array<i64: 128, 128>}, {transform_indices = @transform_2, window_bounds = array<i64: 512, 128>}, {transform_indices = @transform_3, window_bounds = array<i64: 1, 1, 128>}, {transform_indices = @transform_4, window_bounds = array<i64: 1, 1, 128>}]} {
    %c0_i32 = arith.constant 0 : i32
    %0 = arith.cmpi eq, %arg1, %c0_i32 : i32
    %1 = arith.extui %0 : i1 to i32
    %c0_i32_0 = arith.constant 0 : i32
    %2 = arith.cmpi ne, %1, %c0_i32_0 : i32
    scf.if %2 {
      %cst_10 = arith.constant 0.000000e+00 : f32
      %12 = vector.broadcast %cst_10 : f32 to vector<512x128xf32>
      %c0_11 = arith.constant 0 : index
      %c0_12 = arith.constant 0 : index
      %13 = vector.load %arg7[%c0_11, %c0_12] : memref<512x128xf32, #tpu.memory_space<vmem>>, vector<512x128xf32>
      tpu.vector_store %arg7[%c0_11, %c0_12], %12 {strides = array<i32>} : memref<512x128xf32, #tpu.memory_space<vmem>>, vector<512x128xf32>,
    } else {
    }
    %c0 = arith.constant 0 : index
    %c0_1 = arith.constant 0 : index
    %3 = vector.load %arg7[%c0, %c0_1] : memref<512x128xf32, #tpu.memory_space<vmem>>, vector<512x128xf32>
    %c0_2 = arith.constant 0 : index
    %c0_3 = arith.constant 0 : index
    %4 = vector.load %arg2[%c0_2, %c0_3] : memref<512x128xbf16, #tpu.memory_space<vmem>>, vector<512x128xbf16>
    %c0_4 = arith.constant 0 : index
    %c0_5 = arith.constant 0 : index
    %5 = vector.load %arg3[%c0_4, %c0_5] : memref<128x128xbf16, #tpu.memory_space<vmem>>, vector<128x128xbf16>
    %cst = arith.constant dense<0.000000e+00> : vector<512x128xf32>
    %6 = tpu.matmul %4, %5, %cst {dimension_numbers = #tpu.dot_dimension_numbers<[1], [0], [0], [1], [0, 0, 1, 1], [], []>} : vector<512x128xbf16>, vector<128x128xbf16>, vector<512x128xf32> -> vector<512x128xf32>
    %7 = arith.addf %3, %6 : vector<512x128xf32>
    %c0_6 = arith.constant 0 : index
    %c0_7 = arith.constant 0 : index
    %8 = vector.load %arg7[%c0_6, %c0_7] : memref<512x128xf32, #tpu.memory_space<vmem>>, vector<512x128xf32>
    tpu.vector_store %arg7[%c0_6, %c0_7], %7 {strides = array<i32>} : memref<512x128xf32, #tpu.memory_space<vmem>>, vector<512x128xf32>,
    %c0_i32_8 = arith.constant 0 : i32
    %9 = arith.cmpi eq, %arg1, %c0_i32_8 : i32
    %10 = arith.extui %9 : i1 to i32
    %c0_i32_9 = arith.constant 0 : i32
    %11 = arith.cmpi ne, %10, %c0_i32_9 : i32
    scf.if %11 {
      %c0_10 = arith.constant 0 : index
      %c0_11 = arith.constant 0 : index
      %12 = vector.load %arg7[%c0_10, %c0_11] : memref<512x128xf32, #tpu.memory_space<vmem>>, vector<512x128xf32>
      %cst_12 = arith.constant 0.000000e+00 : f32
      %13 = vector.broadcast %cst_12 : f32 to vector<512x128xf32>
      %14 = arith.cmpf ogt, %12, %13 : vector<512x128xf32>
      %cst_13 = arith.constant 2.000000e-01 : f32
      %15 = vector.broadcast %cst_13 : f32 to vector<512x128xf32>
      %16 = arith.mulf %15, %12 : vector<512x128xf32>
      %17 = arith.select %14, %12, %16 : vector<512x128xi1>, vector<512x128xf32>
      %18 = arith.truncf %17 : vector<512x128xf32> to vector<512x128xbf16>
      %c0_14 = arith.constant 0 : index
      %c0_15 = arith.constant 0 : index
      %19 = vector.load %arg4[%c0_14, %c0_15] : memref<512x128xbf16, #tpu.memory_space<vmem>>, vector<512x128xbf16>
      tpu.vector_store %arg4[%c0_14, %c0_15], %18 {strides = array<i32>} : memref<512x128xbf16, #tpu.memory_space<vmem>>, vector<512x128xbf16>,
      %cst_16 = arith.constant dense<0.000000e+00> : vector<128xf32>
      %20 = vector.multi_reduction <add>, %17, %cst_16 [0] : vector<512x128xf32> to vector<128xf32>
      %21 = vector.shape_cast %20 : vector<128xf32> to vector<1x128xf32>
      %22 = vector.shape_cast %21 : vector<1x128xf32> to vector<1x1x128xf32>
      %c0_17 = arith.constant 0 : index
      %c0_18 = arith.constant 0 : index
      %c0_19 = arith.constant 0 : index
      %23 = vector.load %arg5[%c0_17, %c0_18, %c0_19] : memref<1x1x128xf32, #tpu.memory_space<vmem>>, vector<1x1x128xf32>
      tpu.vector_store %arg5[%c0_17, %c0_18, %c0_19], %22 {strides = array<i32>} : memref<1x1x128xf32, #tpu.memory_space<vmem>>, vector<1x1x128xf32>,
      %24 = arith.mulf %17, %17 : vector<512x128xf32>
      %cst_20 = arith.constant dense<0.000000e+00> : vector<128xf32>
      %25 = vector.multi_reduction <add>, %24, %cst_20 [0] : vector<512x128xf32> to vector<128xf32>
      %26 = vector.shape_cast %25 : vector<128xf32> to vector<1x128xf32>
      %27 = vector.shape_cast %26 : vector<1x128xf32> to vector<1x1x128xf32>
      %c0_21 = arith.constant 0 : index
      %c0_22 = arith.constant 0 : index
      %c0_23 = arith.constant 0 : index
      %28 = vector.load %arg6[%c0_21, %c0_22, %c0_23] : memref<1x1x128xf32, #tpu.memory_space<vmem>>, vector<1x1x128xf32>
      tpu.vector_store %arg6[%c0_21, %c0_22, %c0_23], %27 {strides = array<i32>} : memref<1x1x128xf32, #tpu.memory_space<vmem>>, vector<1x1x128xf32>,
    } else {
    }
    return
  }
  func.func @transform_0(%arg0: i32, %arg1: i32) -> (i32, i32) {
    %c0_i32 = arith.constant 0 : i32
    return %arg0, %arg1 : i32, i32
  }
  func.func @transform_1(%arg0: i32, %arg1: i32) -> (i32, i32) {
    %c0_i32 = arith.constant 0 : i32
    %c0_i32_0 = arith.constant 0 : i32
    return %arg1, %c0_i32 : i32, i32
  }
  func.func @transform_2(%arg0: i32, %arg1: i32) -> (i32, i32) {
    %c0_i32 = arith.constant 0 : i32
    %c0_i32_0 = arith.constant 0 : i32
    return %arg0, %c0_i32 : i32, i32
  }
  func.func @transform_3(%arg0: i32, %arg1: i32) -> (i32, i32, i32) {
    %c0_i32 = arith.constant 0 : i32
    %c0_i32_0 = arith.constant 0 : i32
    %c0_i32_1 = arith.constant 0 : i32
    return %arg0, %c0_i32, %c0_i32_0 : i32, i32, i32
  }
  func.func @transform_4(%arg0: i32, %arg1: i32) -> (i32, i32, i32) {
    %c0_i32 = arith.constant 0 : i32
    %c0_i32_0 = arith.constant 0 : i32
    %c0_i32_1 = arith.constant 0 : i32
    return %arg0, %c0_i32, %c0_i32_0 : i32, i32, i32
  }
}

module attributes {stable_mosaic.version = 11 : i64} {
  func.func @_conv_gemm_kernel(%arg0: i32, %arg1: i32, %arg2: memref<512x128xbf16, #tpu.memory_space<vmem>>, %arg3: memref<128x128xbf16, #tpu.memory_space<vmem>>, %arg4: memref<512x128xbf16, #tpu.memory_space<vmem>>, %arg5: memref<1x1x128xf32, #tpu.memory_space<vmem>>, %arg6: memref<1x1x128xf32, #tpu.memory_space<vmem>>, %arg7: memref<512x128xf32, #tpu.memory_space<vmem>>) attributes {dimension_semantics = [#tpu.dimension_semantics<parallel>, #tpu.dimension_semantics<arbitrary>], iteration_bounds = array<i64: 1, 1>, scalar_prefetch = 0 : i64, scratch_operands = 1 : i64, tpu.core_type = #tpu.core_type<tc>, window_params = [{transform_indices = @transform_0, window_bounds = array<i64: 512, 128>}, {transform_indices = @transform_1, window_bounds = array<i64: 128, 128>}, {transform_indices = @transform_2, window_bounds = array<i64: 512, 128>}, {transform_indices = @transform_3, window_bounds = array<i64: 1, 1, 128>}, {transform_indices = @transform_4, window_bounds = array<i64: 1, 1, 128>}]} {
    %c0_i32 = arith.constant 0 : i32
    %0 = arith.cmpi eq, %arg1, %c0_i32 : i32
    %1 = arith.extui %0 : i1 to i32
    %c0_i32_0 = arith.constant 0 : i32
    %2 = arith.cmpi ne, %1, %c0_i32_0 : i32
    scf.if %2 {
      %cst_10 = arith.constant 0.000000e+00 : f32
      %12 = vector.broadcast %cst_10 : f32 to vector<512x128xf32>
      %c0_11 = arith.constant 0 : index
      %c0_12 = arith.constant 0 : index
      %13 = vector.load %arg7[%c0_11, %c0_12] : memref<512x128xf32, #tpu.memory_space<vmem>>, vector<512x128xf32>
      tpu.vector_store %arg7[%c0_11, %c0_12], %12 {strides = array<i32>} : memref<512x128xf32, #tpu.memory_space<vmem>>, vector<512x128xf32>,
    } else {
    }
    %c0 = arith.constant 0 : index
    %c0_1 = arith.constant 0 : index
    %3 = vector.load %arg7[%c0, %c0_1] : memref<512x128xf32, #tpu.memory_space<vmem>>, vector<512x128xf32>
    %c0_2 = arith.constant 0 : index
    %c0_3 = arith.constant 0 : index
    %4 = vector.load %arg2[%c0_2, %c0_3] : memref<512x128xbf16, #tpu.memory_space<vmem>>, vector<512x128xbf16>
    %c0_4 = arith.constant 0 : index
    %c0_5 = arith.constant 0 : index
    %5 = vector.load %arg3[%c0_4, %c0_5] : memref<128x128xbf16, #tpu.memory_space<vmem>>, vector<128x128xbf16>
    %cst = arith.constant dense<0.000000e+00> : vector<512x128xf32>
    %6 = tpu.matmul %4, %5, %cst {dimension_numbers = #tpu.dot_dimension_numbers<[1], [0], [0], [1], [0, 0, 1, 1], [], []>} : vector<512x128xbf16>, vector<128x128xbf16>, vector<512x128xf32> -> vector<512x128xf32>
    %7 = arith.addf %3, %6 : vector<512x128xf32>
    %c0_6 = arith.constant 0 : index
    %c0_7 = arith.constant 0 : index
    %8 = vector.load %arg7[%c0_6, %c0_7] : memref<512x128xf32, #tpu.memory_space<vmem>>, vector<512x128xf32>
    tpu.vector_store %arg7[%c0_6, %c0_7], %7 {strides = array<i32>} : memref<512x128xf32, #tpu.memory_space<vmem>>, vector<512x128xf32>,
    %c0_i32_8 = arith.constant 0 : i32
    %9 = arith.cmpi eq, %arg1, %c0_i32_8 : i32
    %10 = arith.extui %9 : i1 to i32
    %c0_i32_9 = arith.constant 0 : i32
    %11 = arith.cmpi ne, %10, %c0_i32_9 : i32
    scf.if %11 {
      %c0_10 = arith.constant 0 : index
      %c0_11 = arith.constant 0 : index
      %12 = vector.load %arg7[%c0_10, %c0_11] : memref<512x128xf32, #tpu.memory_space<vmem>>, vector<512x128xf32>
      %13 = arith.truncf %12 : vector<512x128xf32> to vector<512x128xbf16>
      %c0_12 = arith.constant 0 : index
      %c0_13 = arith.constant 0 : index
      %14 = vector.load %arg4[%c0_12, %c0_13] : memref<512x128xbf16, #tpu.memory_space<vmem>>, vector<512x128xbf16>
      tpu.vector_store %arg4[%c0_12, %c0_13], %13 {strides = array<i32>} : memref<512x128xbf16, #tpu.memory_space<vmem>>, vector<512x128xbf16>,
      %cst_14 = arith.constant dense<0.000000e+00> : vector<128xf32>
      %15 = vector.multi_reduction <add>, %12, %cst_14 [0] : vector<512x128xf32> to vector<128xf32>
      %16 = vector.shape_cast %15 : vector<128xf32> to vector<1x128xf32>
      %17 = vector.shape_cast %16 : vector<1x128xf32> to vector<1x1x128xf32>
      %c0_15 = arith.constant 0 : index
      %c0_16 = arith.constant 0 : index
      %c0_17 = arith.constant 0 : index
      %18 = vector.load %arg5[%c0_15, %c0_16, %c0_17] : memref<1x1x128xf32, #tpu.memory_space<vmem>>, vector<1x1x128xf32>
      tpu.vector_store %arg5[%c0_15, %c0_16, %c0_17], %17 {strides = array<i32>} : memref<1x1x128xf32, #tpu.memory_space<vmem>>, vector<1x1x128xf32>,
      %19 = arith.mulf %12, %12 : vector<512x128xf32>
      %cst_18 = arith.constant dense<0.000000e+00> : vector<128xf32>
      %20 = vector.multi_reduction <add>, %19, %cst_18 [0] : vector<512x128xf32> to vector<128xf32>
      %21 = vector.shape_cast %20 : vector<128xf32> to vector<1x128xf32>
      %22 = vector.shape_cast %21 : vector<1x128xf32> to vector<1x1x128xf32>
      %c0_19 = arith.constant 0 : index
      %c0_20 = arith.constant 0 : index
      %c0_21 = arith.constant 0 : index
      %23 = vector.load %arg6[%c0_19, %c0_20, %c0_21] : memref<1x1x128xf32, #tpu.memory_space<vmem>>, vector<1x1x128xf32>
      tpu.vector_store %arg6[%c0_19, %c0_20, %c0_21], %22 {strides = array<i32>} : memref<1x1x128xf32, #tpu.memory_space<vmem>>, vector<1x1x128xf32>,
    } else {
    }
    return
  }
  func.func @transform_0(%arg0: i32, %arg1: i32) -> (i32, i32) {
    %c0_i32 = arith.constant 0 : i32
    return %arg0, %arg1 : i32, i32
  }
  func.func @transform_1(%arg0: i32, %arg1: i32) -> (i32, i32) {
    %c0_i32 = arith.constant 0 : i32
    %c0_i32_0 = arith.constant 0 : i32
    return %arg1, %c0_i32 : i32, i32
  }
  func.func @transform_2(%arg0: i32, %arg1: i32) -> (i32, i32) {
    %c0_i32 = arith.constant 0 : i32
    %c0_i32_0 = arith.constant 0 : i32
    return %arg0, %c0_i32 : i32, i32
  }
  func.func @transform_3(%arg0: i32, %arg1: i32) -> (i32, i32, i32) {
    %c0_i32 = arith.constant 0 : i32
    %c0_i32_0 = arith.constant 0 : i32
    %c0_i32_1 = arith.constant 0 : i32
    return %arg0, %c0_i32, %c0_i32_0 : i32, i32, i32
  }
  func.func @transform_4(%arg0: i32, %arg1: i32) -> (i32, i32, i32) {
    %c0_i32 = arith.constant 0 : i32
    %c0_i32_0 = arith.constant 0 : i32
    %c0_i32_1 = arith.constant 0 : i32
    return %arg0, %c0_i32, %c0_i32_0 : i32, i32, i32
  }
}

module attributes {stable_mosaic.version = 11 : i64} {
  func.func @_scale_shift_lrelu_kernel(%arg0: i32, %arg1: memref<512x128xbf16, #tpu.memory_space<vmem>>, %arg2: memref<1x128xf32, #tpu.memory_space<vmem>>, %arg3: memref<1x128xf32, #tpu.memory_space<vmem>>, %arg4: memref<512x128xbf16, #tpu.memory_space<vmem>>) attributes {dimension_semantics = [#tpu.dimension_semantics<parallel>], iteration_bounds = array<i64: 1>, scalar_prefetch = 0 : i64, scratch_operands = 0 : i64, tpu.core_type = #tpu.core_type<tc>, window_params = [{transform_indices = @transform_0, window_bounds = array<i64: 512, 128>}, {pipeline_mode = #tpu.pipeline_mode<synchronous>, transform_indices = @transform_1, window_bounds = array<i64: 1, 128>}, {pipeline_mode = #tpu.pipeline_mode<synchronous>, transform_indices = @transform_2, window_bounds = array<i64: 1, 128>}, {transform_indices = @transform_3, window_bounds = array<i64: 512, 128>}]} {
    %c0 = arith.constant 0 : index
    %c0_0 = arith.constant 0 : index
    %0 = vector.load %arg1[%c0, %c0_0] : memref<512x128xbf16, #tpu.memory_space<vmem>>, vector<512x128xbf16>
    %1 = arith.extf %0 : vector<512x128xbf16> to vector<512x128xf32>
    %c0_1 = arith.constant 0 : index
    %c0_2 = arith.constant 0 : index
    %2 = vector.load %arg2[%c0_1, %c0_2] : memref<1x128xf32, #tpu.memory_space<vmem>>, vector<1x128xf32>
    %3 = vector.broadcast %2 : vector<1x128xf32> to vector<512x128xf32>
    %4 = arith.mulf %1, %3 : vector<512x128xf32>
    %c0_3 = arith.constant 0 : index
    %c0_4 = arith.constant 0 : index
    %5 = vector.load %arg3[%c0_3, %c0_4] : memref<1x128xf32, #tpu.memory_space<vmem>>, vector<1x128xf32>
    %6 = vector.broadcast %5 : vector<1x128xf32> to vector<512x128xf32>
    %7 = arith.addf %4, %6 : vector<512x128xf32>
    %cst = arith.constant 0.000000e+00 : f32
    %8 = vector.broadcast %cst : f32 to vector<512x128xf32>
    %9 = arith.cmpf ogt, %7, %8 : vector<512x128xf32>
    %cst_5 = arith.constant 2.000000e-01 : f32
    %10 = vector.broadcast %cst_5 : f32 to vector<512x128xf32>
    %11 = arith.mulf %10, %7 : vector<512x128xf32>
    %12 = arith.select %9, %7, %11 : vector<512x128xi1>, vector<512x128xf32>
    %13 = arith.truncf %12 : vector<512x128xf32> to vector<512x128xbf16>
    %c0_6 = arith.constant 0 : index
    %c0_7 = arith.constant 0 : index
    %14 = vector.load %arg4[%c0_6, %c0_7] : memref<512x128xbf16, #tpu.memory_space<vmem>>, vector<512x128xbf16>
    tpu.vector_store %arg4[%c0_6, %c0_7], %13 {strides = array<i32>} : memref<512x128xbf16, #tpu.memory_space<vmem>>, vector<512x128xbf16>,
    return
  }
  func.func @transform_0(%arg0: i32) -> (i32, i32) {
    %c0_i32 = arith.constant 0 : i32
    %c0_i32_0 = arith.constant 0 : i32
    return %arg0, %c0_i32 : i32, i32
  }
  func.func @transform_1(%arg0: i32) -> (i32, i32) {
    %c0_i32 = arith.constant 0 : i32
    %c0_i32_0 = arith.constant 0 : i32
    %c0_i32_1 = arith.constant 0 : i32
    return %c0_i32, %c0_i32_0 : i32, i32
  }
  func.func @transform_2(%arg0: i32) -> (i32, i32) {
    %c0_i32 = arith.constant 0 : i32
    %c0_i32_0 = arith.constant 0 : i32
    %c0_i32_1 = arith.constant 0 : i32
    return %c0_i32, %c0_i32_0 : i32, i32
  }
  func.func @transform_3(%arg0: i32) -> (i32, i32) {
    %c0_i32 = arith.constant 0 : i32
    %c0_i32_0 = arith.constant 0 : i32
    return %arg0, %c0_i32 : i32, i32
  }
}

module attributes {stable_mosaic.version = 11 : i64} {
  func.func @_conv_gemm_kernel(%arg0: i32, %arg1: i32, %arg2: memref<128x256xbf16, #tpu.memory_space<vmem>>, %arg3: memref<256x128xbf16, #tpu.memory_space<vmem>>, %arg4: memref<128x128xbf16, #tpu.memory_space<vmem>>, %arg5: memref<1x1x128xf32, #tpu.memory_space<vmem>>, %arg6: memref<1x1x128xf32, #tpu.memory_space<vmem>>, %arg7: memref<128x128xf32, #tpu.memory_space<vmem>>) attributes {dimension_semantics = [#tpu.dimension_semantics<parallel>, #tpu.dimension_semantics<arbitrary>], iteration_bounds = array<i64: 1, 1>, scalar_prefetch = 0 : i64, scratch_operands = 1 : i64, tpu.core_type = #tpu.core_type<tc>, window_params = [{transform_indices = @transform_0, window_bounds = array<i64: 128, 256>}, {transform_indices = @transform_1, window_bounds = array<i64: 256, 128>}, {transform_indices = @transform_2, window_bounds = array<i64: 128, 128>}, {transform_indices = @transform_3, window_bounds = array<i64: 1, 1, 128>}, {transform_indices = @transform_4, window_bounds = array<i64: 1, 1, 128>}]} {
    %c0_i32 = arith.constant 0 : i32
    %0 = arith.cmpi eq, %arg1, %c0_i32 : i32
    %1 = arith.extui %0 : i1 to i32
    %c0_i32_0 = arith.constant 0 : i32
    %2 = arith.cmpi ne, %1, %c0_i32_0 : i32
    scf.if %2 {
      %cst_10 = arith.constant 0.000000e+00 : f32
      %12 = vector.broadcast %cst_10 : f32 to vector<128x128xf32>
      %c0_11 = arith.constant 0 : index
      %c0_12 = arith.constant 0 : index
      %13 = vector.load %arg7[%c0_11, %c0_12] : memref<128x128xf32, #tpu.memory_space<vmem>>, vector<128x128xf32>
      tpu.vector_store %arg7[%c0_11, %c0_12], %12 {strides = array<i32>} : memref<128x128xf32, #tpu.memory_space<vmem>>, vector<128x128xf32>,
    } else {
    }
    %c0 = arith.constant 0 : index
    %c0_1 = arith.constant 0 : index
    %3 = vector.load %arg7[%c0, %c0_1] : memref<128x128xf32, #tpu.memory_space<vmem>>, vector<128x128xf32>
    %c0_2 = arith.constant 0 : index
    %c0_3 = arith.constant 0 : index
    %4 = vector.load %arg2[%c0_2, %c0_3] : memref<128x256xbf16, #tpu.memory_space<vmem>>, vector<128x256xbf16>
    %c0_4 = arith.constant 0 : index
    %c0_5 = arith.constant 0 : index
    %5 = vector.load %arg3[%c0_4, %c0_5] : memref<256x128xbf16, #tpu.memory_space<vmem>>, vector<256x128xbf16>
    %cst = arith.constant dense<0.000000e+00> : vector<128x128xf32>
    %6 = tpu.matmul %4, %5, %cst {dimension_numbers = #tpu.dot_dimension_numbers<[1], [0], [0], [1], [0, 0, 1, 1], [], []>} : vector<128x256xbf16>, vector<256x128xbf16>, vector<128x128xf32> -> vector<128x128xf32>
    %7 = arith.addf %3, %6 : vector<128x128xf32>
    %c0_6 = arith.constant 0 : index
    %c0_7 = arith.constant 0 : index
    %8 = vector.load %arg7[%c0_6, %c0_7] : memref<128x128xf32, #tpu.memory_space<vmem>>, vector<128x128xf32>
    tpu.vector_store %arg7[%c0_6, %c0_7], %7 {strides = array<i32>} : memref<128x128xf32, #tpu.memory_space<vmem>>, vector<128x128xf32>,
    %c0_i32_8 = arith.constant 0 : i32
    %9 = arith.cmpi eq, %arg1, %c0_i32_8 : i32
    %10 = arith.extui %9 : i1 to i32
    %c0_i32_9 = arith.constant 0 : i32
    %11 = arith.cmpi ne, %10, %c0_i32_9 : i32
    scf.if %11 {
      %c0_10 = arith.constant 0 : index
      %c0_11 = arith.constant 0 : index
      %12 = vector.load %arg7[%c0_10, %c0_11] : memref<128x128xf32, #tpu.memory_space<vmem>>, vector<128x128xf32>
      %13 = arith.truncf %12 : vector<128x128xf32> to vector<128x128xbf16>
      %c0_12 = arith.constant 0 : index
      %c0_13 = arith.constant 0 : index
      %14 = vector.load %arg4[%c0_12, %c0_13] : memref<128x128xbf16, #tpu.memory_space<vmem>>, vector<128x128xbf16>
      tpu.vector_store %arg4[%c0_12, %c0_13], %13 {strides = array<i32>} : memref<128x128xbf16, #tpu.memory_space<vmem>>, vector<128x128xbf16>,
      %cst_14 = arith.constant dense<0.000000e+00> : vector<128xf32>
      %15 = vector.multi_reduction <add>, %12, %cst_14 [0] : vector<128x128xf32> to vector<128xf32>
      %16 = vector.shape_cast %15 : vector<128xf32> to vector<1x128xf32>
      %17 = vector.shape_cast %16 : vector<1x128xf32> to vector<1x1x128xf32>
      %c0_15 = arith.constant 0 : index
      %c0_16 = arith.constant 0 : index
      %c0_17 = arith.constant 0 : index
      %18 = vector.load %arg5[%c0_15, %c0_16, %c0_17] : memref<1x1x128xf32, #tpu.memory_space<vmem>>, vector<1x1x128xf32>
      tpu.vector_store %arg5[%c0_15, %c0_16, %c0_17], %17 {strides = array<i32>} : memref<1x1x128xf32, #tpu.memory_space<vmem>>, vector<1x1x128xf32>,
      %19 = arith.mulf %12, %12 : vector<128x128xf32>
      %cst_18 = arith.constant dense<0.000000e+00> : vector<128xf32>
      %20 = vector.multi_reduction <add>, %19, %cst_18 [0] : vector<128x128xf32> to vector<128xf32>
      %21 = vector.shape_cast %20 : vector<128xf32> to vector<1x128xf32>
      %22 = vector.shape_cast %21 : vector<1x128xf32> to vector<1x1x128xf32>
      %c0_19 = arith.constant 0 : index
      %c0_20 = arith.constant 0 : index
      %c0_21 = arith.constant 0 : index
      %23 = vector.load %arg6[%c0_19, %c0_20, %c0_21] : memref<1x1x128xf32, #tpu.memory_space<vmem>>, vector<1x1x128xf32>
      tpu.vector_store %arg6[%c0_19, %c0_20, %c0_21], %22 {strides = array<i32>} : memref<1x1x128xf32, #tpu.memory_space<vmem>>, vector<1x1x128xf32>,
    } else {
    }
    return
  }
  func.func @transform_0(%arg0: i32, %arg1: i32) -> (i32, i32) {
    %c0_i32 = arith.constant 0 : i32
    return %arg0, %arg1 : i32, i32
  }
  func.func @transform_1(%arg0: i32, %arg1: i32) -> (i32, i32) {
    %c0_i32 = arith.constant 0 : i32
    %c0_i32_0 = arith.constant 0 : i32
    return %arg1, %c0_i32 : i32, i32
  }
  func.func @transform_2(%arg0: i32, %arg1: i32) -> (i32, i32) {
    %c0_i32 = arith.constant 0 : i32
    %c0_i32_0 = arith.constant 0 : i32
    return %arg0, %c0_i32 : i32, i32
  }
  func.func @transform_3(%arg0: i32, %arg1: i32) -> (i32, i32, i32) {
    %c0_i32 = arith.constant 0 : i32
    %c0_i32_0 = arith.constant 0 : i32
    %c0_i32_1 = arith.constant 0 : i32
    return %arg0, %c0_i32, %c0_i32_0 : i32, i32, i32
  }
  func.func @transform_4(%arg0: i32, %arg1: i32) -> (i32, i32, i32) {
    %c0_i32 = arith.constant 0 : i32
    %c0_i32_0 = arith.constant 0 : i32
    %c0_i32_1 = arith.constant 0 : i32
    return %arg0, %c0_i32, %c0_i32_0 : i32, i32, i32
  }
}

module attributes {stable_mosaic.version = 11 : i64} {
  func.func @_scale_shift_lrelu_kernel(%arg0: i32, %arg1: memref<128x128xbf16, #tpu.memory_space<vmem>>, %arg2: memref<1x128xf32, #tpu.memory_space<vmem>>, %arg3: memref<1x128xf32, #tpu.memory_space<vmem>>, %arg4: memref<128x128xbf16, #tpu.memory_space<vmem>>) attributes {dimension_semantics = [#tpu.dimension_semantics<parallel>], iteration_bounds = array<i64: 1>, scalar_prefetch = 0 : i64, scratch_operands = 0 : i64, tpu.core_type = #tpu.core_type<tc>, window_params = [{transform_indices = @transform_0, window_bounds = array<i64: 128, 128>}, {pipeline_mode = #tpu.pipeline_mode<synchronous>, transform_indices = @transform_1, window_bounds = array<i64: 1, 128>}, {pipeline_mode = #tpu.pipeline_mode<synchronous>, transform_indices = @transform_2, window_bounds = array<i64: 1, 128>}, {transform_indices = @transform_3, window_bounds = array<i64: 128, 128>}]} {
    %c0 = arith.constant 0 : index
    %c0_0 = arith.constant 0 : index
    %0 = vector.load %arg1[%c0, %c0_0] : memref<128x128xbf16, #tpu.memory_space<vmem>>, vector<128x128xbf16>
    %1 = arith.extf %0 : vector<128x128xbf16> to vector<128x128xf32>
    %c0_1 = arith.constant 0 : index
    %c0_2 = arith.constant 0 : index
    %2 = vector.load %arg2[%c0_1, %c0_2] : memref<1x128xf32, #tpu.memory_space<vmem>>, vector<1x128xf32>
    %3 = vector.broadcast %2 : vector<1x128xf32> to vector<128x128xf32>
    %4 = arith.mulf %1, %3 : vector<128x128xf32>
    %c0_3 = arith.constant 0 : index
    %c0_4 = arith.constant 0 : index
    %5 = vector.load %arg3[%c0_3, %c0_4] : memref<1x128xf32, #tpu.memory_space<vmem>>, vector<1x128xf32>
    %6 = vector.broadcast %5 : vector<1x128xf32> to vector<128x128xf32>
    %7 = arith.addf %4, %6 : vector<128x128xf32>
    %cst = arith.constant 0.000000e+00 : f32
    %8 = vector.broadcast %cst : f32 to vector<128x128xf32>
    %9 = arith.cmpf ogt, %7, %8 : vector<128x128xf32>
    %cst_5 = arith.constant 2.000000e-01 : f32
    %10 = vector.broadcast %cst_5 : f32 to vector<128x128xf32>
    %11 = arith.mulf %10, %7 : vector<128x128xf32>
    %12 = arith.select %9, %7, %11 : vector<128x128xi1>, vector<128x128xf32>
    %13 = arith.truncf %12 : vector<128x128xf32> to vector<128x128xbf16>
    %c0_6 = arith.constant 0 : index
    %c0_7 = arith.constant 0 : index
    %14 = vector.load %arg4[%c0_6, %c0_7] : memref<128x128xbf16, #tpu.memory_space<vmem>>, vector<128x128xbf16>
    tpu.vector_store %arg4[%c0_6, %c0_7], %13 {strides = array<i32>} : memref<128x128xbf16, #tpu.memory_space<vmem>>, vector<128x128xbf16>,
    return
  }
  func.func @transform_0(%arg0: i32) -> (i32, i32) {
    %c0_i32 = arith.constant 0 : i32
    %c0_i32_0 = arith.constant 0 : i32
    return %arg0, %c0_i32 : i32, i32
  }
  func.func @transform_1(%arg0: i32) -> (i32, i32) {
    %c0_i32 = arith.constant 0 : i32
    %c0_i32_0 = arith.constant 0 : i32
    %c0_i32_1 = arith.constant 0 : i32
    return %c0_i32, %c0_i32_0 : i32, i32
  }
  func.func @transform_2(%arg0: i32) -> (i32, i32) {
    %c0_i32 = arith.constant 0 : i32
    %c0_i32_0 = arith.constant 0 : i32
    %c0_i32_1 = arith.constant 0 : i32
    return %c0_i32, %c0_i32_0 : i32, i32
  }
  func.func @transform_3(%arg0: i32) -> (i32, i32) {
    %c0_i32 = arith.constant 0 : i32
    %c0_i32_0 = arith.constant 0 : i32
    return %arg0, %c0_i32 : i32, i32
  }
}

module attributes {stable_mosaic.version = 11 : i64} {
  func.func @_conv_gemm_kernel(%arg0: i32, %arg1: i32, %arg2: memref<32x512xbf16, #tpu.memory_space<vmem>>, %arg3: memref<512x128xbf16, #tpu.memory_space<vmem>>, %arg4: memref<32x128xbf16, #tpu.memory_space<vmem>>, %arg5: memref<1x1x128xf32, #tpu.memory_space<vmem>>, %arg6: memref<1x1x128xf32, #tpu.memory_space<vmem>>, %arg7: memref<32x128xf32, #tpu.memory_space<vmem>>) attributes {dimension_semantics = [#tpu.dimension_semantics<parallel>, #tpu.dimension_semantics<arbitrary>], iteration_bounds = array<i64: 1, 1>, scalar_prefetch = 0 : i64, scratch_operands = 1 : i64, tpu.core_type = #tpu.core_type<tc>, window_params = [{transform_indices = @transform_0, window_bounds = array<i64: 32, 512>}, {transform_indices = @transform_1, window_bounds = array<i64: 512, 128>}, {transform_indices = @transform_2, window_bounds = array<i64: 32, 128>}, {transform_indices = @transform_3, window_bounds = array<i64: 1, 1, 128>}, {transform_indices = @transform_4, window_bounds = array<i64: 1, 1, 128>}]} {
    %c0_i32 = arith.constant 0 : i32
    %0 = arith.cmpi eq, %arg1, %c0_i32 : i32
    %1 = arith.extui %0 : i1 to i32
    %c0_i32_0 = arith.constant 0 : i32
    %2 = arith.cmpi ne, %1, %c0_i32_0 : i32
    scf.if %2 {
      %cst_10 = arith.constant 0.000000e+00 : f32
      %12 = vector.broadcast %cst_10 : f32 to vector<32x128xf32>
      %c0_11 = arith.constant 0 : index
      %c0_12 = arith.constant 0 : index
      %13 = vector.load %arg7[%c0_11, %c0_12] : memref<32x128xf32, #tpu.memory_space<vmem>>, vector<32x128xf32>
      tpu.vector_store %arg7[%c0_11, %c0_12], %12 {strides = array<i32>} : memref<32x128xf32, #tpu.memory_space<vmem>>, vector<32x128xf32>,
    } else {
    }
    %c0 = arith.constant 0 : index
    %c0_1 = arith.constant 0 : index
    %3 = vector.load %arg7[%c0, %c0_1] : memref<32x128xf32, #tpu.memory_space<vmem>>, vector<32x128xf32>
    %c0_2 = arith.constant 0 : index
    %c0_3 = arith.constant 0 : index
    %4 = vector.load %arg2[%c0_2, %c0_3] : memref<32x512xbf16, #tpu.memory_space<vmem>>, vector<32x512xbf16>
    %c0_4 = arith.constant 0 : index
    %c0_5 = arith.constant 0 : index
    %5 = vector.load %arg3[%c0_4, %c0_5] : memref<512x128xbf16, #tpu.memory_space<vmem>>, vector<512x128xbf16>
    %cst = arith.constant dense<0.000000e+00> : vector<32x128xf32>
    %6 = tpu.matmul %4, %5, %cst {dimension_numbers = #tpu.dot_dimension_numbers<[1], [0], [0], [1], [0, 0, 1, 1], [], []>} : vector<32x512xbf16>, vector<512x128xbf16>, vector<32x128xf32> -> vector<32x128xf32>
    %7 = arith.addf %3, %6 : vector<32x128xf32>
    %c0_6 = arith.constant 0 : index
    %c0_7 = arith.constant 0 : index
    %8 = vector.load %arg7[%c0_6, %c0_7] : memref<32x128xf32, #tpu.memory_space<vmem>>, vector<32x128xf32>
    tpu.vector_store %arg7[%c0_6, %c0_7], %7 {strides = array<i32>} : memref<32x128xf32, #tpu.memory_space<vmem>>, vector<32x128xf32>,
    %c0_i32_8 = arith.constant 0 : i32
    %9 = arith.cmpi eq, %arg1, %c0_i32_8 : i32
    %10 = arith.extui %9 : i1 to i32
    %c0_i32_9 = arith.constant 0 : i32
    %11 = arith.cmpi ne, %10, %c0_i32_9 : i32
    scf.if %11 {
      %c0_10 = arith.constant 0 : index
      %c0_11 = arith.constant 0 : index
      %12 = vector.load %arg7[%c0_10, %c0_11] : memref<32x128xf32, #tpu.memory_space<vmem>>, vector<32x128xf32>
      %13 = arith.truncf %12 : vector<32x128xf32> to vector<32x128xbf16>
      %c0_12 = arith.constant 0 : index
      %c0_13 = arith.constant 0 : index
      %14 = vector.load %arg4[%c0_12, %c0_13] : memref<32x128xbf16, #tpu.memory_space<vmem>>, vector<32x128xbf16>
      tpu.vector_store %arg4[%c0_12, %c0_13], %13 {strides = array<i32>} : memref<32x128xbf16, #tpu.memory_space<vmem>>, vector<32x128xbf16>,
      %cst_14 = arith.constant dense<0.000000e+00> : vector<128xf32>
      %15 = vector.multi_reduction <add>, %12, %cst_14 [0] : vector<32x128xf32> to vector<128xf32>
      %16 = vector.shape_cast %15 : vector<128xf32> to vector<1x128xf32>
      %17 = vector.shape_cast %16 : vector<1x128xf32> to vector<1x1x128xf32>
      %c0_15 = arith.constant 0 : index
      %c0_16 = arith.constant 0 : index
      %c0_17 = arith.constant 0 : index
      %18 = vector.load %arg5[%c0_15, %c0_16, %c0_17] : memref<1x1x128xf32, #tpu.memory_space<vmem>>, vector<1x1x128xf32>
      tpu.vector_store %arg5[%c0_15, %c0_16, %c0_17], %17 {strides = array<i32>} : memref<1x1x128xf32, #tpu.memory_space<vmem>>, vector<1x1x128xf32>,
      %19 = arith.mulf %12, %12 : vector<32x128xf32>
      %cst_18 = arith.constant dense<0.000000e+00> : vector<128xf32>
      %20 = vector.multi_reduction <add>, %19, %cst_18 [0] : vector<32x128xf32> to vector<128xf32>
      %21 = vector.shape_cast %20 : vector<128xf32> to vector<1x128xf32>
      %22 = vector.shape_cast %21 : vector<1x128xf32> to vector<1x1x128xf32>
      %c0_19 = arith.constant 0 : index
      %c0_20 = arith.constant 0 : index
      %c0_21 = arith.constant 0 : index
      %23 = vector.load %arg6[%c0_19, %c0_20, %c0_21] : memref<1x1x128xf32, #tpu.memory_space<vmem>>, vector<1x1x128xf32>
      tpu.vector_store %arg6[%c0_19, %c0_20, %c0_21], %22 {strides = array<i32>} : memref<1x1x128xf32, #tpu.memory_space<vmem>>, vector<1x1x128xf32>,
    } else {
    }
    return
  }
  func.func @transform_0(%arg0: i32, %arg1: i32) -> (i32, i32) {
    %c0_i32 = arith.constant 0 : i32
    return %arg0, %arg1 : i32, i32
  }
  func.func @transform_1(%arg0: i32, %arg1: i32) -> (i32, i32) {
    %c0_i32 = arith.constant 0 : i32
    %c0_i32_0 = arith.constant 0 : i32
    return %arg1, %c0_i32 : i32, i32
  }
  func.func @transform_2(%arg0: i32, %arg1: i32) -> (i32, i32) {
    %c0_i32 = arith.constant 0 : i32
    %c0_i32_0 = arith.constant 0 : i32
    return %arg0, %c0_i32 : i32, i32
  }
  func.func @transform_3(%arg0: i32, %arg1: i32) -> (i32, i32, i32) {
    %c0_i32 = arith.constant 0 : i32
    %c0_i32_0 = arith.constant 0 : i32
    %c0_i32_1 = arith.constant 0 : i32
    return %arg0, %c0_i32, %c0_i32_0 : i32, i32, i32
  }
  func.func @transform_4(%arg0: i32, %arg1: i32) -> (i32, i32, i32) {
    %c0_i32 = arith.constant 0 : i32
    %c0_i32_0 = arith.constant 0 : i32
    %c0_i32_1 = arith.constant 0 : i32
    return %arg0, %c0_i32, %c0_i32_0 : i32, i32, i32
  }
}

module attributes {stable_mosaic.version = 11 : i64} {
  func.func @_scale_shift_lrelu_kernel(%arg0: i32, %arg1: memref<32x128xbf16, #tpu.memory_space<vmem>>, %arg2: memref<1x128xf32, #tpu.memory_space<vmem>>, %arg3: memref<1x128xf32, #tpu.memory_space<vmem>>, %arg4: memref<32x128xbf16, #tpu.memory_space<vmem>>) attributes {dimension_semantics = [#tpu.dimension_semantics<parallel>], iteration_bounds = array<i64: 1>, scalar_prefetch = 0 : i64, scratch_operands = 0 : i64, tpu.core_type = #tpu.core_type<tc>, window_params = [{transform_indices = @transform_0, window_bounds = array<i64: 32, 128>}, {pipeline_mode = #tpu.pipeline_mode<synchronous>, transform_indices = @transform_1, window_bounds = array<i64: 1, 128>}, {pipeline_mode = #tpu.pipeline_mode<synchronous>, transform_indices = @transform_2, window_bounds = array<i64: 1, 128>}, {transform_indices = @transform_3, window_bounds = array<i64: 32, 128>}]} {
    %c0 = arith.constant 0 : index
    %c0_0 = arith.constant 0 : index
    %0 = vector.load %arg1[%c0, %c0_0] : memref<32x128xbf16, #tpu.memory_space<vmem>>, vector<32x128xbf16>
    %1 = arith.extf %0 : vector<32x128xbf16> to vector<32x128xf32>
    %c0_1 = arith.constant 0 : index
    %c0_2 = arith.constant 0 : index
    %2 = vector.load %arg2[%c0_1, %c0_2] : memref<1x128xf32, #tpu.memory_space<vmem>>, vector<1x128xf32>
    %3 = vector.broadcast %2 : vector<1x128xf32> to vector<32x128xf32>
    %4 = arith.mulf %1, %3 : vector<32x128xf32>
    %c0_3 = arith.constant 0 : index
    %c0_4 = arith.constant 0 : index
    %5 = vector.load %arg3[%c0_3, %c0_4] : memref<1x128xf32, #tpu.memory_space<vmem>>, vector<1x128xf32>
    %6 = vector.broadcast %5 : vector<1x128xf32> to vector<32x128xf32>
    %7 = arith.addf %4, %6 : vector<32x128xf32>
    %cst = arith.constant 0.000000e+00 : f32
    %8 = vector.broadcast %cst : f32 to vector<32x128xf32>
    %9 = arith.cmpf ogt, %7, %8 : vector<32x128xf32>
    %cst_5 = arith.constant 2.000000e-01 : f32
    %10 = vector.broadcast %cst_5 : f32 to vector<32x128xf32>
    %11 = arith.mulf %10, %7 : vector<32x128xf32>
    %12 = arith.select %9, %7, %11 : vector<32x128xi1>, vector<32x128xf32>
    %13 = arith.truncf %12 : vector<32x128xf32> to vector<32x128xbf16>
    %c0_6 = arith.constant 0 : index
    %c0_7 = arith.constant 0 : index
    %14 = vector.load %arg4[%c0_6, %c0_7] : memref<32x128xbf16, #tpu.memory_space<vmem>>, vector<32x128xbf16>
    tpu.vector_store %arg4[%c0_6, %c0_7], %13 {strides = array<i32>} : memref<32x128xbf16, #tpu.memory_space<vmem>>, vector<32x128xbf16>,
    return
  }
  func.func @transform_0(%arg0: i32) -> (i32, i32) {
    %c0_i32 = arith.constant 0 : i32
    %c0_i32_0 = arith.constant 0 : i32
    return %arg0, %c0_i32 : i32, i32
  }
  func.func @transform_1(%arg0: i32) -> (i32, i32) {
    %c0_i32 = arith.constant 0 : i32
    %c0_i32_0 = arith.constant 0 : i32
    %c0_i32_1 = arith.constant 0 : i32
    return %c0_i32, %c0_i32_0 : i32, i32
  }
  func.func @transform_2(%arg0: i32) -> (i32, i32) {
    %c0_i32 = arith.constant 0 : i32
    %c0_i32_0 = arith.constant 0 : i32
    %c0_i32_1 = arith.constant 0 : i32
    return %c0_i32, %c0_i32_0 : i32, i32
  }
  func.func @transform_3(%arg0: i32) -> (i32, i32) {
    %c0_i32 = arith.constant 0 : i32
    %c0_i32_0 = arith.constant 0 : i32
    return %arg0, %c0_i32 : i32, i32
  }
}

module attributes {stable_mosaic.version = 11 : i64} {
  func.func @_final_sigmoid_kernel(%arg0: memref<8x1024xbf16, #tpu.memory_space<vmem>>, %arg1: memref<1024x128xbf16, #tpu.memory_space<vmem>>, %arg2: memref<8x128xf32, #tpu.memory_space<vmem>>) attributes {dimension_semantics = [], scalar_prefetch = 0 : i64, scratch_operands = 0 : i64, tpu.core_type = #tpu.core_type<tc>} {
    %c0 = arith.constant 0 : index
    %c0_0 = arith.constant 0 : index
    %0 = vector.load %arg0[%c0, %c0_0] : memref<8x1024xbf16, #tpu.memory_space<vmem>>, vector<8x1024xbf16>
    %c0_1 = arith.constant 0 : index
    %c0_2 = arith.constant 0 : index
    %1 = vector.load %arg1[%c0_1, %c0_2] : memref<1024x128xbf16, #tpu.memory_space<vmem>>, vector<1024x128xbf16>
    %cst = arith.constant dense<0.000000e+00> : vector<8x128xf32>
    %2 = tpu.matmul %0, %1, %cst {dimension_numbers = #tpu.dot_dimension_numbers<[1], [0], [0], [1], [0, 0, 1, 1], [], []>} : vector<8x1024xbf16>, vector<1024x128xbf16>, vector<8x128xf32> -> vector<8x128xf32>
    %cst_3 = arith.constant 0.000000e+00 : f32
    %3 = vector.broadcast %cst_3 : f32 to vector<8x128xf32>
    %4 = arith.subf %3, %2 : vector<8x128xf32>
    %5 = math.exp %4 : vector<8x128xf32>
    %cst_4 = arith.constant 1.000000e+00 : f32
    %6 = vector.broadcast %cst_4 : f32 to vector<8x128xf32>
    %7 = arith.addf %6, %5 : vector<8x128xf32>
    %8 = tpu.reciprocal %7 {approx = true} : vector<8x128xf32> -> vector<8x128xf32>
    %cst_5 = arith.constant 0.000000e+00 : f32
    %cst_6 = arith.constant 1.000000e+00 : f32
    %9 = vector.broadcast %cst_5 : f32 to vector<8x128xf32>
    %10 = arith.maximumf %9, %8 : vector<8x128xf32>
    %11 = vector.broadcast %cst_6 : f32 to vector<8x128xf32>
    %12 = arith.minimumf %11, %10 : vector<8x128xf32>
    %c0_7 = arith.constant 0 : index
    %c0_8 = arith.constant 0 : index
    %13 = vector.load %arg2[%c0_7, %c0_8] : memref<8x128xf32, #tpu.memory_space<vmem>>, vector<8x128xf32>
    tpu.vector_store %arg2[%c0_7, %c0_8], %12 {strides = array<i32>} : memref<8x128xf32, #tpu.memory_space<vmem>>, vector<8x128xf32>,
    return
  }
}

</mosaic_0001>

<bundles_post_ra>
// kernel: discriminator_forward.8
= control target key start
LH: loop header
LB: loop body
LE: loop exit
PB: predicated region body
PF: predicated region fallthrough
CT: control target
= control target key end

     0   :  { %10 = vsyncpa [#allocation4], 0  ;;  %s3426_s0 = inlined_call_operand.vmem [shape: bf16[2048,128], index: 0, kind: input, shape index: {}]   ;;  %s3427_s1 = inlined_call_operand.vmem [shape: bf16[128,128], index: 1, kind: input, shape index: {}]   ;;  %s3428_s2 = inlined_call_operand.vmem [shape: bf16[2048,128], index: 2, kind: output, shape index: {0}]   ;;  %s3429_s3 = inlined_call_operand.hbm [shape: f32[4,1,128], index: 3, kind: output, shape index: {1}]   ;;  %s3430_s4 = inlined_call_operand.hbm [shape: f32[4,1,128], index: 4, kind: output, shape index: {2}]  }
   0x1   :  { %12 = vsyncpa [#allocation4 + $0x1], 0 }
   0x2   :  { %13 = vsyncpa [#allocation6], 0 }
   0x3   :  { %15 = vsyncpa [#allocation6 + $0x1], 0  ;;  %s2839_s15 = smov 0   ;;  %s2841_s16 = smov 0  }
   0x4   :  { %s2843_s17 = smov 0   ;;  %s2845_s18 = smov 0  }
   0x5   :  { %s2847_s19 = smov 0   ;;  %s2849_s20 = smov 0  }
   0x6 LB: > { %s2091_s21 = sadd.s32 4294967295, %s2810_s20   ;;  %s2092_s22 = sadd.s32 4294967294, %s2810_s20   ;;  %s2810_s20 = sphi %s2849_s20, %s21_s20   ;;  %s2806_s19 = sphi %s2847_s19, %s3437_s19   ;;  %s2802_s18 = sphi %s2845_s18, %s3436_s18   ;;  %s2798_s17 = sphi %s2843_s17, %s3435_s17   ;;  %s2794_s16 = sphi %s2841_s16, %s3434_s16   ;;  %s2790_s15 = sphi %s2839_s15, %s3433_s15  }
   0x7   : > { %s33_s23 = sadd.s32 1, %s2806_s19  ;;  %s120_s24 = sadd.s32 1, %s2798_s17 }
   0x8   : > { %p35_p0 = scmp.ge.s32.totalorder %s33_s23, 4  ;;  %p130_p1 = scmp.ne.s32.totalorder %s2798_s17, %s2794_s16 }
   0x9   : > { %p131_p2 = scmp.eq.s32.totalorder %s2091_s21, 3  ;;  %p136_p3 = scmp.ne.s32.totalorder %s2794_s16, %s2790_s15 }
   0xa   : > { %s3439_s23 = smov (%p35_p0, %s33_s23), 0  ;;  %p137_p5 = scmp.eq.s32.totalorder %s2092_s22, 3 }
   0xb   : > { %p2879_p4 = por %p131_p2, %p130_p1  ;;  %s117_s26 = ssub.s32 %s2806_s19, %s3439_s23 }
   0xc   : > { %p2096_p6 = scmp.ge.s32.totalorder %s2810_s20, 1  ;;  %p118_p7 = scmp.eq.s32.totalorder %s117_s26, 0 }
   0xd   : > { %p2886_p8 = por %p137_p5, %p136_p3  ;;  %p202_p9 = scmp.lt.s32.totalorder %s2810_s20, 5 }
   0xe   : > { %s2892_s28 = scalar_select %p118_p7, %s2798_s17, %s120_s24  }
   0xf   : > { %p203_p10 = pnand %p2096_p6, %p202_p9 }
  0x10   : > { %v2660_v0 = vld [vmem:[%s3427_s1] sm:$0xff] (!%p203_p10)   ;;  %s2097_s5 = sshll.u32 (!%p203_p10), %s2802_s18, 6  ;;  %v2661_v1 = vld [vmem:[%s3427_s1 + $0x8] sm:$0xff] (!%p203_p10)   ;;  %v2662_v2 = vld [vmem:[%s3427_s1 + $0x10] sm:$0xff] (!%p203_p10)   ;;  %s2812_s9 = smov (!%p203_p10), [#allocation3]  }
  0x11   : > { %206 = sbr.rel (%p203_p10) target bundleno = 443 (0x1bb), region = 28  ;;  %p245_p11 = scmp.lt.s32.totalorder (!%p203_p10), %s2097_s5, 255  ;;  %2504 = vmatprep.subr.bf16.mxu0 (!%p203_p10), %v2660_v0  ;;  %2584 = vmatprep.subr.bf16.mxu1 (!%p203_p10), %v2660_v0  ;;  %v2663_v3 = vld [vmem:[%s3427_s1 + $0x18] sm:$0xff] (!%p203_p10)   ;;  %v2664_v5 = vld [vmem:[%s3427_s1 + $0x20] sm:$0xff] (!%p203_p10)   ;;  %v2665_v6 = vld [vmem:[%s3427_s1 + $0x28] sm:$0xff] (!%p203_p10)  }
  0x12   : > { %2505 = vmatpush3.bf16.msra.mxu0 (!%p203_p10), %v2660_v0  ;;  %2592 = vmatpush3.bf16.msra.mxu1 (!%p203_p10), %v2660_v0  ;;  %v2666_v7 = vld [vmem:[%s3427_s1 + $0x30] sm:$0xff] (!%p203_p10)   ;;  %v2667_v8 = vld [vmem:[%s3427_s1 + $0x38] sm:$0xff] (!%p203_p10)   ;;  %s2704_s11 = sshll.u32 (!%p203_p10), %s2812_s9, 4  ;;  %s2705_s11 = int_to_ptr.vmem [resolvable:$false] %s2704_s11 }
  0x13   : > { %2506 = vmatprep.subr.bf16.mxu0 (!%p203_p10), %v2661_v1  ;;  %2585 = vmatprep.subr.bf16.mxu1 (!%p203_p10), %v2661_v1 }
  0x16   : > { %2507 = vmatpush3.bf16.msra.mxu0 (!%p203_p10), %v2661_v1  ;;  %2593 = vmatpush3.bf16.msra.mxu1 (!%p203_p10), %v2661_v1 }
  0x17   : > { %2508 = vmatprep.subr.bf16.mxu0 (!%p203_p10), %v2662_v2  ;;  %2586 = vmatprep.subr.bf16.mxu1 (!%p203_p10), %v2662_v2 }
  0x18   : > { %s3441_s5 = smov (!%p245_p11, %s2097_s5), 255 }
  0x19   : > { %s2098_s10 = sshll.u32 %s3441_s5, 2  ;;  %s3337_s5 = sand.u32 1, %s2794_s16  }
  0x1a   : > { %s2912_s13 = scalar_lea.vmem %s3426_s0, %s2098_s10  ;;  %2509 = vmatpush3.bf16.msra.mxu0 %v2662_v2  ;;  %2594 = vmatpush3.bf16.msra.mxu1 %v2662_v2  ;;  %s2966_s12 = scalar_lea.vmem %s3428_s2, %s2098_s10 }
  0x1b   : > { %v2668_v4 = vld [vmem:[%s2912_s13] sm:$0xff]   ;;  %2510 = vmatprep.subr.bf16.mxu0 %v2663_v3  ;;  %2587 = vmatprep.subr.bf16.mxu1 %v2663_v3  ;;  %v2669_v10 = vld [vmem:[%s2912_s13 + $0x8] sm:$0xff]   ;;  %v2670_v11 = vld [vmem:[%s2912_s13 + $0x10] sm:$0xff]   ;;  %s2205_s10 = sshll.u32 %s2802_s18, 4  ;;  %s243_s21 = scalar_lea.vmem [#allocation5], %s3337_s5 }
  0x1c   : > { %2520 = vmatprep.mubr.bf16.mxu0 %v2668_v4  ;;  %v2684_v9 = vld [vmem:[%s2912_s13 + $0x80] sm:$0xff]   ;;  %v2685_v12 = vld [vmem:[%s2912_s13 + $0x88] sm:$0xff]   ;;  %v2686_v13 = vld [vmem:[%s2912_s13 + $0x90] sm:$0xff]   ;;  %s1957_s22 = sshll.u32 %s243_s21, 4  ;;  %s3347_s29 = scalar_lea.hbm %s3429_s3, %s2205_s10  ;;  %s3356_s22 = int_to_ptr.vmem [resolvable:$true] %s1957_s22 }
  0x1d   : > { %2552 = vmatprep.mubr.bf16.mxu1 %v2684_v9  ;;  %v2671_v14 = vld [vmem:[%s2912_s13 + $0x18] sm:$0xff]   ;;  %v2672_v15 = vld [vmem:[%s2912_s13 + $0x20] sm:$0xff]   ;;  %v2673_v18 = vld [vmem:[%s2912_s13 + $0x28] sm:$0xff]   ;;  %s3354_s6 = scalar_lea.hbm %s3430_s4, %s2205_s10  ;;  %s1924_s7 = scalar_lea.sflag [#allocation4], %s3337_s5 }
  0x1e   : > { %2511 = vmatpush3.bf16.msra.mxu0 %v2663_v3  ;;  %2595 = vmatpush3.bf16.msra.mxu1 %v2663_v3  ;;  %v2687_v16 = vld [vmem:[%s2912_s13 + $0x98] sm:$0xff]   ;;  %v2688_v17 = vld [vmem:[%s2912_s13 + $0xa0] sm:$0xff]   ;;  %v2689_v19 = vld [vmem:[%s2912_s13 + $0xa8] sm:$0xff]  }
  0x1f   : > { %2512 = vmatprep.subr.bf16.mxu0 %v2664_v5  ;;  %2588 = vmatprep.subr.bf16.mxu1 %v2664_v5  ;;  %v2674_v20 = vld [vmem:[%s2912_s13 + $0x30] sm:$0xff]   ;;  %v2675_v22 = vld [vmem:[%s2912_s13 + $0x38] sm:$0xff]   ;;  %v2676_v24 = vld [vmem:[%s2912_s13 + $0x40] sm:$0xff]  }
  0x20   : > { %v2690_v21 = vld [vmem:[%s2912_s13 + $0xb0] sm:$0xff]   ;;  %v2691_v23 = vld [vmem:[%s2912_s13 + $0xb8] sm:$0xff]   ;;  %v2692_v25 = vld [vmem:[%s2912_s13 + $0xc0] sm:$0xff]  }
  0x21   : > { %v2677_v26 = vld [vmem:[%s2912_s13 + $0x48] sm:$0xff]   ;;  %v2678_v28 = vld [vmem:[%s2912_s13 + $0x50] sm:$0xff]   ;;  %v2679_v30 = vld [vmem:[%s2912_s13 + $0x58] sm:$0xff]  }
  0x22   : > { %2513 = vmatpush3.bf16.msra.mxu0 %v2664_v5  ;;  %2596 = vmatpush3.bf16.msra.mxu1 %v2664_v5  ;;  %v2693_v27 = vld [vmem:[%s2912_s13 + $0xc8] sm:$0xff]   ;;  %v2694_v29 = vld [vmem:[%s2912_s13 + $0xd0] sm:$0xff]   ;;  %v2695_v31 = vld [vmem:[%s2912_s13 + $0xd8] sm:$0xff]  }
  0x23   : > { %2514 = vmatprep.subr.bf16.mxu0 %v2665_v6  ;;  %2589 = vmatprep.subr.bf16.mxu1 %v2665_v6  ;;  %v2680_v32 = vld [vmem:[%s2912_s13 + $0x60] sm:$0xff]   ;;  %v2681_v34 = vld [vmem:[%s2912_s13 + $0x68] sm:$0xff]   ;;  %v2682_v36 = vld [vmem:[%s2912_s13 + $0x70] sm:$0xff]  }
  0x24   : > { %v2696_v33 = vld [vmem:[%s2912_s13 + $0xe0] sm:$0xff]   ;;  %v2697_v35 = vld [vmem:[%s2912_s13 + $0xe8] sm:$0xff]   ;;  %v2698_v37 = vld [vmem:[%s2912_s13 + $0xf0] sm:$0xff]  }
  0x25   : > { %v2683_v38 = vld [vmem:[%s2912_s13 + $0x78] sm:$0xff]  }
  0x26   : > { %2515 = vmatpush3.bf16.msra.mxu0 %v2665_v6  ;;  %2597 = vmatpush3.bf16.msra.mxu1 %v2665_v6  ;;  %v2699_v39 = vld [vmem:[%s2912_s13 + $0xf8] sm:$0xff]   ;;  %s237_s13 = scalar_lea.vmem [#allocation3], %s3337_s5 }
  0x27   : > { %2516 = vmatprep.subr.bf16.mxu0 %v2666_v7  ;;  %2590 = vmatprep.subr.bf16.mxu1 %v2666_v7  ;;  %s1944_s14 = sshll.u32 %s237_s13, 4  ;;  %s3349_s14 = int_to_ptr.vmem [resolvable:$true] %s1944_s14 }
  0x28   : > { %s2700_s8 = scalar_lea.vmem %s3349_s14, 16  ;;  %p2707_p1 = scmp.lt.s32.totalorder %s3349_s14, %s2705_s11 }
  0x29   : > { %p2701_p12 = scmp.ne.s32.totalorder %s3349_s14, %s2700_s8 }
  0x2a   : > { %2517 = vmatpush3.bf16.msra.mxu0 %v2666_v7  ;;  %2598 = vmatpush3.bf16.msra.mxu1 %v2666_v7 }
  0x2b   : > { %2518 = vmatprep.subr.bf16.mxu0 %v2667_v8  ;;  %2591 = vmatprep.subr.bf16.mxu1 %v2667_v8  ;;  %p2702_p13 = pnand %p2701_p12, %p2879_p4 }
  0x2d   : > { %p2703_p0 = pneg %p2702_p13 }
  0x2e   : > { %2519 = vmatpush3.bf16.msra.mxu0 %v2667_v8  ;;  %2599 = vmatpush3.bf16.msra.mxu1 %v2667_v8 }
  0x31   : > { %2521 = vmatmul.mubr.bf16.vlgmr.msra.gmra.mrb[0].mxu0 %v2669_v10  ;;  %2553 = vmatmul.mubr.bf16.vlgmr.msra.gmra.mrb[0].mxu1 %v2685_v12 }
  0x32   : > { %2524 = vmatprep.mubr.bf16.mxu0 %v2670_v11  ;;  %2556 = vmatprep.mubr.bf16.mxu1 %v2686_v13 }
  0x39   : > { %2525 = vmatmul.mubr.bf16.gmra.mrb[4].mxu0 %v2671_v14  ;;  %2557 = vmatmul.mubr.bf16.gmra.mrb[4].mxu1 %v2687_v16 }
  0x3a   : > { %2528 = vmatprep.mubr.bf16.mxu0 %v2672_v15  ;;  %2560 = vmatprep.mubr.bf16.mxu1 %v2688_v17 }
  0x41   : > { %2529 = vmatmul.mubr.bf16.gmra.mrb[8].mxu0 %v2673_v18  ;;  %2561 = vmatmul.mubr.bf16.gmra.mrb[8].mxu1 %v2689_v19 }
  0x42   : > { %2532 = vmatprep.mubr.bf16.mxu0 %v2674_v20  ;;  %2564 = vmatprep.mubr.bf16.mxu1 %v2690_v21 }
  0x49   : > { %2533 = vmatmul.mubr.bf16.gmra.mrb[12].mxu0 %v2675_v22  ;;  %2565 = vmatmul.mubr.bf16.gmra.mrb[12].mxu1 %v2691_v23 }
  0x4a   : > { %2536 = vmatprep.mubr.bf16.mxu0 %v2676_v24  ;;  %2568 = vmatprep.mubr.bf16.mxu1 %v2692_v25 }
  0x51   : > { %2537 = vmatmul.mubr.bf16.gmra.mrb[16].mxu0 %v2677_v26  ;;  %2569 = vmatmul.mubr.bf16.gmra.mrb[16].mxu1 %v2693_v27 }
  0x52   : > { %2540 = vmatprep.mubr.bf16.mxu0 %v2678_v28  ;;  %2572 = vmatprep.mubr.bf16.mxu1 %v2694_v29 }
  0x59   : > { %2541 = vmatmul.mubr.bf16.gmra.mrb[20].mxu0 %v2679_v30  ;;  %2573 = vmatmul.mubr.bf16.gmra.mrb[20].mxu1 %v2695_v31 }
  0x5a   : > { %2544 = vmatprep.mubr.bf16.mxu0 %v2680_v32  ;;  %2576 = vmatprep.mubr.bf16.mxu1 %v2696_v33 }
  0x61   : > { %2545 = vmatmul.mubr.bf16.gmra.mrb[24].mxu0 %v2681_v34  ;;  %2577 = vmatmul.mubr.bf16.gmra.mrb[24].mxu1 %v2697_v35 }
  0x62   : > { %2548 = vmatprep.mubr.bf16.mxu0 %v2682_v36  ;;  %2580 = vmatprep.mubr.bf16.mxu1 %v2698_v37 }
  0x69   : > { %2549 = vmatmul.mubr.bf16.gmra.mrb[28].mxu0 %v2683_v38  ;;  %2581 = vmatmul.mubr.bf16.gmra.mrb[28].mxu1 %v2699_v39 }
 0x104   : > { %v2522_v40 = vpop.f32.mrb[0].mxu0  ;;  %v2554_v41 = vpop.f32.mrb[0].mxu1 }
 0x105   : > { %vm1204_vm0 = vcmp.gt.f32.partialorder %v2522_v40, 0.0  ;;  %v1268_v42 = vmul.f32 0.2, %v2522_v40  ;;  %v752_v43 = vpop.f32.mrb[1].mxu0  ;;  %v880_v44 = vpop.f32.mrb[1].mxu1  ;;  %vm1236_vm4 = vcmp.gt.f32.partialorder %v2554_v41, 0.0 }
 0x106   : > { %vm1202_vm1 = vcmp.gt.f32.partialorder %v752_v43, 0.0  ;;  %v1266_v45 = vmul.f32 0.2, %v752_v43  ;;  %v2523_v46 = vpop.f32.mrb[2].mxu0  ;;  %v2555_v50 = vpop.f32.mrb[2].mxu1  ;;  %vm1234_vm5 = vcmp.gt.f32.partialorder %v880_v44, 0.0 }
 0x107   : > { %v1332_v47 = vsel %vm1204_vm0, %v2522_v40, %v1268_v42  ;;  %vm1205_vm2 = vcmp.gt.f32.partialorder %v2523_v46, 0.0  ;;  %v1269_v48 = vmul.f32 0.2, %v2523_v46  ;;  %v755_v49 = vpop.f32.mrb[3].mxu0  ;;  %v1300_v53 = vmul.f32 0.2, %v2554_v41 }
 0x108   : > { %v1330_v51 = vsel %vm1202_vm1, %v752_v43, %v1266_v45  ;;  %vm1203_vm3 = vcmp.gt.f32.partialorder %v755_v49, 0.0  ;;  %v1267_v52 = vmul.f32 0.2, %v755_v49  ;;  %v883_v54 = vpop.f32.mrb[3].mxu1  ;;  %v1786_v56 = vmul.f32 %v1332_v47, %v1332_v47 }
 0x109   : > { %v1333_v55 = vsel %vm1205_vm2, %v2523_v46, %v1269_v48  ;;  %v1784_v57 = vmul.f32 %v1330_v51, %v1330_v51  ;;  %v1298_v63 = vmul.f32 0.2, %v880_v44  ;;  %v2969_v1 = vsel %vm1236_vm4, %v2554_v41, %v1300_v53 }
 0x10a   : > { %v2281_v58 = vpack.c.bf16 %v1333_v55, %v1332_v47  ;;  %v1331_v59 = vsel %vm1203_vm3, %v755_v49, %v1267_v52  ;;  %vm1237_vm6 = vcmp.gt.f32.partialorder %v2555_v50, 0.0  ;;  %v1301_v2 = vmul.f32 0.2, %v2555_v50 }
 0x10b   : > { %v2276_v60 = vpack.c.bf16 %v1331_v59, %v1330_v51  ;;  %v1714_v61 = vadd.f32 %v1331_v59, %v1330_v51  ;;  %v1785_v62 = vmul.f32 %v1331_v59, %v1331_v59  ;;  %vm1235_vm7 = vcmp.gt.f32.partialorder %v883_v54, 0.0 }
 0x10c   : > { %2433 = vst [vmem:[%s2966_s12 + $0x8] sm:$0xff] %v2281_v58   ;;  %v2526_v0 = vpop.f32.mrb[4].mxu0  ;;  %v2971_v3 = vpop.f32.mrb[4].mxu1  ;;  %v1787_v9 = vmul.f32 %v1333_v55, %v1333_v55  ;;  %v1299_v12 = vmul.f32 0.2, %v883_v54  ;;  %v2977_v16 = vsel %vm1237_vm6, %v2555_v50, %v1301_v2  ;;  %v2982_v20 = vsel %vm1234_vm5, %v880_v44, %v1298_v63 }
 0x10d   : > { %2277 = vst [vmem:[%s2966_s12] sm:$0xff] %v2276_v60   ;;  %v1715_v4 = vadd.f32 %v1714_v61, %v1332_v47  ;;  %v1848_v5 = vadd.f32 %v1785_v62, %v1784_v57  ;;  %vm1208_vm8 = vcmp.gt.f32.partialorder %v2526_v0, 0.0  ;;  %v1272_v6 = vmul.f32 0.2, %v2526_v0  ;;  %v768_v7 = vpop.f32.mrb[5].mxu0  ;;  %v2974_v8 = vpop.f32.mrb[5].mxu1 }
 0x10e   : > { %vm1206_vm9 = vcmp.gt.f32.partialorder %v768_v7, 0.0  ;;  %v1270_v10 = vmul.f32 0.2, %v768_v7  ;;  %v2527_v11 = vpop.f32.mrb[6].mxu0  ;;  %v2979_v17 = vpop.f32.mrb[6].mxu1  ;;  %v2361_v28 = vpack.c.bf16 %v2977_v16, %v2969_v1  ;;  %v2990_v29 = vsel %vm1235_vm7, %v883_v54, %v1299_v12 }
 0x10f   : > { %v1849_v13 = vadd.f32 %v1848_v5, %v1786_v56  ;;  %v1716_v14 = vadd.f32 %v1715_v4, %v1333_v55  ;;  %vm1209_vm10 = vcmp.gt.f32.partialorder %v2527_v11, 0.0  ;;  %v771_v15 = vpop.f32.mrb[7].mxu0  ;;  %v1273_v19 = vmul.f32 0.2, %v2527_v11  ;;  %v2984_v21 = vpop.f32.mrb[7].mxu1 }
 0x110   : > { %v1334_v18 = vsel %vm1206_vm9, %v768_v7, %v1270_v10  ;;  %vm1207_vm11 = vcmp.gt.f32.partialorder %v771_v15, 0.0  ;;  %v1271_v25 = vmul.f32 0.2, %v771_v15  ;;  %v1336_v26 = vsel %vm1208_vm8, %v2526_v0, %v1272_v6  ;;  %2449 = vst [vmem:[%s2966_s12 + $0x88] sm:$0xff] %v2361_v28  }
 0x111   : > { %v1717_v22 = vadd.f32 %v1716_v14, %v1334_v18  ;;  %v1788_v23 = vmul.f32 %v1334_v18, %v1334_v18  ;;  %v1850_v24 = vadd.f32 %v1849_v13, %v1787_v9  ;;  %v1337_v27 = vsel %vm1209_vm10, %v2527_v11, %v1273_v19 }
 0x112   : > { %v2291_v31 = vpack.c.bf16 %v1337_v27, %v1336_v26  ;;  %v1335_v32 = vsel %vm1207_vm11, %v771_v15, %v1271_v25  ;;  %v2356_v37 = vpack.c.bf16 %v2990_v29, %v2982_v20  ;;  %v1790_v39 = vmul.f32 %v1336_v26, %v1336_v26 }
 0x113   : > { %v1851_v30 = vadd.f32 %v1850_v24, %v1788_v23  ;;  %v2286_v33 = vpack.c.bf16 %v1335_v32, %v1334_v18  ;;  %v1718_v34 = vadd.f32 %v1717_v22, %v1335_v32  ;;  %v1789_v35 = vmul.f32 %v1335_v32, %v1335_v32 }
 0x114   : > { %v2530_v36 = vpop.f32.mrb[8].mxu0  ;;  %v2995_v38 = vpop.f32.mrb[8].mxu1  ;;  %2435 = vst [vmem:[%s2966_s12 + $0x18] sm:$0xff] %v2291_v31   ;;  %2448 = vst [vmem:[%s2966_s12 + $0x80] sm:$0xff] %v2356_v37   ;;  %v1791_v48 = vmul.f32 %v1337_v27, %v1337_v27  ;;  %v1304_v55 = vmul.f32 0.2, %v2971_v3 }
 0x115   : > { %vm1212_vm12 = vcmp.gt.f32.partialorder %v2530_v36, 0.0  ;;  %v1276_v40 = vmul.f32 0.2, %v2530_v36  ;;  %v784_v41 = vpop.f32.mrb[9].mxu0  ;;  %v2998_v42 = vpop.f32.mrb[9].mxu1  ;;  %2434 = vst [vmem:[%s2966_s12 + $0x10] sm:$0xff] %v2286_v33   ;;  %v1719_v43 = vadd.f32 %v1718_v34, %v1336_v26  ;;  %v1852_v44 = vadd.f32 %v1851_v30, %v1789_v35 }
 0x116   : > { %vm1210_vm13 = vcmp.gt.f32.partialorder %v784_v41, 0.0  ;;  %v1274_v45 = vmul.f32 0.2, %v784_v41  ;;  %v2531_v46 = vpop.f32.mrb[10].mxu0  ;;  %v3002_v47 = vpop.f32.mrb[10].mxu1  ;;  %vm1240_vm0 = vcmp.gt.f32.partialorder %v2971_v3, 0.0 }
 0x117   : > { %v1340_v49 = vsel %vm1212_vm12, %v2530_v36, %v1276_v40  ;;  %vm1213_vm14 = vcmp.gt.f32.partialorder %v2531_v46, 0.0  ;;  %v1277_v50 = vmul.f32 0.2, %v2531_v46  ;;  %v787_v51 = vpop.f32.mrb[11].mxu0  ;;  %v1853_v52 = vadd.f32 %v1852_v44, %v1790_v39  ;;  %v3005_v56 = vpop.f32.mrb[11].mxu1 }
 0x118   : > { %v1338_v53 = vsel %vm1210_vm13, %v784_v41, %v1274_v45  ;;  %v1720_v54 = vadd.f32 %v1719_v43, %v1337_v27  ;;  %vm1211_vm15 = vcmp.gt.f32.partialorder %v787_v51, 0.0  ;;  %v1275_v59 = vmul.f32 0.2, %v787_v51 }
 0x119   : > { %v1792_v57 = vmul.f32 %v1338_v53, %v1338_v53  ;;  %v1341_v58 = vsel %vm1213_vm14, %v2531_v46, %v1277_v50  ;;  %v1854_v61 = vadd.f32 %v1853_v52, %v1791_v48  ;;  %v1794_v63 = vmul.f32 %v1340_v49, %v1340_v49 }
 0x11a   : > { %v1721_v60 = vadd.f32 %v1720_v54, %v1338_v53  ;;  %v2301_v62 = vpack.c.bf16 %v1341_v58, %v1340_v49  ;;  %v1339_v0 = vsel %vm1211_vm15, %v787_v51, %v1275_v59  ;;  %v1795_v10 = vmul.f32 %v1341_v58, %v1341_v58 }
 0x11b   : > { %v1855_v2 = vadd.f32 %v1854_v61, %v1792_v57  ;;  %v2296_v4 = vpack.c.bf16 %v1339_v0, %v1338_v53  ;;  %v1793_v6 = vmul.f32 %v1339_v0, %v1339_v0  ;;  %v3012_v13 = vsel %vm1240_vm0, %v2971_v3, %v1304_v55 }
 0x11c   : > { %2437 = vst [vmem:[%s2966_s12 + $0x28] sm:$0xff] %v2301_v62   ;;  %v1722_v5 = vadd.f32 %v1721_v60, %v1339_v0  ;;  %v2534_v7 = vpop.f32.mrb[12].mxu0  ;;  %v3009_v9 = vpop.f32.mrb[12].mxu1  ;;  %vm1238_vm4 = vcmp.gt.f32.partialorder %v2974_v8, 0.0  ;;  %v1302_v31 = vmul.f32 0.2, %v2974_v8 }
 0x11d   : > { %vm1216_vm1 = vcmp.gt.f32.partialorder %v2534_v7, 0.0  ;;  %v1280_v11 = vmul.f32 0.2, %v2534_v7  ;;  %v800_v12 = vpop.f32.mrb[13].mxu0  ;;  %v3014_v14 = vpop.f32.mrb[13].mxu1  ;;  %2436 = vst [vmem:[%s2966_s12 + $0x20] sm:$0xff] %v2296_v4   ;;  %v1856_v18 = vadd.f32 %v1855_v2, %v1793_v6 }
 0x11e   : > { %v1723_v15 = vadd.f32 %v1722_v5, %v1340_v49  ;;  %vm1214_vm2 = vcmp.gt.f32.partialorder %v800_v12, 0.0  ;;  %v1278_v19 = vmul.f32 0.2, %v800_v12  ;;  %v2535_v22 = vpop.f32.mrb[14].mxu0  ;;  %v3017_v23 = vpop.f32.mrb[14].mxu1  ;;  %vm1241_vm6 = vcmp.gt.f32.partialorder %v2979_v17, 0.0 }
 0x11f   : > { %v1344_v24 = vsel %vm1216_vm1, %v2534_v7, %v1280_v11  ;;  %vm1217_vm3 = vcmp.gt.f32.partialorder %v2535_v22, 0.0  ;;  %v1281_v25 = vmul.f32 0.2, %v2535_v22  ;;  %v803_v26 = vpop.f32.mrb[15].mxu0  ;;  %v3020_v27 = vpop.f32.mrb[15].mxu1  ;;  %v1857_v3 = vadd.f32 %v1856_v18, %v1794_v63 }
 0x120   : > { %v1342_v28 = vsel %vm1214_vm2, %v800_v12, %v1278_v19  ;;  %v1724_v30 = vadd.f32 %v1723_v15, %v1341_v58  ;;  %vm1215_vm5 = vcmp.gt.f32.partialorder %v803_v26, 0.0  ;;  %v1279_v34 = vmul.f32 0.2, %v803_v26 }
 0x121   : > { %v1796_v32 = vmul.f32 %v1342_v28, %v1342_v28  ;;  %v1345_v33 = vsel %vm1217_vm3, %v2535_v22, %v1281_v25  ;;  %v1798_v35 = vmul.f32 %v1344_v24, %v1344_v24  ;;  %v1858_v37 = vadd.f32 %v1857_v3, %v1795_v10 }
 0x122   : > { %v1725_v36 = vadd.f32 %v1724_v30, %v1342_v28  ;;  %v2311_v39 = vpack.c.bf16 %v1345_v33, %v1344_v24  ;;  %v1799_v40 = vmul.f32 %v1345_v33, %v1345_v33  ;;  %v1343_v41 = vsel %vm1215_vm5, %v803_v26, %v1279_v34 }
 0x123   : > { %v1305_v43 = vmul.f32 0.2, %v2979_v17  ;;  %v1859_v44 = vadd.f32 %v1858_v37, %v1796_v32  ;;  %v2306_v45 = vpack.c.bf16 %v1343_v41, %v1342_v28  ;;  %v1797_v48 = vmul.f32 %v1343_v41, %v1343_v41 }
 0x124   : > { %2439 = vst [vmem:[%s2966_s12 + $0x38] sm:$0xff] %v2311_v39   ;;  %v1726_v46 = vadd.f32 %v1725_v36, %v1343_v41  ;;  %v2538_v49 = vpop.f32.mrb[16].mxu0  ;;  %v3026_v50 = vpop.f32.mrb[16].mxu1  ;;  %v1303_v54 = vmul.f32 0.2, %v2984_v21  ;;  %vm1239_vm10 = vcmp.gt.f32.partialorder %v2984_v21, 0.0  ;;  %v3047_v19 = vsel %vm1238_vm4, %v2974_v8, %v1302_v31 }
 0x125   : > { %vm1220_vm7 = vcmp.gt.f32.partialorder %v2538_v49, 0.0  ;;  %v1284_v51 = vmul.f32 0.2, %v2538_v49  ;;  %v816_v52 = vpop.f32.mrb[17].mxu0  ;;  %v3029_v53 = vsel %vm1241_vm6, %v2979_v17, %v1305_v43  ;;  %2438 = vst [vmem:[%s2966_s12 + $0x30] sm:$0xff] %v2306_v45   ;;  %v1860_v57 = vadd.f32 %v1859_v44, %v1797_v48  ;;  %v3033_v60 = vpop.f32.mrb[17].mxu1 }
 0x126   : > { %v1727_v55 = vadd.f32 %v1726_v46, %v1344_v24  ;;  %vm1218_vm8 = vcmp.gt.f32.partialorder %v816_v52, 0.0  ;;  %v1282_v58 = vmul.f32 0.2, %v816_v52  ;;  %v2539_v59 = vpop.f32.mrb[18].mxu0  ;;  %v2371_v63 = vpack.c.bf16 %v3029_v53, %v3012_v13  ;;  %v3038_v17 = vpop.f32.mrb[18].mxu1 }
 0x127   : > { %vm1221_vm9 = vcmp.gt.f32.partialorder %v2539_v59, 0.0  ;;  %v1285_v61 = vmul.f32 0.2, %v2539_v59  ;;  %v819_v62 = vpop.f32.mrb[19].mxu0  ;;  %v1861_v0 = vadd.f32 %v1860_v57, %v1798_v35  ;;  %v1348_v2 = vsel %vm1220_vm7, %v2538_v49, %v1284_v51  ;;  %v3041_v6 = vpop.f32.mrb[19].mxu1 }
 0x128   : > { %v1346_v4 = vsel %vm1218_vm8, %v816_v52, %v1282_v58  ;;  %v1728_v5 = vadd.f32 %v1727_v55, %v1345_v33  ;;  %vm1219_vm11 = vcmp.gt.f32.partialorder %v819_v62, 0.0  ;;  %v1283_v11 = vmul.f32 0.2, %v819_v62  ;;  %2451 = vst [vmem:[%s2966_s12 + $0x98] sm:$0xff] %v2371_v63  }
 0x129   : > { %v1800_v7 = vmul.f32 %v1346_v4, %v1346_v4  ;;  %v1349_v10 = vsel %vm1221_vm9, %v2539_v59, %v1285_v61  ;;  %v1862_v15 = vadd.f32 %v1861_v0, %v1799_v40  ;;  %v3052_v24 = vsel %vm1239_vm10, %v2984_v21, %v1303_v54 }
 0x12a   : > { %v1729_v12 = vadd.f32 %v1728_v5, %v1346_v4  ;;  %v2321_v18 = vpack.c.bf16 %v1349_v10, %v1348_v2  ;;  %v1347_v22 = vsel %vm1219_vm11, %v819_v62, %v1283_v11  ;;  %v1802_v33 = vmul.f32 %v1348_v2, %v1348_v2 }
 0x12b   : > { %v1863_v25 = vadd.f32 %v1862_v15, %v1800_v7  ;;  %v2316_v26 = vpack.c.bf16 %v1347_v22, %v1346_v4  ;;  %v1801_v28 = vmul.f32 %v1347_v22, %v1347_v22  ;;  %v2366_v31 = vpack.c.bf16 %v3052_v24, %v3047_v19 }
 0x12c   : > { %2441 = vst [vmem:[%s2966_s12 + $0x48] sm:$0xff] %v2321_v18   ;;  %v1730_v3 = vadd.f32 %v1729_v12, %v1347_v22  ;;  %v2542_v30 = vpop.f32.mrb[20].mxu0  ;;  %v3055_v32 = vpop.f32.mrb[20].mxu1  ;;  %v1803_v41 = vmul.f32 %v1349_v10, %v1349_v10  ;;  %v1308_v51 = vmul.f32 0.2, %v2995_v38  ;;  %vm1244_vm0 = vcmp.gt.f32.partialorder %v2995_v38, 0.0 }
 0x12d   : > { %vm1224_vm12 = vcmp.gt.f32.partialorder %v2542_v30, 0.0  ;;  %v1288_v34 = vmul.f32 0.2, %v2542_v30  ;;  %v832_v8 = vpop.f32.mrb[21].mxu0  ;;  %v3059_v35 = vpop.f32.mrb[21].mxu1  ;;  %2440 = vst [vmem:[%s2966_s12 + $0x40] sm:$0xff] %v2316_v26   ;;  %v1864_v36 = vadd.f32 %v1863_v25, %v1801_v28 }
 0x12e   : > { %v1731_v21 = vadd.f32 %v1730_v3, %v1348_v2  ;;  %vm1222_vm13 = vcmp.gt.f32.partialorder %v832_v8, 0.0  ;;  %v1286_v37 = vmul.f32 0.2, %v832_v8  ;;  %v2543_v39 = vpop.f32.mrb[22].mxu0  ;;  %v3062_v40 = vpop.f32.mrb[22].mxu1  ;;  %2450 = vst [vmem:[%s2966_s12 + $0x90] sm:$0xff] %v2366_v31   ;;  %v3073_v18 = vsel %vm1244_vm0, %v2995_v38, %v1308_v51 }
 0x12f   : > { %v1352_v43 = vsel %vm1224_vm12, %v2542_v30, %v1288_v34  ;;  %vm1225_vm14 = vcmp.gt.f32.partialorder %v2543_v39, 0.0  ;;  %v1289_v44 = vmul.f32 0.2, %v2543_v39  ;;  %v835_v45 = vpop.f32.mrb[23].mxu0  ;;  %v1865_v46 = vadd.f32 %v1864_v36, %v1802_v33  ;;  %v3066_v52 = vpop.f32.mrb[23].mxu1 }
 0x130   : > { %v1350_v48 = vsel %vm1222_vm13, %v832_v8, %v1286_v37  ;;  %v1732_v49 = vadd.f32 %v1731_v21, %v1349_v10  ;;  %vm1223_vm15 = vcmp.gt.f32.partialorder %v835_v45, 0.0  ;;  %v1287_v57 = vmul.f32 0.2, %v835_v45 }
 0x131   : > { %v1804_v54 = vmul.f32 %v1350_v48, %v1350_v48  ;;  %v1353_v55 = vsel %vm1225_vm14, %v2543_v39, %v1289_v44  ;;  %v1866_v59 = vadd.f32 %v1865_v46, %v1803_v41  ;;  %v1806_v62 = vmul.f32 %v1352_v43, %v1352_v43 }
 0x132   : > { %v1733_v58 = vadd.f32 %v1732_v49, %v1350_v48  ;;  %v2331_v61 = vpack.c.bf16 %v1353_v55, %v1352_v43  ;;  %v1351_v63 = vsel %vm1223_vm15, %v835_v45, %v1287_v57  ;;  %v1807_v11 = vmul.f32 %v1353_v55, %v1353_v55 }
 0x133   : > { %v1867_v0 = vadd.f32 %v1866_v59, %v1804_v54  ;;  %v2326_v2 = vpack.c.bf16 %v1351_v63, %v1350_v48  ;;  %v1805_v5 = vmul.f32 %v1351_v63, %v1351_v63  ;;  %vm1242_vm4 = vcmp.gt.f32.partialorder %v2998_v42, 0.0 }
 0x134   : > { %2443 = vst [vmem:[%s2966_s12 + $0x58] sm:$0xff] %v2331_v61   ;;  %v1734_v4 = vadd.f32 %v1733_v58, %v1351_v63  ;;  %v2546_v7 = vpop.f32.mrb[24].mxu0  ;;  %v3070_v10 = vpop.f32.mrb[24].mxu1  ;;  %v1306_v37 = vmul.f32 0.2, %v2998_v42  ;;  %vm1245_vm6 = vcmp.gt.f32.partialorder %v3002_v47, 0.0 }
 0x135   : > { %vm1228_vm1 = vcmp.gt.f32.partialorder %v2546_v7, 0.0  ;;  %v1292_v12 = vmul.f32 0.2, %v2546_v7  ;;  %v848_v15 = vpop.f32.mrb[25].mxu0  ;;  %v3075_v22 = vpop.f32.mrb[25].mxu1  ;;  %2442 = vst [vmem:[%s2966_s12 + $0x50] sm:$0xff] %v2326_v2   ;;  %v1868_v26 = vadd.f32 %v1867_v0, %v1805_v5 }
 0x136   : > { %v1735_v25 = vadd.f32 %v1734_v4, %v1352_v43  ;;  %vm1226_vm2 = vcmp.gt.f32.partialorder %v848_v15, 0.0  ;;  %v1290_v3 = vmul.f32 0.2, %v848_v15  ;;  %v2547_v28 = vpop.f32.mrb[26].mxu0  ;;  %v3078_v30 = vpop.f32.mrb[26].mxu1  ;;  %vm1243_vm10 = vcmp.gt.f32.partialorder %v3005_v56, 0.0 }
 0x137   : > { %v1356_v33 = vsel %vm1228_vm1, %v2546_v7, %v1292_v12  ;;  %vm1229_vm3 = vcmp.gt.f32.partialorder %v2547_v28, 0.0  ;;  %v1293_v34 = vmul.f32 0.2, %v2547_v28  ;;  %v851_v8 = vpop.f32.mrb[27].mxu0  ;;  %v3081_v31 = vpop.f32.mrb[27].mxu1  ;;  %v1869_v38 = vadd.f32 %v1868_v26, %v1806_v62 }
 0x138   : > { %v1354_v21 = vsel %vm1226_vm2, %v848_v15, %v1290_v3  ;;  %v1736_v36 = vadd.f32 %v1735_v25, %v1353_v55  ;;  %vm1227_vm5 = vcmp.gt.f32.partialorder %v851_v8, 0.0  ;;  %v1291_v43 = vmul.f32 0.2, %v851_v8 }
 0x139   : > { %v1808_v39 = vmul.f32 %v1354_v21, %v1354_v21  ;;  %v1357_v41 = vsel %vm1229_vm3, %v2547_v28, %v1293_v34  ;;  %v1810_v44 = vmul.f32 %v1356_v33, %v1356_v33  ;;  %v1870_v46 = vadd.f32 %v1869_v38, %v1807_v11 }
 0x13a   : > { %v1737_v45 = vadd.f32 %v1736_v36, %v1354_v21  ;;  %v2341_v48 = vpack.c.bf16 %v1357_v41, %v1356_v33  ;;  %v1811_v49 = vmul.f32 %v1357_v41, %v1357_v41  ;;  %v1355_v51 = vsel %vm1227_vm5, %v851_v8, %v1291_v43 }
 0x13b   : > { %v1309_v54 = vmul.f32 0.2, %v3002_v47  ;;  %v1871_v57 = vadd.f32 %v1870_v46, %v1808_v39  ;;  %v2336_v55 = vpack.c.bf16 %v1355_v51, %v1354_v21  ;;  %v1809_v59 = vmul.f32 %v1355_v51, %v1355_v51 }
 0x13c   : > { %2445 = vst [vmem:[%s2966_s12 + $0x68] sm:$0xff] %v2341_v48   ;;  %v1738_v58 = vadd.f32 %v1737_v45, %v1355_v51  ;;  %v2550_v61 = vpop.f32.mrb[28].mxu0  ;;  %v3087_v62 = vpop.f32.mrb[28].mxu1  ;;  %v1307_v4 = vmul.f32 0.2, %v3005_v56  ;;  %vm1248_vm12 = vcmp.gt.f32.partialorder %v3009_v9, 0.0 }
 0x13d   : > { %vm1232_vm7 = vcmp.gt.f32.partialorder %v2550_v61, 0.0  ;;  %v1296_v63 = vmul.f32 0.2, %v2550_v61  ;;  %v864_v0 = vpop.f32.mrb[29].mxu0  ;;  %v3090_v2 = vsel %vm1245_vm6, %v3002_v47, %v1309_v54  ;;  %2444 = vst [vmem:[%s2966_s12 + $0x60] sm:$0xff] %v2336_v55   ;;  %v1872_v7 = vadd.f32 %v1871_v57, %v1809_v59  ;;  %v3094_v15 = vpop.f32.mrb[29].mxu1 }
 0x13e   : > { %v1739_v5 = vadd.f32 %v1738_v58, %v1356_v33  ;;  %vm1230_vm8 = vcmp.gt.f32.partialorder %v864_v0, 0.0  ;;  %v1294_v11 = vmul.f32 0.2, %v864_v0  ;;  %v2551_v12 = vpop.f32.mrb[30].mxu0  ;;  %v2381_v3 = vpack.c.bf16 %v3090_v2, %v3073_v18  ;;  %v3099_v47 = vpop.f32.mrb[30].mxu1 }
 0x13f   : > { %vm1233_vm9 = vcmp.gt.f32.partialorder %v2551_v12, 0.0  ;;  %v1297_v25 = vmul.f32 0.2, %v2551_v12  ;;  %v867_v26 = vpop.f32.mrb[31].mxu0  ;;  %v1873_v28 = vadd.f32 %v1872_v7, %v1810_v44  ;;  %v1360_v33 = vsel %vm1232_vm7, %v2550_v61, %v1296_v63  ;;  %v3102_v38 = vpop.f32.mrb[31].mxu1 }
 0x140   : > { %v1358_v34 = vsel %vm1230_vm8, %v864_v0, %v1294_v11  ;;  %v1740_v8 = vadd.f32 %v1739_v5, %v1357_v41  ;;  %vm1231_vm11 = vcmp.gt.f32.partialorder %v867_v26, 0.0  ;;  %v1295_v39 = vmul.f32 0.2, %v867_v26  ;;  %2453 = vst [vmem:[%s2966_s12 + $0xa8] sm:$0xff] %v2381_v3  }
 0x141   : > { %v1812_v21 = vmul.f32 %v1358_v34, %v1358_v34  ;;  %v1361_v36 = vsel %vm1233_vm9, %v2551_v12, %v1297_v25  ;;  %v1874_v45 = vadd.f32 %v1873_v28, %v1811_v49  ;;  %v3108_v44 = vsel %vm1242_vm4, %v2998_v42, %v1306_v37 }
 0x142   : > { %v1741_v43 = vadd.f32 %v1740_v8, %v1358_v34  ;;  %v2351_v46 = vpack.c.bf16 %v1361_v36, %v1360_v33  ;;  %v1359_v48 = vsel %vm1231_vm11, %v867_v26, %v1295_v39  ;;  %v3113_v41 = vsel %vm1243_vm10, %v3005_v56, %v1307_v4 }
 0x143   : > { %v1875_v51 = vadd.f32 %v1874_v45, %v1812_v21  ;;  %v2346_v54 = vpack.c.bf16 %v1359_v48, %v1358_v34  ;;  %v1813_v49 = vmul.f32 %v1359_v48, %v1359_v48  ;;  %v1814_v55 = vmul.f32 %v1360_v33, %v1360_v33 }
 0x144   : > { %2447 = vst [vmem:[%s2966_s12 + $0x78] sm:$0xff] %v2351_v46   ;;  %v1742_v57 = vadd.f32 %v1741_v43, %v1359_v48  ;;  %v2376_v58 = vpack.c.bf16 %v3113_v41, %v3108_v44  ;;  %v1312_v42 = vmul.f32 0.2, %v3009_v9  ;;  %vm1246_vm13 = vcmp.gt.f32.partialorder %v3014_v14, 0.0 }
 0x145   : > { %2446 = vst [vmem:[%s2966_s12 + $0x70] sm:$0xff] %v2346_v54   ;;  %v1876_v56 = vadd.f32 %v1875_v51, %v1813_v49  ;;  %v1310_v59 = vmul.f32 0.2, %v3014_v14  ;;  %vm1249_vm14 = vcmp.gt.f32.partialorder %v3017_v23, 0.0  ;;  %v1313_v63 = vmul.f32 0.2, %v3017_v23 }
 0x146   : > { %v1743_v37 = vadd.f32 %v1742_v57, %v1360_v33  ;;  %2452 = vst [vmem:[%s2966_s12 + $0xa0] sm:$0xff] %v2376_v58   ;;  %v3128_v61 = vsel %vm1248_vm12, %v3009_v9, %v1312_v42  ;;  %vm1247_vm15 = vcmp.gt.f32.partialorder %v3020_v27, 0.0  ;;  %v1311_v0 = vmul.f32 0.2, %v3020_v27 }
 0x147   : > { %v1815_v4 = vmul.f32 %v1361_v36, %v1361_v36  ;;  %v1877_v5 = vadd.f32 %v1876_v56, %v1814_v55  ;;  %v3134_v11 = vsel %vm1246_vm13, %v3014_v14, %v1310_v59  ;;  %v1816_v12 = vmul.f32 %v2982_v20, %v2982_v20 }
 0x148   : > { %v1744_v7 = vadd.f32 %v1743_v37, %v1361_v36  ;;  %v3139_v9 = vsel %vm1249_vm14, %v3017_v23, %v1313_v63  ;;  %v3142_v25 = vsel %vm1247_vm15, %v3020_v27, %v1311_v0  ;;  %vm1252_vm0 = vcmp.gt.f32.partialorder %v3026_v50, 0.0 }
 0x149   : > { %v1878_v3 = vadd.f32 %v1877_v5, %v1815_v4  ;;  %v2391_v28 = vpack.c.bf16 %v3139_v9, %v3128_v61  ;;  %v1817_v14 = vmul.f32 %v2990_v29, %v2990_v29  ;;  %v2386_v33 = vpack.c.bf16 %v3142_v25, %v3134_v11 }
 0x14a   : > { %v1745_v26 = vadd.f32 %v1744_v7, %v2982_v20  ;;  %v1316_v23 = vmul.f32 0.2, %v3026_v50  ;;  %vm1250_vm1 = vcmp.gt.f32.partialorder %v3033_v60, 0.0  ;;  %v1314_v20 = vmul.f32 0.2, %v3033_v60 }
 0x14b   : > { %v1879_v27 = vadd.f32 %v1878_v3, %v1816_v12  ;;  %2455 = vst [vmem:[%s2966_s12 + $0xb8] sm:$0xff] %v2391_v28   ;;  %vm1253_vm2 = vcmp.gt.f32.partialorder %v3038_v17, 0.0  ;;  %2454 = vst [vmem:[%s2966_s12 + $0xb0] sm:$0xff] %v2386_v33   ;;  %v1317_v21 = vmul.f32 0.2, %v3038_v17  ;;  %vm1251_vm3 = vcmp.gt.f32.partialorder %v3041_v6, 0.0 }
 0x14c   : > { %v1746_v34 = vadd.f32 %v1745_v26, %v2990_v29  ;;  %v3160_v8 = vsel %vm1252_vm0, %v3026_v50, %v1316_v23  ;;  %v1315_v36 = vmul.f32 0.2, %v3041_v6  ;;  %v1818_v39 = vmul.f32 %v2969_v1, %v2969_v1 }
 0x14d   : > { %v1880_v43 = vadd.f32 %v1879_v27, %v1817_v14  ;;  %v3169_v45 = vsel %vm1250_vm1, %v3033_v60, %v1314_v20  ;;  %v1819_v50 = vmul.f32 %v2977_v16, %v2977_v16  ;;  %v3174_v46 = vsel %vm1253_vm2, %v3038_v17, %v1317_v21 }
 0x14e   : > { %v1747_v29 = vadd.f32 %v1746_v34, %v2969_v1  ;;  %v3177_v48 = vsel %vm1251_vm3, %v3041_v6, %v1315_v36  ;;  %v2401_v1 = vpack.c.bf16 %v3174_v46, %v3160_v8  ;;  %vm1256_vm4 = vcmp.gt.f32.partialorder %v3055_v32, 0.0 }
 0x14f   : > { %v1881_v51 = vadd.f32 %v1880_v43, %v1818_v39  ;;  %v1820_v60 = vmul.f32 %v3047_v19, %v3047_v19  ;;  %v2396_v57 = vpack.c.bf16 %v3177_v48, %v3169_v45  ;;  %v1320_v17 = vmul.f32 0.2, %v3055_v32 }
 0x150   : > { %v1748_v54 = vadd.f32 %v1747_v29, %v2977_v16  ;;  %vm1254_vm5 = vcmp.gt.f32.partialorder %v3059_v35, 0.0  ;;  %2457 = vst [vmem:[%s2966_s12 + $0xc8] sm:$0xff] %v2401_v1   ;;  %v1318_v16 = vmul.f32 0.2, %v3059_v35  ;;  %vm1257_vm6 = vcmp.gt.f32.partialorder %v3062_v40, 0.0 }
 0x151   : > { %v1882_v49 = vadd.f32 %v1881_v51, %v1819_v50  ;;  %2456 = vst [vmem:[%s2966_s12 + $0xc0] sm:$0xff] %v2396_v57   ;;  %v3195_v55 = vsel %vm1256_vm4, %v3055_v32, %v1320_v17  ;;  %v1321_v58 = vmul.f32 0.2, %v3062_v40  ;;  %vm1255_vm7 = vcmp.gt.f32.partialorder %v3066_v52, 0.0 }
 0x152   : > { %v1749_v6 = vadd.f32 %v1748_v54, %v3047_v19  ;;  %v1319_v42 = vmul.f32 0.2, %v3066_v52  ;;  %v1821_v19 = vmul.f32 %v3052_v24, %v3052_v24  ;;  %v3204_v59 = vsel %vm1254_vm5, %v3059_v35, %v1318_v16 }
 0x153   : > { %v1883_v37 = vadd.f32 %v1882_v49, %v1820_v60  ;;  %v1822_v32 = vmul.f32 %v3012_v13, %v3012_v13  ;;  %v3209_v63 = vsel %vm1257_vm6, %v3062_v40, %v1321_v58  ;;  %vm1260_vm8 = vcmp.gt.f32.partialorder %v3070_v10, 0.0 }
 0x154   : > { %v1750_v56 = vadd.f32 %v1749_v6, %v3052_v24  ;;  %v3212_v0 = vsel %vm1255_vm7, %v3066_v52, %v1319_v42  ;;  %v2411_v7 = vpack.c.bf16 %v3209_v63, %v3195_v55  ;;  %v1823_v24 = vmul.f32 %v3029_v53, %v3029_v53 }
 0x155   : > { %v1884_v5 = vadd.f32 %v1883_v37, %v1821_v19  ;;  %v2406_v35 = vpack.c.bf16 %v3212_v0, %v3204_v59  ;;  %v1324_v40 = vmul.f32 0.2, %v3070_v10  ;;  %vm1258_vm9 = vcmp.gt.f32.partialorder %v3075_v22, 0.0 }
 0x156   : > { %v1751_v4 = vadd.f32 %v1750_v56, %v3012_v13  ;;  %2459 = vst [vmem:[%s2966_s12 + $0xd8] sm:$0xff] %v2411_v7   ;;  %v1322_v13 = vmul.f32 0.2, %v3075_v22  ;;  %vm1261_vm10 = vcmp.gt.f32.partialorder %v3078_v30, 0.0  ;;  %v1325_v3 = vmul.f32 0.2, %v3078_v30 }
 0x157   : > { %v1885_v52 = vadd.f32 %v1884_v5, %v1822_v32  ;;  %2458 = vst [vmem:[%s2966_s12 + $0xd0] sm:$0xff] %v2406_v35   ;;  %v3230_v26 = vsel %vm1260_vm8, %v3070_v10, %v1324_v40  ;;  %vm1259_vm11 = vcmp.gt.f32.partialorder %v3081_v31, 0.0  ;;  %v1323_v28 = vmul.f32 0.2, %v3081_v31 }
 0x158   : > { %v1752_v12 = vadd.f32 %v1751_v4, %v3029_v53  ;;  %v1824_v53 = vmul.f32 %v3108_v44, %v3108_v44  ;;  %v3239_v23 = vsel %vm1258_vm9, %v3075_v22, %v1322_v13  ;;  %v1825_v10 = vmul.f32 %v3113_v41, %v3113_v41 }
 0x159   : > { %v1886_v33 = vadd.f32 %v1885_v52, %v1823_v24  ;;  %v3244_v27 = vsel %vm1261_vm10, %v3078_v30, %v1325_v3  ;;  %v3247_v34 = vsel %vm1259_vm11, %v3081_v31, %v1323_v28  ;;  %vm1264_vm12 = vcmp.gt.f32.partialorder %v3087_v62, 0.0 }
 0x15a   : > { %v1753_v14 = vadd.f32 %v1752_v12, %v3108_v44  ;;  %v2421_v44 = vpack.c.bf16 %v3244_v27, %v3230_v26  ;;  %v1826_v22 = vmul.f32 %v3073_v18, %v3073_v18  ;;  %v2416_v36 = vpack.c.bf16 %v3247_v34, %v3239_v23 }
 0x15b   : > { %v1887_v20 = vadd.f32 %v1886_v33, %v1824_v53  ;;  %v1328_v30 = vmul.f32 0.2, %v3087_v62  ;;  %vm1262_vm13 = vcmp.gt.f32.partialorder %v3094_v15, 0.0  ;;  %vm1265_vm14 = vcmp.gt.f32.partialorder %v3099_v47, 0.0 }
 0x15c   : > { %v1754_v21 = vadd.f32 %v1753_v14, %v3113_v41  ;;  %2461 = vst [vmem:[%s2966_s12 + $0xe8] sm:$0xff] %v2421_v44   ;;  %v1326_v41 = vmul.f32 0.2, %v3094_v15  ;;  %2460 = vst [vmem:[%s2966_s12 + $0xe0] sm:$0xff] %v2416_v36   ;;  %v1329_v43 = vmul.f32 0.2, %v3099_v47  ;;  %v1828_v17 = vmul.f32 %v3134_v11, %v3134_v11 }
 0x15d   : > { %v1888_v39 = vadd.f32 %v1887_v20, %v1825_v10  ;;  %v3265_v29 = vsel %vm1264_vm12, %v3087_v62, %v1328_v30  ;;  %vm1263_vm15 = vcmp.gt.f32.partialorder %v3102_v38, 0.0  ;;  %v1327_v50 = vmul.f32 0.2, %v3102_v38 }
 0x15e   : > { %v1755_v31 = vadd.f32 %v1754_v21, %v3073_v18  ;;  %v1827_v18 = vmul.f32 %v3090_v2, %v3090_v2  ;;  %v1390_v1 = vsel %vm1262_vm13, %v3094_v15, %v1326_v41  ;;  %v3275_v60 = vsel %vm1265_vm14, %v3099_v47, %v1329_v43 }
 0x15f   : > { %v1889_v51 = vadd.f32 %v1888_v39, %v1826_v22  ;;  %v1391_v62 = vsel %vm1263_vm15, %v3102_v38, %v1327_v50  ;;  %v2431_v49 = vpack.c.bf16 %v3275_v60, %v3265_v29  ;;  %v1829_v15 = vmul.f32 %v3142_v25, %v3142_v25 }
 0x160   : > { %v1756_v54 = vadd.f32 %v1755_v31, %v3090_v2  ;;  %v2426_v16 = vpack.c.bf16 %v1391_v62, %v1390_v1  ;;  %v1830_v47 = vmul.f32 %v3128_v61, %v3128_v61  ;;  %v1832_v32 = vmul.f32 %v3169_v45, %v3169_v45 }
 0x161   : > { %v1890_v6 = vadd.f32 %v1889_v51, %v1827_v18  ;;  %2463 = vst [vmem:[%s2966_s12 + $0xf8] sm:$0xff] %v2431_v49   ;;  %v1833_v7 = vmul.f32 %v3177_v48, %v3177_v48  ;;  %v1836_v12 = vmul.f32 %v3204_v59, %v3204_v59  ;;  %v1837_v28 = vmul.f32 %v3212_v0, %v3212_v0 }
 0x162   : > { %v1757_v57 = vadd.f32 %v1756_v54, %v3134_v11  ;;  %2462 = vst [vmem:[%s2966_s12 + $0xf0] sm:$0xff] %v2426_v16   ;;  %v1831_v11 = vmul.f32 %v3139_v9, %v3139_v9  ;;  %v1840_v20 = vmul.f32 %v3239_v23, %v3239_v23  ;;  %v1841_v22 = vmul.f32 %v3247_v34, %v3247_v34  ;;  %s2706_s12 = scalar_lea.vmem %s2705_s11, 32 }
 0x163   : > { %v1891_v58 = vadd.f32 %v1890_v6, %v1828_v17  ;;  %v1844_v41 = vmul.f32 %v1390_v1, %v1390_v1  ;;  %v1845_v51 = vmul.f32 %v1391_v62, %v1391_v62  ;;  %p2708_p2 = scmp.lt.s32.totalorder %s2706_s12, %s2700_s8 }
 0x164   : > { %v1758_v2 = vadd.f32 %v1757_v57, %v3142_v25  ;;  %v1847_v57 = vmul.f32 %v3275_v60, %v3275_v60 }
 0x165   : > { %v1892_v42 = vadd.f32 %v1891_v58, %v1829_v15  ;;  %p2709_p3 = por %p2708_p2, %p2707_p1 }
 0x166   : > { %v1759_v38 = vadd.f32 %v1758_v2, %v3128_v61  ;;  %v1834_v61 = vmul.f32 %v3160_v8, %v3160_v8 }
 0x167   : > { %v1893_v37 = vadd.f32 %v1892_v42, %v1830_v47  ;;  %p2710_p5 = pnand %p2709_p3, %p2703_p0 }
 0x168   : > { %v1760_v56 = vadd.f32 %v1759_v38, %v3139_v9  ;;  %v1835_v9 = vmul.f32 %v3174_v46, %v3174_v46 }
 0x169   : > { %v1894_v25 = vadd.f32 %v1893_v37, %v1831_v11 }
 0x16a   : > { %v1761_v19 = vadd.f32 %v1760_v56, %v3169_v45 }
 0x16b   : > { %v1895_v4 = vadd.f32 %v1894_v25, %v1832_v32 }
 0x16c   : > { %v1762_v5 = vadd.f32 %v1761_v19, %v3177_v48 }
 0x16d   : > { %v1896_v35 = vadd.f32 %v1895_v4, %v1833_v7 }
 0x16e   : > { %v1763_v24 = vadd.f32 %v1762_v5, %v3160_v8  ;;  %v1838_v8 = vmul.f32 %v3195_v55, %v3195_v55 }
 0x16f   : > { %v1897_v40 = vadd.f32 %v1896_v35, %v1834_v61 }
 0x170   : > { %v1764_v52 = vadd.f32 %v1763_v24, %v3174_v46  ;;  %v1839_v46 = vmul.f32 %v3209_v63, %v3209_v63 }
 0x171   : > { %v1898_v13 = vadd.f32 %v1897_v40, %v1835_v9 }
 0x172   : > { %v1765_v45 = vadd.f32 %v1764_v52, %v3204_v59 }
 0x173   : > { %v1899_v3 = vadd.f32 %v1898_v13, %v1836_v12 }
 0x174   : > { %v1766_v48 = vadd.f32 %v1765_v45, %v3212_v0 }
 0x175   : > { %v1900_v53 = vadd.f32 %v1899_v3, %v1837_v28 }
 0x176   : > { %v1767_v14 = vadd.f32 %v1766_v48, %v3195_v55  ;;  %v1842_v55 = vmul.f32 %v3230_v26, %v3230_v26 }
 0x177   : > { %v1901_v33 = vadd.f32 %v1900_v53, %v1838_v8 }
 0x178   : > { %v1768_v10 = vadd.f32 %v1767_v14, %v3209_v63  ;;  %v1843_v63 = vmul.f32 %v3244_v27, %v3244_v27 }
 0x179   : > { %v1902_v21 = vadd.f32 %v1901_v33, %v1839_v46 }
 0x17a   : > { %v1769_v59 = vadd.f32 %v1768_v10, %v3239_v23 }
 0x17b   : > { %v1903_v44 = vadd.f32 %v1902_v21, %v1840_v20 }
 0x17c   : > { %v1770_v0 = vadd.f32 %v1769_v59, %v3247_v34  ;;  %v1846_v34 = vmul.f32 %v3265_v29, %v3265_v29 }
 0x17d   : > { %v1904_v30 = vadd.f32 %v1903_v44, %v1841_v22 }
 0x17e   : > { %v1771_v36 = vadd.f32 %v1770_v0, %v3230_v26 }
 0x17f   : > { %v1905_v31 = vadd.f32 %v1904_v30, %v1842_v55 }
 0x180   : > { %v1772_v23 = vadd.f32 %v1771_v36, %v3244_v27 }
 0x181   : > { %v1906_v43 = vadd.f32 %v1905_v31, %v1843_v63 }
 0x182   : > { %v1773_v39 = vadd.f32 %v1772_v23, %v1390_v1 }
 0x183   : > { %v1907_v50 = vadd.f32 %v1906_v43, %v1844_v41 }
 0x184   : > { %v1774_v18 = vadd.f32 %v1773_v39, %v1391_v62 }
 0x185   : > { %v1908_v54 = vadd.f32 %v1907_v50, %v1845_v51 }
 0x186   : > { %v1775_v26 = vadd.f32 %v1774_v18, %v3265_v29 }
 0x187   : > { %v1909_v6 = vadd.f32 %v1908_v54, %v1846_v34 }
 0x188   : > { %v1776_v17 = vadd.f32 %v1775_v26, %v3275_v60 }
 0x189   : > { %v1910_v49 = vadd.f32 %v1909_v6, %v1847_v57 }
 0x18a   : > { %v1777_v27 = vrot.slane %v1776_v17, 4 }
 0x18b   : > { %v1911_v62 = vrot.slane %v1910_v49, 4 }
 0x18c   : > { %v1778_v1 = vadd.f32 %v1777_v27, %v1776_v17 }
 0x18d   : > { %v1912_v58 = vadd.f32 %v1911_v62, %v1910_v49 }
 0x18e   : > { %v1779_v16 = vrot.slane %v1778_v1, 2 }
 0x18f   : > { %v1913_v29 = vrot.slane %v1912_v58, 2 }
 0x190   : > { %v1780_v2 = vadd.f32 %v1779_v16, %v1778_v1 }
 0x191   : > { %v1914_v15 = vadd.f32 %v1913_v29, %v1912_v58 }
 0x192   : > { %v1781_v60 = vrot.slane %v1780_v2, 1 }
 0x193   : > { %v1915_v38 = vrot.slane %v1914_v15, 1 }
 0x194   : > { %v1782_v47 = vadd.f32 %v1781_v60, %v1780_v2 }
 0x195   : > { %v1916_v42 = vadd.f32 %v1915_v38, %v1914_v15 }
 0x196   : > { %1783 = vst [vmem:[%s237_s13] sm:$0x1] %v1782_v47 }
 0x197   : > { %2713 = shalt.err (!%p2710_p5)
}
 0x198   : > { %s2714_s10 = scalar_lea.hbm %s3347_s29, 16  ;;  %s2718_s26 = scalar_lea.hbm %s3429_s3, 64 }
 0x199   : > { %p2715_p6 = scmp.ne.s32.totalorder %s3347_s29, %s2714_s10  ;;  %p2719_p10 = scmp.lt.u32.totalorder %s3347_s29, %s3429_s3 }
 0x19a   : > { %p2720_p11 = scmp.lt.u32.totalorder %s2718_s26, %s2714_s10  ;;  %p2722_p13 = scmp.lt.u32.totalorder %s2714_s10, %s3347_s29 }
 0x19b   : > { %p2716_p7 = pnand %p2715_p6, %p2879_p4 }
 0x19c   : > { %p2721_p12 = por %p2720_p11, %p2719_p10 }
 0x19d   : > { %p2717_p9 = pneg %p2716_p7 }
 0x19e   : > { %p2723_p0 = por %p2722_p13, %p2721_p12 }
 0x1a0   : > { %p2724_p1 = pnand %p2723_p0, %p2717_p9 }
 0x1a2   : > { %2727 = shalt.err (!%p2724_p1)
}
 0x1a3   : > { %2600 = dma.vmem_to_hbm [thread:$0]  (%p2879_p4), %s3349_s14, 16, %s3347_s29, %s1924_s7   ;;  %1917 = vst [vmem:[%s243_s21] sm:$0x1] %v1916_v42 }
 0x1a4   : > { %s1928_s8 = scalar_lea.sflag [#allocation6], %s3337_s5  ;;  %s2728_s9 = scalar_lea.vmem %s3356_s22, 16 }
 0x1a5   : > { %p2729_p2 = scmp.ne.s32.totalorder %s3356_s22, %s2728_s9  ;;  %s2813_s11 = smov [#allocation5]  }
 0x1a6   : > { %s2732_s12 = sshll.u32 %s2813_s11, 4  ;;  %s2733_s12 = int_to_ptr.vmem [resolvable:$false] %s2732_s12 }
 0x1a7   : > { %p2730_p3 = pnand %p2729_p2, %p2879_p4  ;;  %s2734_s10 = scalar_lea.vmem %s2733_s12, 32 }
 0x1a8   : > { %p2735_p6 = scmp.lt.s32.totalorder %s3356_s22, %s2733_s12  ;;  %p2736_p7 = scmp.lt.s32.totalorder %s2734_s10, %s2728_s9 }
 0x1a9   : > { %p2731_p5 = pneg %p2730_p3 }
 0x1aa   : > { %p2737_p9 = por %p2736_p7, %p2735_p6 }
 0x1ac   : > { %p2738_p10 = pnand %p2737_p9, %p2731_p5 }
 0x1ae   : > { %2741 = shalt.err (!%p2738_p10)
}
 0x1af   : > { %s2742_s5 = scalar_lea.hbm %s3354_s6, 16  ;;  %s2746_s29 = scalar_lea.hbm %s3430_s4, 64 }
 0x1b0   : > { %p2743_p11 = scmp.ne.s32.totalorder %s3354_s6, %s2742_s5  ;;  %p2747_p0 = scmp.lt.u32.totalorder %s3354_s6, %s3430_s4 }
 0x1b1   : > { %p2748_p1 = scmp.lt.u32.totalorder %s2746_s29, %s2742_s5  ;;  %p2750_p3 = scmp.lt.u32.totalorder %s2742_s5, %s3354_s6 }
 0x1b2   : > { %p2744_p12 = pnand %p2743_p11, %p2879_p4 }
 0x1b3   : > { %p2749_p2 = por %p2748_p1, %p2747_p0 }
 0x1b4   : > { %p2745_p13 = pneg %p2744_p12 }
 0x1b5   : > { %p2751_p5 = por %p2750_p3, %p2749_p2 }
 0x1b7   : > { %p2752_p6 = pnand %p2751_p5, %p2745_p13 }
 0x1b9   : > { %2755 = shalt.err (!%p2752_p6)
}
 0x1ba   : > { %2601 = dma.vmem_to_hbm [thread:$0]  (%p2879_p4), %s3356_s22, 16, %s3354_s6, %s1928_s8  }
 0x1bb PF: > { %p2611_p7 = scmp.ge.s32.totalorder %s2810_s20, 2  ;;  %s1977_s24 = sand.u32 1, %s2790_s15  }
 0x1bc   : > { %s1978_s26 = scalar_lea.sflag [#allocation4], %s1977_s24 }
 0x1bd   : > { %p2605_p9 = pnand %p2611_p7, %p2886_p8 }
 0x1bf   : > { %2781 = dma.done.wait (!%p2605_p9), %s1978_s26, 16  }
 0x1c0   : > { %2783 = vsyncadd (!%p2605_p9), %s1978_s26, 4294967280  ;;  %s1986_s18 = scalar_lea.sflag [#allocation6], %s1977_s24 }
 0x1c1   : > { %2785 = dma.done.wait (!%p2605_p9), %s1986_s18, 16  }
 0x1c2   : > { %2787 = vsyncadd (!%p2605_p9), %s1986_s18, 4294967280  ;;  %s21_s20 = sadd.s32 1, %s2810_s20   ;;  %s3433_s15 = smov %s2794_s16 }
 0x1c3   : > { %p18_p10 = scmp.ge.s32.totalorder %s21_s20, 6   ;;  %s3434_s16 = smov %s2798_s17 }
 0x1c4   : > { %s3435_s17 = smov %s2892_s28  ;;  %s3436_s18 = smov %s2806_s19 }
 0x1c5   : > { %s3437_s19 = smov %s3439_s23  ;;  %20 = sbr.rel (!%p18_p10) target bundleno = 6 (0x6), region = 103 }
 0x1cc   :  { %1990 = vsyncpa [#allocation4], 1 }
 0x1cd   :  { %1992 = vsyncpa [#allocation4 + $0x1], 1 }
 0x1ce   :  { %1993 = vsyncpa [#allocation6], 1 }
 0x1cf   :  { %1995 = vsyncpa [#allocation6 + $0x1], 1 }

// kernel: discriminator_forward.9
= control target key start
LH: loop header
LB: loop body
LE: loop exit
PB: predicated region body
PF: predicated region fallthrough
CT: control target
= control target key end

     0   :  { %s2461_s1 = inlined_call_operand.vmem [shape: bf16[128,128], index: 1, kind: input, shape index: {}]   ;;  %s2462_s0 = inlined_call_operand.vmem [shape: bf16[512,128], index: 0, kind: input, shape index: {}]   ;;  %s2463_s2 = inlined_call_operand.vmem [shape: bf16[512,128], index: 2, kind: output, shape index: {0}]   ;;  %s2464_s3 = inlined_call_operand.vmem [shape: f32[1,1,128], index: 3, kind: output, shape index: {1}]   ;;  %s2465_s4 = inlined_call_operand.vmem [shape: f32[1,1,128], index: 4, kind: output, shape index: {2}]  }
   0x1   :  { %v1982_v0 = vld [vmem:[%s2461_s1] sm:$0xff]   ;;  %v1983_v1 = vld [vmem:[%s2461_s1 + $0x8] sm:$0xff]   ;;  %v1984_v2 = vld [vmem:[%s2461_s1 + $0x10] sm:$0xff]  }
   0x2   :  { %1886 = vmatprep.subr.bf16.mxu0 %v1982_v0  ;;  %1966 = vmatprep.subr.bf16.mxu1 %v1982_v0  ;;  %v1985_v3 = vld [vmem:[%s2461_s1 + $0x18] sm:$0xff]   ;;  %v1990_v4 = vld [vmem:[%s2462_s0] sm:$0xff]   ;;  %v1987_v6 = vld [vmem:[%s2461_s1 + $0x28] sm:$0xff]  }
   0x3   :  { %1887 = vmatpush3.bf16.msra.mxu0 %v1982_v0  ;;  %1974 = vmatpush3.bf16.msra.mxu1 %v1982_v0  ;;  %v1986_v5 = vld [vmem:[%s2461_s1 + $0x20] sm:$0xff]   ;;  %v1988_v7 = vld [vmem:[%s2461_s1 + $0x30] sm:$0xff]   ;;  %v1989_v8 = vld [vmem:[%s2461_s1 + $0x38] sm:$0xff]  }
   0x4   :  { %1888 = vmatprep.subr.bf16.mxu0 %v1983_v1  ;;  %1967 = vmatprep.subr.bf16.mxu1 %v1983_v1  ;;  %v2006_v9 = vld [vmem:[%s2462_s0 + $0x80] sm:$0xff]   ;;  %v1991_v10 = vld [vmem:[%s2462_s0 + $0x8] sm:$0xff]   ;;  %v1992_v11 = vld [vmem:[%s2462_s0 + $0x10] sm:$0xff]  }
   0x5   :  { %1902 = vmatprep.mubr.bf16.mxu0 %v1990_v4  ;;  %1934 = vmatprep.mubr.bf16.mxu1 %v2006_v9  ;;  %v2007_v12 = vld [vmem:[%s2462_s0 + $0x88] sm:$0xff]   ;;  %v2008_v13 = vld [vmem:[%s2462_s0 + $0x90] sm:$0xff]   ;;  %v1993_v14 = vld [vmem:[%s2462_s0 + $0x18] sm:$0xff]  }
   0x6   :  { %v1994_v15 = vld [vmem:[%s2462_s0 + $0x20] sm:$0xff]   ;;  %v2009_v16 = vld [vmem:[%s2462_s0 + $0x98] sm:$0xff]   ;;  %v1995_v18 = vld [vmem:[%s2462_s0 + $0x28] sm:$0xff]  }
   0x7   :  { %1889 = vmatpush3.bf16.msra.mxu0 %v1983_v1  ;;  %1975 = vmatpush3.bf16.msra.mxu1 %v1983_v1  ;;  %v2010_v17 = vld [vmem:[%s2462_s0 + $0xa0] sm:$0xff]   ;;  %v2011_v19 = vld [vmem:[%s2462_s0 + $0xa8] sm:$0xff]   ;;  %v1996_v20 = vld [vmem:[%s2462_s0 + $0x30] sm:$0xff]  }
   0x8   :  { %1890 = vmatprep.subr.bf16.mxu0 %v1984_v2  ;;  %1968 = vmatprep.subr.bf16.mxu1 %v1984_v2  ;;  %v2012_v21 = vld [vmem:[%s2462_s0 + $0xb0] sm:$0xff]   ;;  %v1997_v22 = vld [vmem:[%s2462_s0 + $0x38] sm:$0xff]   ;;  %v1998_v24 = vld [vmem:[%s2462_s0 + $0x40] sm:$0xff]  }
   0x9   :  { %v2013_v23 = vld [vmem:[%s2462_s0 + $0xb8] sm:$0xff]   ;;  %v2014_v25 = vld [vmem:[%s2462_s0 + $0xc0] sm:$0xff]   ;;  %v1999_v26 = vld [vmem:[%s2462_s0 + $0x48] sm:$0xff]  }
   0xa   :  { %v2015_v27 = vld [vmem:[%s2462_s0 + $0xc8] sm:$0xff]   ;;  %v2000_v28 = vld [vmem:[%s2462_s0 + $0x50] sm:$0xff]   ;;  %v2001_v30 = vld [vmem:[%s2462_s0 + $0x58] sm:$0xff]  }
   0xb   :  { %1891 = vmatpush3.bf16.msra.mxu0 %v1984_v2  ;;  %1976 = vmatpush3.bf16.msra.mxu1 %v1984_v2  ;;  %v2016_v29 = vld [vmem:[%s2462_s0 + $0xd0] sm:$0xff]   ;;  %v2017_v31 = vld [vmem:[%s2462_s0 + $0xd8] sm:$0xff]   ;;  %v2002_v32 = vld [vmem:[%s2462_s0 + $0x60] sm:$0xff]  }
   0xc   :  { %1892 = vmatprep.subr.bf16.mxu0 %v1985_v3  ;;  %1969 = vmatprep.subr.bf16.mxu1 %v1985_v3  ;;  %v2018_v33 = vld [vmem:[%s2462_s0 + $0xe0] sm:$0xff]   ;;  %v2003_v34 = vld [vmem:[%s2462_s0 + $0x68] sm:$0xff]   ;;  %v2004_v36 = vld [vmem:[%s2462_s0 + $0x70] sm:$0xff]  }
   0xd   :  { %v2019_v35 = vld [vmem:[%s2462_s0 + $0xe8] sm:$0xff]   ;;  %v2020_v37 = vld [vmem:[%s2462_s0 + $0xf0] sm:$0xff]   ;;  %v2005_v38 = vld [vmem:[%s2462_s0 + $0x78] sm:$0xff]  }
   0xe   :  { %v2021_v39 = vld [vmem:[%s2462_s0 + $0xf8] sm:$0xff]  }
   0xf   :  { %1893 = vmatpush3.bf16.msra.mxu0 %v1985_v3  ;;  %1977 = vmatpush3.bf16.msra.mxu1 %v1985_v3 }
  0x10   :  { %1894 = vmatprep.subr.bf16.mxu0 %v1986_v5  ;;  %1970 = vmatprep.subr.bf16.mxu1 %v1986_v5 }
  0x13   :  { %1895 = vmatpush3.bf16.msra.mxu0 %v1986_v5  ;;  %1978 = vmatpush3.bf16.msra.mxu1 %v1986_v5 }
  0x14   :  { %1896 = vmatprep.subr.bf16.mxu0 %v1987_v6  ;;  %1971 = vmatprep.subr.bf16.mxu1 %v1987_v6 }
  0x17   :  { %1897 = vmatpush3.bf16.msra.mxu0 %v1987_v6  ;;  %1979 = vmatpush3.bf16.msra.mxu1 %v1987_v6 }
  0x18   :  { %1898 = vmatprep.subr.bf16.mxu0 %v1988_v7  ;;  %1972 = vmatprep.subr.bf16.mxu1 %v1988_v7 }
  0x1b   :  { %1899 = vmatpush3.bf16.msra.mxu0 %v1988_v7  ;;  %1980 = vmatpush3.bf16.msra.mxu1 %v1988_v7 }
  0x1c   :  { %1900 = vmatprep.subr.bf16.mxu0 %v1989_v8  ;;  %1973 = vmatprep.subr.bf16.mxu1 %v1989_v8 }
  0x1f   :  { %1901 = vmatpush3.bf16.msra.mxu0 %v1989_v8  ;;  %1981 = vmatpush3.bf16.msra.mxu1 %v1989_v8 }
  0x22   :  { %1903 = vmatmul.mubr.bf16.vlgmr.msra.gmra.mrb[0].mxu0 %v1991_v10  ;;  %1935 = vmatmul.mubr.bf16.vlgmr.msra.gmra.mrb[0].mxu1 %v2007_v12 }
  0x23   :  { %1906 = vmatprep.mubr.bf16.mxu0 %v1992_v11  ;;  %1938 = vmatprep.mubr.bf16.mxu1 %v2008_v13 }
  0x2a   :  { %1907 = vmatmul.mubr.bf16.gmra.mrb[4].mxu0 %v1993_v14  ;;  %1939 = vmatmul.mubr.bf16.gmra.mrb[4].mxu1 %v2009_v16 }
  0x2b   :  { %1910 = vmatprep.mubr.bf16.mxu0 %v1994_v15  ;;  %1942 = vmatprep.mubr.bf16.mxu1 %v2010_v17 }
  0x32   :  { %1911 = vmatmul.mubr.bf16.gmra.mrb[8].mxu0 %v1995_v18  ;;  %1943 = vmatmul.mubr.bf16.gmra.mrb[8].mxu1 %v2011_v19 }
  0x33   :  { %1914 = vmatprep.mubr.bf16.mxu0 %v1996_v20  ;;  %1946 = vmatprep.mubr.bf16.mxu1 %v2012_v21 }
  0x3a   :  { %1915 = vmatmul.mubr.bf16.gmra.mrb[12].mxu0 %v1997_v22  ;;  %1947 = vmatmul.mubr.bf16.gmra.mrb[12].mxu1 %v2013_v23 }
  0x3b   :  { %1918 = vmatprep.mubr.bf16.mxu0 %v1998_v24  ;;  %1950 = vmatprep.mubr.bf16.mxu1 %v2014_v25 }
  0x42   :  { %1919 = vmatmul.mubr.bf16.gmra.mrb[16].mxu0 %v1999_v26  ;;  %1951 = vmatmul.mubr.bf16.gmra.mrb[16].mxu1 %v2015_v27 }
  0x43   :  { %1922 = vmatprep.mubr.bf16.mxu0 %v2000_v28  ;;  %1954 = vmatprep.mubr.bf16.mxu1 %v2016_v29 }
  0x4a   :  { %1923 = vmatmul.mubr.bf16.gmra.mrb[20].mxu0 %v2001_v30  ;;  %1955 = vmatmul.mubr.bf16.gmra.mrb[20].mxu1 %v2017_v31 }
  0x4b   :  { %1926 = vmatprep.mubr.bf16.mxu0 %v2002_v32  ;;  %1958 = vmatprep.mubr.bf16.mxu1 %v2018_v33 }
  0x52   :  { %1927 = vmatmul.mubr.bf16.gmra.mrb[24].mxu0 %v2003_v34  ;;  %1959 = vmatmul.mubr.bf16.gmra.mrb[24].mxu1 %v2019_v35 }
  0x53   :  { %1930 = vmatprep.mubr.bf16.mxu0 %v2004_v36  ;;  %1962 = vmatprep.mubr.bf16.mxu1 %v2020_v37 }
  0x5a   :  { %1931 = vmatmul.mubr.bf16.gmra.mrb[28].mxu0 %v2005_v38  ;;  %1963 = vmatmul.mubr.bf16.gmra.mrb[28].mxu1 %v2021_v39 }
  0xf5   :  { %v1904_v40 = vpop.f32.mrb[0].mxu0  ;;  %v2167_v41 = vpop.f32.mrb[0].mxu1 }
  0xf6   :  { %v501_v42 = vpop.f32.mrb[1].mxu0  ;;  %v2169_v43 = vpop.f32.mrb[1].mxu1  ;;  %v1343_v55 = vmul.f32 %v1904_v40, %v1904_v40 }
  0xf7   :  { %v1905_v44 = vpop.f32.mrb[2].mxu0  ;;  %v2171_v45 = vpop.f32.mrb[2].mxu1  ;;  %v1341_v46 = vmul.f32 %v501_v42, %v501_v42 }
  0xf8   :  { %v1663_v47 = vpack.c.bf16 %v1905_v44, %v1904_v40  ;;  %v504_v48 = vpop.f32.mrb[3].mxu0  ;;  %v1743_v49 = vpack.c.bf16 %v2171_v45, %v2167_v41  ;;  %v2175_v50 = vpop.f32.mrb[3].mxu1  ;;  %v1344_v58 = vmul.f32 %v1905_v44, %v1905_v44 }
  0xf9   :  { %v1658_v51 = vpack.c.bf16 %v504_v48, %v501_v42  ;;  %v1271_v52 = vadd.f32 %v504_v48, %v501_v42  ;;  %v1342_v53 = vmul.f32 %v504_v48, %v504_v48  ;;  %v1738_v54 = vpack.c.bf16 %v2175_v50, %v2169_v43 }
  0xfa   :  { %1815 = vst [vmem:[%s2463_s2 + $0x8] sm:$0xff] %v1663_v47   ;;  %1831 = vst [vmem:[%s2463_s2 + $0x88] sm:$0xff] %v1743_v49  }
  0xfb   :  { %1659 = vst [vmem:[%s2463_s2] sm:$0xff] %v1658_v51   ;;  %v1272_v56 = vadd.f32 %v1904_v40, %v1271_v52  ;;  %v1405_v57 = vadd.f32 %v1342_v53, %v1341_v46  ;;  %1830 = vst [vmem:[%s2463_s2 + $0x80] sm:$0xff] %v1738_v54  }
  0xfd   :  { %v1406_v59 = vadd.f32 %v1405_v57, %v1343_v55  ;;  %v1908_v60 = vpop.f32.mrb[4].mxu0  ;;  %v1273_v61 = vadd.f32 %v1905_v44, %v1272_v56  ;;  %v2191_v62 = vpop.f32.mrb[4].mxu1 }
  0xfe   :  { %v517_v63 = vpop.f32.mrb[5].mxu0  ;;  %v2193_v0 = vpop.f32.mrb[5].mxu1  ;;  %v1347_v15 = vmul.f32 %v1908_v60, %v1908_v60 }
  0xff   :  { %v1274_v1 = vadd.f32 %v1273_v61, %v517_v63  ;;  %v1345_v2 = vmul.f32 %v517_v63, %v517_v63  ;;  %v1407_v3 = vadd.f32 %v1406_v59, %v1344_v58  ;;  %v1909_v4 = vpop.f32.mrb[6].mxu0  ;;  %v2195_v5 = vpop.f32.mrb[6].mxu1 }
 0x100   :  { %v1673_v6 = vpack.c.bf16 %v1909_v4, %v1908_v60  ;;  %v520_v7 = vpop.f32.mrb[7].mxu0  ;;  %v1753_v8 = vpack.c.bf16 %v2195_v5, %v2191_v62  ;;  %v2199_v9 = vpop.f32.mrb[7].mxu1  ;;  %v1348_v18 = vmul.f32 %v1909_v4, %v1909_v4 }
 0x101   :  { %v1408_v10 = vadd.f32 %v1407_v3, %v1345_v2  ;;  %v1668_v11 = vpack.c.bf16 %v520_v7, %v517_v63  ;;  %v1275_v12 = vadd.f32 %v1274_v1, %v520_v7  ;;  %v1346_v13 = vmul.f32 %v520_v7, %v520_v7 }
 0x102   :  { %1817 = vst [vmem:[%s2463_s2 + $0x18] sm:$0xff] %v1673_v6   ;;  %1833 = vst [vmem:[%s2463_s2 + $0x98] sm:$0xff] %v1753_v8   ;;  %v1748_v14 = vpack.c.bf16 %v2199_v9, %v2193_v0 }
 0x103   :  { %1816 = vst [vmem:[%s2463_s2 + $0x10] sm:$0xff] %v1668_v11   ;;  %v1276_v16 = vadd.f32 %v1908_v60, %v1275_v12  ;;  %v1409_v17 = vadd.f32 %v1408_v10, %v1346_v13 }
 0x104   :  { %1832 = vst [vmem:[%s2463_s2 + $0x90] sm:$0xff] %v1748_v14  }
 0x105   :  { %v1410_v19 = vadd.f32 %v1409_v17, %v1347_v15  ;;  %v1912_v20 = vpop.f32.mrb[8].mxu0  ;;  %v1277_v21 = vadd.f32 %v1909_v4, %v1276_v16  ;;  %v2215_v22 = vpop.f32.mrb[8].mxu1 }
 0x106   :  { %v533_v23 = vpop.f32.mrb[9].mxu0  ;;  %v2217_v24 = vpop.f32.mrb[9].mxu1  ;;  %v1351_v39 = vmul.f32 %v1912_v20, %v1912_v20 }
 0x107   :  { %v1278_v25 = vadd.f32 %v1277_v21, %v533_v23  ;;  %v1349_v26 = vmul.f32 %v533_v23, %v533_v23  ;;  %v1411_v27 = vadd.f32 %v1410_v19, %v1348_v18  ;;  %v1913_v28 = vpop.f32.mrb[10].mxu0  ;;  %v2219_v29 = vpop.f32.mrb[10].mxu1 }
 0x108   :  { %v1683_v30 = vpack.c.bf16 %v1913_v28, %v1912_v20  ;;  %v536_v31 = vpop.f32.mrb[11].mxu0  ;;  %v1763_v32 = vpack.c.bf16 %v2219_v29, %v2215_v22  ;;  %v2223_v33 = vpop.f32.mrb[11].mxu1  ;;  %v1352_v44 = vmul.f32 %v1913_v28, %v1913_v28 }
 0x109   :  { %v1412_v34 = vadd.f32 %v1411_v27, %v1349_v26  ;;  %v1678_v35 = vpack.c.bf16 %v536_v31, %v533_v23  ;;  %v1279_v36 = vadd.f32 %v1278_v25, %v536_v31  ;;  %v1350_v37 = vmul.f32 %v536_v31, %v536_v31 }
 0x10a   :  { %1819 = vst [vmem:[%s2463_s2 + $0x28] sm:$0xff] %v1683_v30   ;;  %1835 = vst [vmem:[%s2463_s2 + $0xa8] sm:$0xff] %v1763_v32   ;;  %v1758_v38 = vpack.c.bf16 %v2223_v33, %v2217_v24 }
 0x10b   :  { %1818 = vst [vmem:[%s2463_s2 + $0x20] sm:$0xff] %v1678_v35   ;;  %v1280_v40 = vadd.f32 %v1912_v20, %v1279_v36  ;;  %v1413_v42 = vadd.f32 %v1412_v34, %v1350_v37 }
 0x10c   :  { %1834 = vst [vmem:[%s2463_s2 + $0xa0] sm:$0xff] %v1758_v38  }
 0x10d   :  { %v1414_v46 = vadd.f32 %v1413_v42, %v1351_v39  ;;  %v1916_v47 = vpop.f32.mrb[12].mxu0  ;;  %v1281_v48 = vadd.f32 %v1913_v28, %v1280_v40  ;;  %v2239_v49 = vpop.f32.mrb[12].mxu1 }
 0x10e   :  { %v549_v51 = vpop.f32.mrb[13].mxu0  ;;  %v2241_v52 = vpop.f32.mrb[13].mxu1  ;;  %v1355_v6 = vmul.f32 %v1916_v47, %v1916_v47 }
 0x10f   :  { %v1282_v53 = vadd.f32 %v1281_v48, %v549_v51  ;;  %v1353_v54 = vmul.f32 %v549_v51, %v549_v51  ;;  %v1415_v55 = vadd.f32 %v1414_v46, %v1352_v44  ;;  %v1917_v56 = vpop.f32.mrb[14].mxu0  ;;  %v2243_v57 = vpop.f32.mrb[14].mxu1 }
 0x110   :  { %v1693_v58 = vpack.c.bf16 %v1917_v56, %v1916_v47  ;;  %v552_v59 = vpop.f32.mrb[15].mxu0  ;;  %v1773_v60 = vpack.c.bf16 %v2243_v57, %v2239_v49  ;;  %v2247_v61 = vpop.f32.mrb[15].mxu1  ;;  %v1356_v10 = vmul.f32 %v1917_v56, %v1917_v56 }
 0x111   :  { %v1416_v63 = vadd.f32 %v1415_v55, %v1353_v54  ;;  %v1688_v1 = vpack.c.bf16 %v552_v59, %v549_v51  ;;  %v1283_v2 = vadd.f32 %v1282_v53, %v552_v59  ;;  %v1354_v3 = vmul.f32 %v552_v59, %v552_v59 }
 0x112   :  { %1821 = vst [vmem:[%s2463_s2 + $0x38] sm:$0xff] %v1693_v58   ;;  %1837 = vst [vmem:[%s2463_s2 + $0xb8] sm:$0xff] %v1773_v60   ;;  %v1768_v4 = vpack.c.bf16 %v2247_v61, %v2241_v52 }
 0x113   :  { %1820 = vst [vmem:[%s2463_s2 + $0x30] sm:$0xff] %v1688_v1   ;;  %v1284_v7 = vadd.f32 %v1916_v47, %v1283_v2  ;;  %v1417_v8 = vadd.f32 %v1416_v63, %v1354_v3 }
 0x114   :  { %1836 = vst [vmem:[%s2463_s2 + $0xb0] sm:$0xff] %v1768_v4  }
 0x115   :  { %v1418_v11 = vadd.f32 %v1417_v8, %v1355_v6  ;;  %v1920_v12 = vpop.f32.mrb[16].mxu0  ;;  %v1285_v13 = vadd.f32 %v1917_v56, %v1284_v7  ;;  %v2263_v14 = vpop.f32.mrb[16].mxu1 }
 0x116   :  { %v565_v15 = vpop.f32.mrb[17].mxu0  ;;  %v2265_v16 = vpop.f32.mrb[17].mxu1  ;;  %v1359_v35 = vmul.f32 %v1920_v12, %v1920_v12 }
 0x117   :  { %v1286_v17 = vadd.f32 %v1285_v13, %v565_v15  ;;  %v1357_v18 = vmul.f32 %v565_v15, %v565_v15  ;;  %v1419_v19 = vadd.f32 %v1418_v11, %v1356_v10  ;;  %v1921_v20 = vpop.f32.mrb[18].mxu0  ;;  %v2267_v21 = vpop.f32.mrb[18].mxu1 }
 0x118   :  { %v1703_v23 = vpack.c.bf16 %v1921_v20, %v1920_v12  ;;  %v568_v25 = vpop.f32.mrb[19].mxu0  ;;  %v1783_v26 = vpack.c.bf16 %v2267_v21, %v2263_v14  ;;  %v2271_v27 = vpop.f32.mrb[19].mxu1  ;;  %v1360_v38 = vmul.f32 %v1921_v20, %v1921_v20 }
 0x119   :  { %v1420_v28 = vadd.f32 %v1419_v19, %v1357_v18  ;;  %v1698_v30 = vpack.c.bf16 %v568_v25, %v565_v15  ;;  %v1287_v31 = vadd.f32 %v1286_v17, %v568_v25  ;;  %v1358_v32 = vmul.f32 %v568_v25, %v568_v25 }
 0x11a   :  { %1823 = vst [vmem:[%s2463_s2 + $0x48] sm:$0xff] %v1703_v23   ;;  %1839 = vst [vmem:[%s2463_s2 + $0xc8] sm:$0xff] %v1783_v26   ;;  %v1778_v34 = vpack.c.bf16 %v2271_v27, %v2265_v16 }
 0x11b   :  { %1822 = vst [vmem:[%s2463_s2 + $0x40] sm:$0xff] %v1698_v30   ;;  %v1288_v36 = vadd.f32 %v1920_v12, %v1287_v31  ;;  %v1421_v37 = vadd.f32 %v1420_v28, %v1358_v32 }
 0x11c   :  { %1838 = vst [vmem:[%s2463_s2 + $0xc0] sm:$0xff] %v1778_v34  }
 0x11d   :  { %v1422_v39 = vadd.f32 %v1421_v37, %v1359_v35  ;;  %v1924_v40 = vpop.f32.mrb[20].mxu0  ;;  %v1289_v42 = vadd.f32 %v1921_v20, %v1288_v36  ;;  %v2287_v44 = vpop.f32.mrb[20].mxu1 }
 0x11e   :  { %v581_v46 = vpop.f32.mrb[21].mxu0  ;;  %v2289_v47 = vpop.f32.mrb[21].mxu1  ;;  %v1363_v6 = vmul.f32 %v1924_v40, %v1924_v40 }
 0x11f   :  { %v1290_v48 = vadd.f32 %v1289_v42, %v581_v46  ;;  %v1361_v51 = vmul.f32 %v581_v46, %v581_v46  ;;  %v1423_v53 = vadd.f32 %v1422_v39, %v1360_v38  ;;  %v1925_v54 = vpop.f32.mrb[22].mxu0  ;;  %v2291_v55 = vpop.f32.mrb[22].mxu1 }
 0x120   :  { %v1713_v56 = vpack.c.bf16 %v1925_v54, %v1924_v40  ;;  %v584_v58 = vpop.f32.mrb[23].mxu0  ;;  %v1793_v59 = vpack.c.bf16 %v2291_v55, %v2287_v44  ;;  %v2295_v60 = vpop.f32.mrb[23].mxu1  ;;  %v1364_v10 = vmul.f32 %v1925_v54, %v1925_v54 }
 0x121   :  { %v1424_v63 = vadd.f32 %v1423_v53, %v1361_v51  ;;  %v1708_v1 = vpack.c.bf16 %v584_v58, %v581_v46  ;;  %v1291_v2 = vadd.f32 %v1290_v48, %v584_v58  ;;  %v1362_v3 = vmul.f32 %v584_v58, %v584_v58 }
 0x122   :  { %1825 = vst [vmem:[%s2463_s2 + $0x58] sm:$0xff] %v1713_v56   ;;  %1841 = vst [vmem:[%s2463_s2 + $0xd8] sm:$0xff] %v1793_v59   ;;  %v1788_v4 = vpack.c.bf16 %v2295_v60, %v2289_v47 }
 0x123   :  { %1824 = vst [vmem:[%s2463_s2 + $0x50] sm:$0xff] %v1708_v1   ;;  %v1292_v7 = vadd.f32 %v1924_v40, %v1291_v2  ;;  %v1425_v8 = vadd.f32 %v1424_v63, %v1362_v3 }
 0x124   :  { %1840 = vst [vmem:[%s2463_s2 + $0xd0] sm:$0xff] %v1788_v4  }
 0x125   :  { %v1426_v11 = vadd.f32 %v1425_v8, %v1363_v6  ;;  %v1928_v12 = vpop.f32.mrb[24].mxu0  ;;  %v1293_v13 = vadd.f32 %v1925_v54, %v1292_v7  ;;  %v2311_v15 = vpop.f32.mrb[24].mxu1 }
 0x126   :  { %v597_v17 = vpop.f32.mrb[25].mxu0  ;;  %v2313_v18 = vpop.f32.mrb[25].mxu1  ;;  %v1367_v39 = vmul.f32 %v1928_v12, %v1928_v12 }
 0x127   :  { %v1294_v19 = vadd.f32 %v1293_v13, %v597_v17  ;;  %v1365_v20 = vmul.f32 %v597_v17, %v597_v17  ;;  %v1427_v23 = vadd.f32 %v1426_v11, %v1364_v10  ;;  %v1929_v25 = vpop.f32.mrb[26].mxu0  ;;  %v2315_v26 = vpop.f32.mrb[26].mxu1 }
 0x128   :  { %v1723_v28 = vpack.c.bf16 %v1929_v25, %v1928_v12  ;;  %v600_v30 = vpop.f32.mrb[27].mxu0  ;;  %v1803_v31 = vpack.c.bf16 %v2315_v26, %v2311_v15  ;;  %v2319_v32 = vpop.f32.mrb[27].mxu1  ;;  %v1368_v46 = vmul.f32 %v1929_v25, %v1929_v25 }
 0x129   :  { %v1428_v34 = vadd.f32 %v1427_v23, %v1365_v20  ;;  %v1718_v35 = vpack.c.bf16 %v600_v30, %v597_v17  ;;  %v1295_v36 = vadd.f32 %v1294_v19, %v600_v30  ;;  %v1366_v37 = vmul.f32 %v600_v30, %v600_v30 }
 0x12a   :  { %1827 = vst [vmem:[%s2463_s2 + $0x68] sm:$0xff] %v1723_v28   ;;  %1843 = vst [vmem:[%s2463_s2 + $0xe8] sm:$0xff] %v1803_v31   ;;  %v1798_v38 = vpack.c.bf16 %v2319_v32, %v2313_v18  ;;  %v1373_v31 = vmul.f32 %v2169_v43, %v2169_v43 }
 0x12b   :  { %1826 = vst [vmem:[%s2463_s2 + $0x60] sm:$0xff] %v1718_v35   ;;  %v1296_v40 = vadd.f32 %v1928_v12, %v1295_v36  ;;  %v1429_v42 = vadd.f32 %v1428_v34, %v1366_v37 }
 0x12c   :  { %1842 = vst [vmem:[%s2463_s2 + $0xe0] sm:$0xff] %v1798_v38   ;;  %v1374_v38 = vmul.f32 %v2175_v50, %v2175_v50 }
 0x12d   :  { %v1430_v48 = vadd.f32 %v1429_v42, %v1367_v39  ;;  %v1932_v51 = vpop.f32.mrb[28].mxu0  ;;  %v1297_v53 = vadd.f32 %v1929_v25, %v1296_v40  ;;  %v2335_v54 = vpop.f32.mrb[28].mxu1  ;;  %v1375_v39 = vmul.f32 %v2167_v41, %v2167_v41 }
 0x12e   :  { %v613_v56 = vpop.f32.mrb[29].mxu0  ;;  %v2337_v58 = vpop.f32.mrb[29].mxu1  ;;  %v1371_v19 = vmul.f32 %v1932_v51, %v1932_v51 }
 0x12f   :  { %v1298_v59 = vadd.f32 %v1297_v53, %v613_v56  ;;  %v1369_v63 = vmul.f32 %v613_v56, %v613_v56  ;;  %v1431_v1 = vadd.f32 %v1430_v48, %v1368_v46  ;;  %v1933_v2 = vpop.f32.mrb[30].mxu0  ;;  %v2339_v3 = vpop.f32.mrb[30].mxu1  ;;  %v1376_v46 = vmul.f32 %v2171_v45, %v2171_v45 }
 0x130   :  { %v1733_v4 = vpack.c.bf16 %v1933_v2, %v1932_v51  ;;  %v616_v6 = vpop.f32.mrb[31].mxu0  ;;  %v1813_v7 = vpack.c.bf16 %v2339_v3, %v2335_v54  ;;  %v2343_v8 = vpop.f32.mrb[31].mxu1  ;;  %v1372_v25 = vmul.f32 %v1933_v2, %v1933_v2 }
 0x131   :  { %v1432_v10 = vadd.f32 %v1431_v1, %v1369_v63  ;;  %v1728_v11 = vpack.c.bf16 %v616_v6, %v613_v56  ;;  %v1299_v12 = vadd.f32 %v1298_v59, %v616_v6  ;;  %v1370_v13 = vmul.f32 %v616_v6, %v616_v6 }
 0x132   :  { %1829 = vst [vmem:[%s2463_s2 + $0x78] sm:$0xff] %v1733_v4   ;;  %1845 = vst [vmem:[%s2463_s2 + $0xf8] sm:$0xff] %v1813_v7   ;;  %v1808_v17 = vpack.c.bf16 %v2343_v8, %v2337_v58  ;;  %v1378_v63 = vmul.f32 %v2199_v9, %v2199_v9 }
 0x133   :  { %1828 = vst [vmem:[%s2463_s2 + $0x70] sm:$0xff] %v1728_v11   ;;  %v1300_v20 = vadd.f32 %v1932_v51, %v1299_v12  ;;  %v1433_v23 = vadd.f32 %v1432_v10, %v1370_v13  ;;  %v1382_v12 = vmul.f32 %v2223_v33, %v2223_v33 }
 0x134   :  { %1844 = vst [vmem:[%s2463_s2 + $0xf0] sm:$0xff] %v1808_v17  }
 0x135   :  { %v1434_v28 = vadd.f32 %v1433_v23, %v1371_v19  ;;  %v1301_v30 = vadd.f32 %v1933_v2, %v1300_v20 }
 0x137   :  { %v1302_v34 = vadd.f32 %v1301_v30, %v2169_v43  ;;  %v1435_v35 = vadd.f32 %v1434_v28, %v1372_v25  ;;  %v1377_v43 = vmul.f32 %v2193_v0, %v2193_v0  ;;  %v1386_v30 = vmul.f32 %v2247_v61, %v2247_v61 }
 0x139   :  { %v1436_v36 = vadd.f32 %v1435_v35, %v1373_v31  ;;  %v1303_v37 = vadd.f32 %v1302_v34, %v2175_v50 }
 0x13b   :  { %v1304_v40 = vadd.f32 %v2167_v41, %v1303_v37  ;;  %v1437_v42 = vadd.f32 %v1436_v36, %v1374_v38  ;;  %v1379_v41 = vmul.f32 %v2191_v62, %v2191_v62 }
 0x13d   :  { %v1438_v48 = vadd.f32 %v1437_v42, %v1375_v39  ;;  %v1305_v51 = vadd.f32 %v2171_v45, %v1304_v40  ;;  %v1380_v45 = vmul.f32 %v2195_v5, %v2195_v5  ;;  %v1390_v40 = vmul.f32 %v2271_v27, %v2271_v27 }
 0x13f   :  { %v1306_v53 = vadd.f32 %v1305_v51, %v2193_v0  ;;  %v1439_v56 = vadd.f32 %v1438_v48, %v1376_v46  ;;  %v1381_v0 = vmul.f32 %v2217_v24, %v2217_v24 }
 0x141   :  { %v1440_v59 = vadd.f32 %v1439_v56, %v1377_v43  ;;  %v1307_v50 = vadd.f32 %v1306_v53, %v2199_v9 }
 0x143   :  { %v1308_v1 = vadd.f32 %v2191_v62, %v1307_v50  ;;  %v1441_v2 = vadd.f32 %v1440_v59, %v1378_v63  ;;  %v1383_v62 = vmul.f32 %v2215_v22, %v2215_v22  ;;  %v1394_v59 = vmul.f32 %v2295_v60, %v2295_v60 }
 0x145   :  { %v1442_v4 = vadd.f32 %v1441_v2, %v1379_v41  ;;  %v1309_v6 = vadd.f32 %v2195_v5, %v1308_v1  ;;  %v1384_v5 = vmul.f32 %v2219_v29, %v2219_v29 }
 0x147   :  { %v1310_v7 = vadd.f32 %v1309_v6, %v2217_v24  ;;  %v1443_v10 = vadd.f32 %v1442_v4, %v1380_v45  ;;  %v1385_v24 = vmul.f32 %v2241_v52, %v2241_v52  ;;  %v1398_v6 = vmul.f32 %v2319_v32, %v2319_v32 }
 0x149   :  { %v1444_v11 = vadd.f32 %v1443_v10, %v1381_v0  ;;  %v1311_v9 = vadd.f32 %v1310_v7, %v2223_v33 }
 0x14b   :  { %v1312_v13 = vadd.f32 %v2215_v22, %v1311_v9  ;;  %v1445_v17 = vadd.f32 %v1444_v11, %v1382_v12  ;;  %v1387_v22 = vmul.f32 %v2239_v49, %v2239_v49 }
 0x14d   :  { %v1446_v19 = vadd.f32 %v1445_v17, %v1383_v62  ;;  %v1313_v20 = vadd.f32 %v2219_v29, %v1312_v13  ;;  %v1388_v29 = vmul.f32 %v2243_v57, %v2243_v57  ;;  %v1402_v13 = vmul.f32 %v2343_v8, %v2343_v8 }
 0x14f   :  { %v1314_v23 = vadd.f32 %v1313_v20, %v2241_v52  ;;  %v1447_v25 = vadd.f32 %v1446_v19, %v1384_v5  ;;  %v1389_v52 = vmul.f32 %v2265_v16, %v2265_v16 }
 0x151   :  { %v1448_v28 = vadd.f32 %v1447_v25, %v1385_v24  ;;  %v1315_v33 = vadd.f32 %v1314_v23, %v2247_v61 }
 0x153   :  { %v1316_v31 = vadd.f32 %v2239_v49, %v1315_v33  ;;  %v1449_v34 = vadd.f32 %v1448_v28, %v1386_v30  ;;  %v1391_v49 = vmul.f32 %v2263_v14, %v2263_v14 }
 0x155   :  { %v1450_v35 = vadd.f32 %v1449_v34, %v1387_v22  ;;  %v1317_v36 = vadd.f32 %v2243_v57, %v1316_v31  ;;  %v1392_v57 = vmul.f32 %v2267_v21, %v2267_v21 }
 0x157   :  { %v1318_v37 = vadd.f32 %v1317_v36, %v2265_v16  ;;  %v1451_v38 = vadd.f32 %v1450_v35, %v1388_v29  ;;  %v1393_v16 = vmul.f32 %v2289_v47, %v2289_v47 }
 0x159   :  { %v1452_v39 = vadd.f32 %v1451_v38, %v1389_v52  ;;  %v1319_v61 = vadd.f32 %v1318_v37, %v2271_v27 }
 0x15b   :  { %v1320_v42 = vadd.f32 %v2263_v14, %v1319_v61  ;;  %v1453_v46 = vadd.f32 %v1452_v39, %v1390_v40  ;;  %v1395_v14 = vmul.f32 %v2287_v44, %v2287_v44 }
 0x15d   :  { %v1454_v48 = vadd.f32 %v1453_v46, %v1391_v49  ;;  %v1321_v51 = vadd.f32 %v2267_v21, %v1320_v42  ;;  %v1396_v21 = vmul.f32 %v2291_v55, %v2291_v55 }
 0x15f   :  { %v1322_v43 = vadd.f32 %v1321_v51, %v2289_v47  ;;  %v1455_v53 = vadd.f32 %v1454_v48, %v1392_v57  ;;  %v1397_v47 = vmul.f32 %v2313_v18, %v2313_v18 }
 0x161   :  { %v1456_v56 = vadd.f32 %v1455_v53, %v1393_v16  ;;  %v1323_v27 = vadd.f32 %v1322_v43, %v2295_v60 }
 0x163   :  { %v1324_v50 = vadd.f32 %v2287_v44, %v1323_v27  ;;  %v1457_v63 = vadd.f32 %v1456_v56, %v1394_v59  ;;  %v1399_v44 = vmul.f32 %v2311_v15, %v2311_v15 }
 0x165   :  { %v1458_v41 = vadd.f32 %v1457_v63, %v1395_v14  ;;  %v1325_v1 = vadd.f32 %v2291_v55, %v1324_v50  ;;  %v1400_v55 = vmul.f32 %v2315_v26, %v2315_v26 }
 0x167   :  { %v1326_v2 = vadd.f32 %v1325_v1, %v2313_v18  ;;  %v1459_v45 = vadd.f32 %v1458_v41, %v1396_v21  ;;  %v1401_v18 = vmul.f32 %v2337_v58, %v2337_v58 }
 0x169   :  { %v1460_v4 = vadd.f32 %v1459_v45, %v1397_v47  ;;  %v1327_v60 = vadd.f32 %v1326_v2, %v2319_v32 }
 0x16b   :  { %v1328_v0 = vadd.f32 %v2311_v15, %v1327_v60  ;;  %v1461_v7 = vadd.f32 %v1460_v4, %v1398_v6  ;;  %v1403_v15 = vmul.f32 %v2335_v54, %v2335_v54 }
 0x16d   :  { %v1462_v10 = vadd.f32 %v1461_v7, %v1399_v44  ;;  %v1329_v11 = vadd.f32 %v2315_v26, %v1328_v0  ;;  %v1404_v26 = vmul.f32 %v2339_v3, %v2339_v3 }
 0x16f   :  { %v1330_v9 = vadd.f32 %v1329_v11, %v2337_v58  ;;  %v1463_v12 = vadd.f32 %v1462_v10, %v1400_v55 }
 0x171   :  { %v1464_v62 = vadd.f32 %v1463_v12, %v1401_v18  ;;  %v1331_v32 = vadd.f32 %v1330_v9, %v2343_v8 }
 0x173   :  { %v1332_v17 = vadd.f32 %v2335_v54, %v1331_v32  ;;  %v1465_v5 = vadd.f32 %v1464_v62, %v1402_v13 }
 0x175   :  { %v1333_v19 = vadd.f32 %v2339_v3, %v1332_v17  ;;  %v1466_v20 = vadd.f32 %v1465_v5, %v1403_v15 }
 0x177   :  { %v1334_v58 = vrot.slane %v1333_v19, 4  ;;  %v1467_v24 = vadd.f32 %v1466_v20, %v1404_v26 }
 0x179   :  { %v1335_v23 = vadd.f32 %v1334_v58, %v1333_v19  ;;  %v1468_v25 = vrot.slane %v1467_v24, 4 }
 0x17b   :  { %v1336_v28 = vrot.slane %v1335_v23, 2  ;;  %v1469_v33 = vadd.f32 %v1468_v25, %v1467_v24 }
 0x17d   :  { %v1337_v30 = vadd.f32 %v1336_v28, %v1335_v23  ;;  %v1470_v8 = vrot.slane %v1469_v33, 2 }
 0x17f   :  { %v1338_v22 = vrot.slane %v1337_v30, 1  ;;  %v1471_v31 = vadd.f32 %v1470_v8, %v1469_v33 }
 0x181   :  { %v1339_v34 = vadd.f32 %v1338_v22, %v1337_v30  ;;  %v1472_v29 = vrot.slane %v1471_v31, 1 }
 0x183   :  { %1340 = vst [vmem:[%s2464_s3] sm:$0x1] %v1339_v34  ;;  %v1473_v54 = vadd.f32 %v1472_v29, %v1471_v31 }
 0x185   :  { %1474 = vst [vmem:[%s2465_s4] sm:$0x1] %v1473_v54 }

// kernel: discriminator_forward.10
= control target key start
LH: loop header
LB: loop body
LE: loop exit
PB: predicated region body
PF: predicated region fallthrough
CT: control target
= control target key end

     0   :  { %s1631_s0 = inlined_call_operand.vmem [shape: bf16[512,128], index: 0, kind: input, shape index: {}]   ;;  %s1632_s1 = inlined_call_operand.vmem [shape: f32[1,128], index: 1, kind: input, shape index: {}]   ;;  %s1633_s2 = inlined_call_operand.vmem [shape: f32[1,128], index: 2, kind: input, shape index: {}]   ;;  %s1634_s3 = inlined_call_operand.vmem [shape: bf16[512,128], index: 3, kind: output, shape index: {}]  }
   0x1   :  { %v931_v0 = vld [vmem:[%s1631_s0] sm:$0xff]   ;;  %v1218_v4 = vld [vmem:[%s1631_s0 + $0x8] sm:$0xff]   ;;  %v1219_v5 = vld [vmem:[%s1631_s0 + $0x10] sm:$0xff]  }
   0x2   :  { %v1306_v1 = vld [vmem:[%s1632_s1] ss:$0 sm:$0xff]  ;;  %v932_v2 = vunpack.c.l.bf16 %v931_v0  ;;  %v933_v3 = vunpack.c.h.bf16 %v931_v0  ;;  %v1220_v6 = vld [vmem:[%s1631_s0 + $0x18] sm:$0xff]   ;;  %v936_v8 = vunpack.c.l.bf16 %v1218_v4  ;;  %v937_v9 = vunpack.c.h.bf16 %v1218_v4  ;;  %v1222_v35 = vld [vmem:[%s1631_s0 + $0x28] sm:$0xff]  }
   0x3   :  { %v1320_v7 = vld [vmem:[%s1633_s2] ss:$0 sm:$0xff]  ;;  %v940_v10 = vunpack.c.l.bf16 %v1219_v5  ;;  %v941_v11 = vunpack.c.h.bf16 %v1219_v5  ;;  %v944_v14 = vunpack.c.l.bf16 %v1220_v6  ;;  %v945_v15 = vunpack.c.h.bf16 %v1220_v6  ;;  %v1223_v48 = vld [vmem:[%s1631_s0 + $0x30] sm:$0xff]   ;;  %v1224_v4 = vld [vmem:[%s1631_s0 + $0x38] sm:$0xff]  }
   0x4   :  { %v149_v12 = vmul.f32 %v932_v2, %v1306_v1  ;;  %v150_v13 = vmul.f32 %v933_v3, %v1306_v1  ;;  %v151_v16 = vmul.f32 %v936_v8, %v1306_v1  ;;  %v152_v17 = vmul.f32 %v937_v9, %v1306_v1  ;;  %v1221_v34 = vld [vmem:[%s1631_s0 + $0x20] sm:$0xff]  }
   0x5   :  { %v153_v18 = vmul.f32 %v940_v10, %v1306_v1  ;;  %v154_v19 = vmul.f32 %v941_v11, %v1306_v1  ;;  %v155_v22 = vmul.f32 %v944_v14, %v1306_v1  ;;  %v156_v23 = vmul.f32 %v945_v15, %v1306_v1  ;;  %v1225_v15 = vld [vmem:[%s1631_s0 + $0x40] sm:$0xff]  }
   0x6   :  { %v220_v20 = vadd.f32 %v1320_v7, %v149_v12  ;;  %v221_v21 = vadd.f32 %v1320_v7, %v150_v13  ;;  %v222_v24 = vadd.f32 %v1320_v7, %v151_v16  ;;  %v223_v25 = vadd.f32 %v1320_v7, %v152_v17 }
   0x7   :  { %v224_v26 = vadd.f32 %v1320_v7, %v153_v18  ;;  %v225_v27 = vadd.f32 %v1320_v7, %v154_v19  ;;  %v226_v42 = vadd.f32 %v1320_v7, %v155_v22  ;;  %v227_v43 = vadd.f32 %v1320_v7, %v156_v23 }
   0x8   :  { %vm284_vm0 = vcmp.gt.f32.partialorder %v220_v20, 0.0  ;;  %vm285_vm1 = vcmp.gt.f32.partialorder %v221_v21, 0.0  ;;  %v348_v28 = vmul.f32 0.2, %v220_v20  ;;  %v349_v29 = vmul.f32 0.2, %v221_v21 }
   0x9   :  { %vm286_vm2 = vcmp.gt.f32.partialorder %v222_v24, 0.0  ;;  %vm287_vm3 = vcmp.gt.f32.partialorder %v223_v25, 0.0  ;;  %v350_v30 = vmul.f32 0.2, %v222_v24  ;;  %v351_v31 = vmul.f32 0.2, %v223_v25 }
   0xa   :  { %v412_v32 = vsel %vm284_vm0, %v220_v20, %v348_v28  ;;  %v413_v33 = vsel %vm285_vm1, %v221_v21, %v349_v29  ;;  %vm288_vm4 = vcmp.gt.f32.partialorder %v224_v26, 0.0  ;;  %vm289_vm5 = vcmp.gt.f32.partialorder %v225_v27, 0.0 }
   0xb   :  { %v1061_v36 = vpack.c.bf16 %v413_v33, %v412_v32  ;;  %v414_v37 = vsel %vm286_vm2, %v222_v24, %v350_v30  ;;  %v415_v38 = vsel %vm287_vm3, %v223_v25, %v351_v31  ;;  %v352_v39 = vmul.f32 0.2, %v224_v26 }
   0xc   :  { %v1066_v40 = vpack.c.bf16 %v415_v38, %v414_v37  ;;  %v353_v41 = vmul.f32 0.2, %v225_v27  ;;  %v948_v45 = vunpack.c.l.bf16 %v1221_v34  ;;  %v949_v46 = vunpack.c.h.bf16 %v1221_v34 }
   0xd   :  { %1062 = vst [vmem:[%s1634_s3] sm:$0xff] %v1061_v36   ;;  %v416_v44 = vsel %vm288_vm4, %v224_v26, %v352_v39  ;;  %v952_v47 = vunpack.c.l.bf16 %v1222_v35  ;;  %vm290_vm6 = vcmp.gt.f32.partialorder %v226_v42, 0.0  ;;  %vm291_vm7 = vcmp.gt.f32.partialorder %v227_v43, 0.0  ;;  %v1226_v26 = vld [vmem:[%s1631_s0 + $0x48] sm:$0xff]  }
   0xe   :  { %1249 = vst [vmem:[%s1634_s3 + $0x8] sm:$0xff] %v1066_v40   ;;  %v417_v49 = vsel %vm289_vm5, %v225_v27, %v353_v41  ;;  %v354_v50 = vmul.f32 0.2, %v226_v42  ;;  %v355_v52 = vmul.f32 0.2, %v227_v43  ;;  %v157_v53 = vmul.f32 %v948_v45, %v1306_v1  ;;  %v1227_v27 = vld [vmem:[%s1631_s0 + $0x50] sm:$0xff]  }
   0xf   :  { %v1071_v51 = vpack.c.bf16 %v417_v49, %v416_v44  ;;  %v158_v54 = vmul.f32 %v949_v46, %v1306_v1  ;;  %v953_v56 = vunpack.c.h.bf16 %v1222_v35  ;;  %v159_v57 = vmul.f32 %v952_v47, %v1306_v1 }
  0x10   :  { %v418_v55 = vsel %vm290_vm6, %v226_v42, %v354_v50  ;;  %v956_v58 = vunpack.c.l.bf16 %v1223_v48  ;;  %v419_v59 = vsel %vm291_vm7, %v227_v43, %v355_v52  ;;  %v228_v60 = vadd.f32 %v1320_v7, %v157_v53 }
  0x11   :  { %1250 = vst [vmem:[%s1634_s3 + $0x10] sm:$0xff] %v1071_v51   ;;  %v229_v61 = vadd.f32 %v1320_v7, %v158_v54  ;;  %v957_v62 = vunpack.c.h.bf16 %v1223_v48  ;;  %v1076_v63 = vpack.c.bf16 %v419_v59, %v418_v55  ;;  %v160_v0 = vmul.f32 %v953_v56, %v1306_v1  ;;  %v1228_v55 = vld [vmem:[%s1631_s0 + $0x58] sm:$0xff]  }
  0x12   :  { %v230_v2 = vadd.f32 %v1320_v7, %v159_v57  ;;  %v161_v3 = vmul.f32 %v956_v58, %v1306_v1  ;;  %vm292_vm8 = vcmp.gt.f32.partialorder %v228_v60, 0.0  ;;  %v356_v5 = vmul.f32 0.2, %v228_v60 }
  0x13   :  { %vm293_vm9 = vcmp.gt.f32.partialorder %v229_v61, 0.0  ;;  %v357_v6 = vmul.f32 0.2, %v229_v61  ;;  %1251 = vst [vmem:[%s1634_s3 + $0x18] sm:$0xff] %v1076_v63   ;;  %v231_v8 = vadd.f32 %v1320_v7, %v160_v0  ;;  %v162_v10 = vmul.f32 %v957_v62, %v1306_v1 }
  0x14   :  { %vm294_vm10 = vcmp.gt.f32.partialorder %v230_v2, 0.0  ;;  %v358_v9 = vmul.f32 0.2, %v230_v2  ;;  %v420_v11 = vsel %vm292_vm8, %v228_v60, %v356_v5  ;;  %v232_v13 = vadd.f32 %v1320_v7, %v161_v3  ;;  %v1229_v60 = vld [vmem:[%s1631_s0 + $0x60] sm:$0xff]  }
  0x15   :  { %v421_v12 = vsel %vm293_vm9, %v229_v61, %v357_v6  ;;  %v960_v14 = vunpack.c.l.bf16 %v1224_v4  ;;  %vm295_vm11 = vcmp.gt.f32.partialorder %v231_v8, 0.0  ;;  %v359_v17 = vmul.f32 0.2, %v231_v8 }
  0x16   :  { %v1081_v16 = vpack.c.bf16 %v421_v12, %v420_v11  ;;  %v422_v18 = vsel %vm294_vm10, %v230_v2, %v358_v9  ;;  %v233_v19 = vadd.f32 %v1320_v7, %v162_v10  ;;  %vm296_vm12 = vcmp.gt.f32.partialorder %v232_v13, 0.0  ;;  %v1230_v9 = vld [vmem:[%s1631_s0 + $0x68] sm:$0xff]  }
  0x17   :  { %v360_v20 = vmul.f32 0.2, %v232_v13  ;;  %v961_v21 = vunpack.c.h.bf16 %v1224_v4  ;;  %v423_v22 = vsel %vm295_vm11, %v231_v8, %v359_v17  ;;  %v163_v23 = vmul.f32 %v960_v14, %v1306_v1 }
  0x18   :  { %1252 = vst [vmem:[%s1634_s3 + $0x20] sm:$0xff] %v1081_v16   ;;  %v964_v24 = vunpack.c.l.bf16 %v1225_v15  ;;  %v965_v25 = vunpack.c.h.bf16 %v1225_v15  ;;  %v1086_v28 = vpack.c.bf16 %v423_v22, %v422_v18  ;;  %vm297_vm13 = vcmp.gt.f32.partialorder %v233_v19, 0.0 }
  0x19   :  { %v361_v29 = vmul.f32 0.2, %v233_v19  ;;  %v424_v30 = vsel %vm296_vm12, %v232_v13, %v360_v20  ;;  %v164_v31 = vmul.f32 %v961_v21, %v1306_v1  ;;  %v234_v32 = vadd.f32 %v1320_v7, %v163_v23 }
  0x1a   :  { %v165_v33 = vmul.f32 %v964_v24, %v1306_v1  ;;  %v166_v34 = vmul.f32 %v965_v25, %v1306_v1  ;;  %1253 = vst [vmem:[%s1634_s3 + $0x28] sm:$0xff] %v1086_v28   ;;  %v968_v36 = vunpack.c.l.bf16 %v1226_v26  ;;  %v969_v37 = vunpack.c.h.bf16 %v1226_v26  ;;  %v1231_v28 = vld [vmem:[%s1631_s0 + $0x70] sm:$0xff]  }
  0x1b   :  { %v425_v35 = vsel %vm297_vm13, %v233_v19, %v361_v29  ;;  %v972_v38 = vunpack.c.l.bf16 %v1227_v27  ;;  %v235_v40 = vadd.f32 %v1320_v7, %v164_v31  ;;  %vm298_vm14 = vcmp.gt.f32.partialorder %v234_v32, 0.0 }
  0x1c   :  { %v1091_v39 = vpack.c.bf16 %v425_v35, %v424_v30  ;;  %v362_v41 = vmul.f32 0.2, %v234_v32  ;;  %v236_v42 = vadd.f32 %v1320_v7, %v165_v33  ;;  %v237_v43 = vadd.f32 %v1320_v7, %v166_v34 }
  0x1d   :  { %v167_v44 = vmul.f32 %v968_v36, %v1306_v1  ;;  %v168_v45 = vmul.f32 %v969_v37, %v1306_v1  ;;  %vm299_vm15 = vcmp.gt.f32.partialorder %v235_v40, 0.0  ;;  %v363_v46 = vmul.f32 0.2, %v235_v40  ;;  %v1232_v37 = vld [vmem:[%s1631_s0 + $0x78] sm:$0xff]  }
  0x1e   :  { %1254 = vst [vmem:[%s1634_s3 + $0x30] sm:$0xff] %v1091_v39   ;;  %v426_v47 = vsel %vm298_vm14, %v234_v32, %v362_v41  ;;  %v973_v48 = vunpack.c.h.bf16 %v1227_v27  ;;  %vm300_vm0 = vcmp.gt.f32.partialorder %v236_v42, 0.0  ;;  %vm301_vm1 = vcmp.gt.f32.partialorder %v237_v43, 0.0 }
  0x1f   :  { %v364_v49 = vmul.f32 0.2, %v236_v42  ;;  %v365_v50 = vmul.f32 0.2, %v237_v43  ;;  %v427_v51 = vsel %vm299_vm15, %v235_v40, %v363_v46  ;;  %v238_v52 = vadd.f32 %v1320_v7, %v167_v44 }
  0x20   :  { %v239_v53 = vadd.f32 %v1320_v7, %v168_v45  ;;  %v169_v54 = vmul.f32 %v972_v38, %v1306_v1  ;;  %v1096_v56 = vpack.c.bf16 %v427_v51, %v426_v47  ;;  %v170_v59 = vmul.f32 %v973_v48, %v1306_v1 }
  0x21   :  { %v428_v57 = vsel %vm300_vm0, %v236_v42, %v364_v49  ;;  %v429_v58 = vsel %vm301_vm1, %v237_v43, %v365_v50  ;;  %vm302_vm2 = vcmp.gt.f32.partialorder %v238_v52, 0.0  ;;  %v366_v62 = vmul.f32 0.2, %v238_v52  ;;  %v1233_v42 = vld [vmem:[%s1631_s0 + $0x80] sm:$0xff]   ;;  %v1234_v50 = vld [vmem:[%s1631_s0 + $0x88] sm:$0xff]  }
  0x22   :  { %v1101_v61 = vpack.c.bf16 %v429_v58, %v428_v57  ;;  %vm303_vm3 = vcmp.gt.f32.partialorder %v239_v53, 0.0  ;;  %1255 = vst [vmem:[%s1634_s3 + $0x38] sm:$0xff] %v1096_v56   ;;  %v367_v63 = vmul.f32 0.2, %v239_v53  ;;  %v240_v0 = vadd.f32 %v1320_v7, %v169_v54 }
  0x23   :  { %v241_v2 = vadd.f32 %v1320_v7, %v170_v59  ;;  %v976_v3 = vunpack.c.l.bf16 %v1228_v55  ;;  %v430_v4 = vsel %vm302_vm2, %v238_v52, %v366_v62  ;;  %v977_v5 = vunpack.c.h.bf16 %v1228_v55 }
  0x24   :  { %1256 = vst [vmem:[%s1634_s3 + $0x40] sm:$0xff] %v1101_v61   ;;  %v980_v6 = vunpack.c.l.bf16 %v1229_v60  ;;  %v981_v8 = vunpack.c.h.bf16 %v1229_v60  ;;  %v431_v10 = vsel %vm303_vm3, %v239_v53, %v367_v63  ;;  %vm304_vm4 = vcmp.gt.f32.partialorder %v240_v0, 0.0 }
  0x25   :  { %vm305_vm5 = vcmp.gt.f32.partialorder %v241_v2, 0.0  ;;  %v368_v11 = vmul.f32 0.2, %v240_v0  ;;  %v1106_v12 = vpack.c.bf16 %v431_v10, %v430_v4  ;;  %v369_v13 = vmul.f32 0.2, %v241_v2 }
  0x26   :  { %v171_v14 = vmul.f32 %v976_v3, %v1306_v1  ;;  %v172_v15 = vmul.f32 %v977_v5, %v1306_v1  ;;  %v173_v17 = vmul.f32 %v980_v6, %v1306_v1  ;;  %v174_v18 = vmul.f32 %v981_v8, %v1306_v1 }
  0x27   :  { %v432_v16 = vsel %vm304_vm4, %v240_v0, %v368_v11  ;;  %v984_v19 = vunpack.c.l.bf16 %v1230_v9  ;;  %1257 = vst [vmem:[%s1634_s3 + $0x48] sm:$0xff] %v1106_v12   ;;  %v433_v20 = vsel %vm305_vm5, %v241_v2, %v369_v13  ;;  %v985_v23 = vunpack.c.h.bf16 %v1230_v9 }
  0x28   :  { %v242_v21 = vadd.f32 %v1320_v7, %v171_v14  ;;  %v243_v22 = vadd.f32 %v1320_v7, %v172_v15  ;;  %v1111_v24 = vpack.c.bf16 %v433_v20, %v432_v16  ;;  %v244_v25 = vadd.f32 %v1320_v7, %v173_v17  ;;  %v1235_v15 = vld [vmem:[%s1631_s0 + $0x90] sm:$0xff]   ;;  %v1236_v20 = vld [vmem:[%s1631_s0 + $0x98] sm:$0xff]  }
  0x29   :  { %v245_v26 = vadd.f32 %v1320_v7, %v174_v18  ;;  %v175_v27 = vmul.f32 %v984_v19, %v1306_v1  ;;  %v176_v35 = vmul.f32 %v985_v23, %v1306_v1  ;;  %v988_v41 = vunpack.c.l.bf16 %v1231_v28 }
  0x2a   :  { %vm306_vm6 = vcmp.gt.f32.partialorder %v242_v21, 0.0  ;;  %vm307_vm7 = vcmp.gt.f32.partialorder %v243_v22, 0.0  ;;  %v370_v29 = vmul.f32 0.2, %v242_v21  ;;  %v371_v30 = vmul.f32 0.2, %v243_v22 }
  0x2b   :  { %1258 = vst [vmem:[%s1634_s3 + $0x50] sm:$0xff] %v1111_v24   ;;  %vm308_vm8 = vcmp.gt.f32.partialorder %v244_v25, 0.0  ;;  %vm309_vm9 = vcmp.gt.f32.partialorder %v245_v26, 0.0  ;;  %v372_v31 = vmul.f32 0.2, %v244_v25  ;;  %v246_v36 = vadd.f32 %v1320_v7, %v175_v27 }
  0x2c   :  { %v373_v32 = vmul.f32 0.2, %v245_v26  ;;  %v434_v33 = vsel %vm306_vm6, %v242_v21, %v370_v29  ;;  %v435_v34 = vsel %vm307_vm7, %v243_v22, %v371_v30  ;;  %v247_v44 = vadd.f32 %v1320_v7, %v176_v35  ;;  %v1237_v21 = vld [vmem:[%s1631_s0 + $0xa0] sm:$0xff]  }
  0x2d   :  { %v1116_v38 = vpack.c.bf16 %v435_v34, %v434_v33  ;;  %v436_v39 = vsel %vm308_vm8, %v244_v25, %v372_v31  ;;  %vm310_vm10 = vcmp.gt.f32.partialorder %v246_v36, 0.0  ;;  %v374_v45 = vmul.f32 0.2, %v246_v36 }
  0x2e   :  { %v437_v40 = vsel %vm309_vm9, %v245_v26, %v373_v32  ;;  %v989_v46 = vunpack.c.h.bf16 %v1231_v28  ;;  %v177_v47 = vmul.f32 %v988_v41, %v1306_v1  ;;  %v992_v48 = vunpack.c.l.bf16 %v1232_v37 }
  0x2f   :  { %v1121_v43 = vpack.c.bf16 %v437_v40, %v436_v39  ;;  %1259 = vst [vmem:[%s1634_s3 + $0x58] sm:$0xff] %v1116_v38   ;;  %v993_v49 = vunpack.c.h.bf16 %v1232_v37  ;;  %vm311_vm11 = vcmp.gt.f32.partialorder %v247_v44, 0.0  ;;  %v375_v51 = vmul.f32 0.2, %v247_v44  ;;  %v1238_v40 = vld [vmem:[%s1631_s0 + $0xa8] sm:$0xff]  }
  0x30   :  { %v438_v52 = vsel %vm310_vm10, %v246_v36, %v374_v45  ;;  %v996_v53 = vunpack.c.l.bf16 %v1233_v42  ;;  %v178_v54 = vmul.f32 %v989_v46, %v1306_v1  ;;  %v248_v55 = vadd.f32 %v1320_v7, %v177_v47 }
  0x31   :  { %1260 = vst [vmem:[%s1634_s3 + $0x60] sm:$0xff] %v1121_v43   ;;  %v179_v56 = vmul.f32 %v992_v48, %v1306_v1  ;;  %v180_v57 = vmul.f32 %v993_v49, %v1306_v1  ;;  %v439_v58 = vsel %vm311_vm11, %v247_v44, %v375_v51  ;;  %v997_v59 = vunpack.c.h.bf16 %v1233_v42 }
  0x32   :  { %v181_v60 = vmul.f32 %v996_v53, %v1306_v1  ;;  %v1000_v61 = vunpack.c.l.bf16 %v1234_v50  ;;  %v1126_v62 = vpack.c.bf16 %v439_v58, %v438_v52  ;;  %v249_v63 = vadd.f32 %v1320_v7, %v178_v54 }
  0x33   :  { %vm312_vm12 = vcmp.gt.f32.partialorder %v248_v55, 0.0  ;;  %v376_v0 = vmul.f32 0.2, %v248_v55  ;;  %v250_v2 = vadd.f32 %v1320_v7, %v179_v56  ;;  %v251_v3 = vadd.f32 %v1320_v7, %v180_v57 }
  0x34   :  { %v182_v4 = vmul.f32 %v997_v59, %v1306_v1  ;;  %v252_v5 = vadd.f32 %v1320_v7, %v181_v60  ;;  %1261 = vst [vmem:[%s1634_s3 + $0x68] sm:$0xff] %v1126_v62   ;;  %vm313_vm13 = vcmp.gt.f32.partialorder %v249_v63, 0.0  ;;  %v377_v6 = vmul.f32 0.2, %v249_v63 }
  0x35   :  { %v440_v8 = vsel %vm312_vm12, %v248_v55, %v376_v0  ;;  %v1001_v9 = vunpack.c.h.bf16 %v1234_v50  ;;  %vm314_vm14 = vcmp.gt.f32.partialorder %v250_v2, 0.0  ;;  %vm315_vm15 = vcmp.gt.f32.partialorder %v251_v3, 0.0  ;;  %v1239_v0 = vld [vmem:[%s1631_s0 + $0xb0] sm:$0xff]  }
  0x36   :  { %v378_v10 = vmul.f32 0.2, %v250_v2  ;;  %v379_v11 = vmul.f32 0.2, %v251_v3  ;;  %v441_v12 = vsel %vm313_vm13, %v249_v63, %v377_v6  ;;  %v253_v13 = vadd.f32 %v1320_v7, %v182_v4 }
  0x37   :  { %vm316_vm0 = vcmp.gt.f32.partialorder %v252_v5, 0.0  ;;  %v380_v14 = vmul.f32 0.2, %v252_v5  ;;  %v1131_v16 = vpack.c.bf16 %v441_v12, %v440_v8  ;;  %v183_v19 = vmul.f32 %v1000_v61, %v1306_v1 }
  0x38   :  { %v442_v17 = vsel %vm314_vm14, %v250_v2, %v378_v10  ;;  %v443_v18 = vsel %vm315_vm15, %v251_v3, %v379_v11  ;;  %vm317_vm1 = vcmp.gt.f32.partialorder %v253_v13, 0.0  ;;  %v381_v23 = vmul.f32 0.2, %v253_v13  ;;  %v1240_v2 = vld [vmem:[%s1631_s0 + $0xb8] sm:$0xff]  }
  0x39   :  { %v1136_v22 = vpack.c.bf16 %v443_v18, %v442_v17  ;;  %v444_v24 = vsel %vm316_vm0, %v252_v5, %v380_v14  ;;  %1262 = vst [vmem:[%s1634_s3 + $0x70] sm:$0xff] %v1131_v16   ;;  %v184_v25 = vmul.f32 %v1001_v9, %v1306_v1  ;;  %v254_v26 = vadd.f32 %v1320_v7, %v183_v19  ;;  %v1241_v18 = vld [vmem:[%s1631_s0 + $0xc0] sm:$0xff]  }
  0x3a   :  { %v1004_v27 = vunpack.c.l.bf16 %v1235_v15  ;;  %v1005_v28 = vunpack.c.h.bf16 %v1235_v15  ;;  %v445_v29 = vsel %vm317_vm1, %v253_v13, %v381_v23  ;;  %v1008_v30 = vunpack.c.l.bf16 %v1236_v20 }
  0x3b   :  { %1263 = vst [vmem:[%s1634_s3 + $0x78] sm:$0xff] %v1136_v22   ;;  %v1009_v31 = vunpack.c.h.bf16 %v1236_v20  ;;  %v1012_v32 = vunpack.c.l.bf16 %v1237_v21  ;;  %v1141_v33 = vpack.c.bf16 %v445_v29, %v444_v24  ;;  %v255_v34 = vadd.f32 %v1320_v7, %v184_v25 }
  0x3c   :  { %vm318_vm2 = vcmp.gt.f32.partialorder %v254_v26, 0.0  ;;  %v382_v35 = vmul.f32 0.2, %v254_v26  ;;  %v185_v36 = vmul.f32 %v1004_v27, %v1306_v1  ;;  %v186_v37 = vmul.f32 %v1005_v28, %v1306_v1 }
  0x3d   :  { %v187_v38 = vmul.f32 %v1008_v30, %v1306_v1  ;;  %v188_v39 = vmul.f32 %v1009_v31, %v1306_v1  ;;  %1264 = vst [vmem:[%s1634_s3 + $0x80] sm:$0xff] %v1141_v33   ;;  %vm319_vm3 = vcmp.gt.f32.partialorder %v255_v34, 0.0  ;;  %v383_v41 = vmul.f32 0.2, %v255_v34 }
  0x3e   :  { %v446_v42 = vsel %vm318_vm2, %v254_v26, %v382_v35  ;;  %v1013_v43 = vunpack.c.h.bf16 %v1237_v21  ;;  %v256_v44 = vadd.f32 %v1320_v7, %v185_v36  ;;  %v257_v45 = vadd.f32 %v1320_v7, %v186_v37  ;;  %v1242_v36 = vld [vmem:[%s1631_s0 + $0xc8] sm:$0xff]  }
  0x3f   :  { %v258_v46 = vadd.f32 %v1320_v7, %v187_v38  ;;  %v259_v47 = vadd.f32 %v1320_v7, %v188_v39  ;;  %v447_v48 = vsel %vm319_vm3, %v255_v34, %v383_v41  ;;  %v189_v49 = vmul.f32 %v1012_v32, %v1306_v1 }
  0x40   :  { %v190_v50 = vmul.f32 %v1013_v43, %v1306_v1  ;;  %v1016_v51 = vunpack.c.l.bf16 %v1238_v40  ;;  %v1146_v52 = vpack.c.bf16 %v447_v48, %v446_v42  ;;  %vm320_vm4 = vcmp.gt.f32.partialorder %v256_v44, 0.0  ;;  %v1243_v42 = vld [vmem:[%s1631_s0 + $0xd0] sm:$0xff]  }
  0x41   :  { %vm321_vm5 = vcmp.gt.f32.partialorder %v257_v45, 0.0  ;;  %v384_v53 = vmul.f32 0.2, %v256_v44  ;;  %v385_v54 = vmul.f32 0.2, %v257_v45  ;;  %vm322_vm6 = vcmp.gt.f32.partialorder %v258_v46, 0.0 }
  0x42   :  { %vm323_vm7 = vcmp.gt.f32.partialorder %v259_v47, 0.0  ;;  %v386_v55 = vmul.f32 0.2, %v258_v46  ;;  %1265 = vst [vmem:[%s1634_s3 + $0x88] sm:$0xff] %v1146_v52   ;;  %v387_v57 = vmul.f32 0.2, %v259_v47  ;;  %v260_v58 = vadd.f32 %v1320_v7, %v189_v49 }
  0x43   :  { %v448_v56 = vsel %vm320_vm4, %v256_v44, %v384_v53  ;;  %v261_v59 = vadd.f32 %v1320_v7, %v190_v50  ;;  %v449_v60 = vsel %vm321_vm5, %v257_v45, %v385_v54  ;;  %v1017_v62 = vunpack.c.h.bf16 %v1238_v40 }
  0x44   :  { %v450_v61 = vsel %vm322_vm6, %v258_v46, %v386_v55  ;;  %v191_v63 = vmul.f32 %v1016_v51, %v1306_v1  ;;  %v1151_v3 = vpack.c.bf16 %v449_v60, %v448_v56  ;;  %v451_v4 = vsel %vm323_vm7, %v259_v47, %v387_v57  ;;  %v1244_v55 = vld [vmem:[%s1631_s0 + $0xd8] sm:$0xff]  }
  0x45   :  { %vm324_vm8 = vcmp.gt.f32.partialorder %v260_v58, 0.0  ;;  %vm325_vm9 = vcmp.gt.f32.partialorder %v261_v59, 0.0  ;;  %v1156_v5 = vpack.c.bf16 %v451_v4, %v450_v61  ;;  %v388_v6 = vmul.f32 0.2, %v260_v58 }
  0x46   :  { %v389_v8 = vmul.f32 0.2, %v261_v59  ;;  %v192_v9 = vmul.f32 %v1017_v62, %v1306_v1  ;;  %1266 = vst [vmem:[%s1634_s3 + $0x90] sm:$0xff] %v1151_v3   ;;  %v262_v10 = vadd.f32 %v1320_v7, %v191_v63  ;;  %v1020_v11 = vunpack.c.l.bf16 %v1239_v0 }
  0x47   :  { %v1021_v12 = vunpack.c.h.bf16 %v1239_v0  ;;  %v1024_v13 = vunpack.c.l.bf16 %v1240_v2  ;;  %1267 = vst [vmem:[%s1634_s3 + $0x98] sm:$0xff] %v1156_v5   ;;  %v452_v14 = vsel %vm324_vm8, %v260_v58, %v388_v6  ;;  %v1025_v17 = vunpack.c.h.bf16 %v1240_v2 }
  0x48   :  { %v453_v15 = vsel %vm325_vm9, %v261_v59, %v389_v8  ;;  %v263_v16 = vadd.f32 %v1320_v7, %v192_v9  ;;  %vm326_vm10 = vcmp.gt.f32.partialorder %v262_v10, 0.0  ;;  %v390_v20 = vmul.f32 0.2, %v262_v10 }
  0x49   :  { %v1161_v19 = vpack.c.bf16 %v453_v15, %v452_v14  ;;  %v193_v21 = vmul.f32 %v1020_v11, %v1306_v1  ;;  %v194_v23 = vmul.f32 %v1021_v12, %v1306_v1  ;;  %v195_v24 = vmul.f32 %v1024_v13, %v1306_v1  ;;  %v1246_v14 = vld [vmem:[%s1631_s0 + $0xe8] sm:$0xff]  }
  0x4a   :  { %vm327_vm11 = vcmp.gt.f32.partialorder %v263_v16, 0.0  ;;  %v391_v22 = vmul.f32 0.2, %v263_v16  ;;  %v454_v25 = vsel %vm326_vm10, %v262_v10, %v390_v20  ;;  %v196_v27 = vmul.f32 %v1025_v17, %v1306_v1  ;;  %v1245_v10 = vld [vmem:[%s1631_s0 + $0xe0] sm:$0xff]  }
  0x4b   :  { %1268 = vst [vmem:[%s1634_s3 + $0xa0] sm:$0xff] %v1161_v19   ;;  %v264_v26 = vadd.f32 %v1320_v7, %v193_v21  ;;  %v1028_v28 = vunpack.c.l.bf16 %v1241_v18  ;;  %v265_v30 = vadd.f32 %v1320_v7, %v194_v23  ;;  %v266_v31 = vadd.f32 %v1320_v7, %v195_v24 }
  0x4c   :  { %v455_v29 = vsel %vm327_vm11, %v263_v16, %v391_v22  ;;  %v1029_v32 = vunpack.c.h.bf16 %v1241_v18  ;;  %v267_v35 = vadd.f32 %v1320_v7, %v196_v27  ;;  %v1032_v46 = vunpack.c.l.bf16 %v1242_v36 }
  0x4d   :  { %v1166_v33 = vpack.c.bf16 %v455_v29, %v454_v25  ;;  %vm328_vm12 = vcmp.gt.f32.partialorder %v264_v26, 0.0  ;;  %v392_v34 = vmul.f32 0.2, %v264_v26  ;;  %vm329_vm13 = vcmp.gt.f32.partialorder %v265_v30, 0.0 }
  0x4e   :  { %v393_v37 = vmul.f32 0.2, %v265_v30  ;;  %vm330_vm14 = vcmp.gt.f32.partialorder %v266_v31, 0.0  ;;  %v394_v38 = vmul.f32 0.2, %v266_v31  ;;  %vm331_vm15 = vcmp.gt.f32.partialorder %v267_v35, 0.0 }
  0x4f   :  { %1269 = vst [vmem:[%s1634_s3 + $0xa8] sm:$0xff] %v1166_v33   ;;  %v456_v39 = vsel %vm328_vm12, %v264_v26, %v392_v34  ;;  %v395_v40 = vmul.f32 0.2, %v267_v35  ;;  %v197_v41 = vmul.f32 %v1028_v28, %v1306_v1  ;;  %v198_v45 = vmul.f32 %v1029_v32, %v1306_v1 }
  0x50   :  { %v457_v43 = vsel %vm329_vm13, %v265_v30, %v393_v37  ;;  %v458_v44 = vsel %vm330_vm14, %v266_v31, %v394_v38  ;;  %v1033_v50 = vunpack.c.h.bf16 %v1242_v36  ;;  %v199_v53 = vmul.f32 %v1032_v46, %v1306_v1  ;;  %v1247_v30 = vld [vmem:[%s1631_s0 + $0xf0] sm:$0xff]  }
  0x51   :  { %v1171_v47 = vpack.c.bf16 %v457_v43, %v456_v39  ;;  %v459_v48 = vsel %vm331_vm15, %v267_v35, %v395_v40  ;;  %v268_v49 = vadd.f32 %v1320_v7, %v197_v41  ;;  %v269_v52 = vadd.f32 %v1320_v7, %v198_v45 }
  0x52   :  { %v1176_v51 = vpack.c.bf16 %v459_v48, %v458_v44  ;;  %v1036_v54 = vunpack.c.l.bf16 %v1243_v42  ;;  %v200_v57 = vmul.f32 %v1033_v50, %v1306_v1  ;;  %v1037_v58 = vunpack.c.h.bf16 %v1243_v42  ;;  %v1248_v44 = vld [vmem:[%s1631_s0 + $0xf8] sm:$0xff]  }
  0x53   :  { %1270 = vst [vmem:[%s1634_s3 + $0xb0] sm:$0xff] %v1171_v47   ;;  %vm332_vm0 = vcmp.gt.f32.partialorder %v268_v49, 0.0  ;;  %v396_v56 = vmul.f32 0.2, %v268_v49  ;;  %vm333_vm1 = vcmp.gt.f32.partialorder %v269_v52, 0.0  ;;  %v270_v60 = vadd.f32 %v1320_v7, %v199_v53 }
  0x54   :  { %1271 = vst [vmem:[%s1634_s3 + $0xb8] sm:$0xff] %v1176_v51   ;;  %v397_v59 = vmul.f32 0.2, %v269_v52  ;;  %v201_v61 = vmul.f32 %v1036_v54, %v1306_v1  ;;  %v271_v63 = vadd.f32 %v1320_v7, %v200_v57  ;;  %v202_v0 = vmul.f32 %v1037_v58, %v1306_v1 }
  0x55   :  { %v460_v62 = vsel %vm332_vm0, %v268_v49, %v396_v56  ;;  %v1040_v2 = vunpack.c.l.bf16 %v1244_v55  ;;  %vm334_vm2 = vcmp.gt.f32.partialorder %v270_v60, 0.0  ;;  %v398_v4 = vmul.f32 0.2, %v270_v60 }
  0x56   :  { %v461_v3 = vsel %vm333_vm1, %v269_v52, %v397_v59  ;;  %v272_v5 = vadd.f32 %v1320_v7, %v201_v61  ;;  %vm335_vm3 = vcmp.gt.f32.partialorder %v271_v63, 0.0  ;;  %v399_v8 = vmul.f32 0.2, %v271_v63 }
  0x57   :  { %v1181_v6 = vpack.c.bf16 %v461_v3, %v460_v62  ;;  %v273_v9 = vadd.f32 %v1320_v7, %v202_v0  ;;  %v462_v11 = vsel %vm334_vm2, %v270_v60, %v398_v4  ;;  %v1041_v13 = vunpack.c.h.bf16 %v1244_v55 }
  0x58   :  { %vm336_vm4 = vcmp.gt.f32.partialorder %v272_v5, 0.0  ;;  %v400_v12 = vmul.f32 0.2, %v272_v5  ;;  %v463_v15 = vsel %vm335_vm3, %v271_v63, %v399_v8  ;;  %v203_v17 = vmul.f32 %v1040_v2, %v1306_v1 }
  0x59   :  { %1272 = vst [vmem:[%s1634_s3 + $0xc0] sm:$0xff] %v1181_v6   ;;  %vm337_vm5 = vcmp.gt.f32.partialorder %v273_v9, 0.0  ;;  %v401_v16 = vmul.f32 0.2, %v273_v9  ;;  %v1186_v18 = vpack.c.bf16 %v463_v15, %v462_v11  ;;  %v204_v20 = vmul.f32 %v1041_v13, %v1306_v1 }
  0x5a   :  { %v464_v19 = vsel %vm336_vm4, %v272_v5, %v400_v12  ;;  %v1044_v21 = vunpack.c.l.bf16 %v1245_v10  ;;  %v274_v23 = vadd.f32 %v1320_v7, %v203_v17  ;;  %v1045_v24 = vunpack.c.h.bf16 %v1245_v10 }
  0x5b   :  { %v465_v22 = vsel %vm337_vm5, %v273_v9, %v401_v16  ;;  %v1048_v25 = vunpack.c.l.bf16 %v1246_v14  ;;  %1273 = vst [vmem:[%s1634_s3 + $0xc8] sm:$0xff] %v1186_v18   ;;  %v275_v27 = vadd.f32 %v1320_v7, %v204_v20  ;;  %v1049_v29 = vunpack.c.h.bf16 %v1246_v14 }
  0x5c   :  { %v1191_v26 = vpack.c.bf16 %v465_v22, %v464_v19  ;;  %v205_v28 = vmul.f32 %v1044_v21, %v1306_v1  ;;  %vm338_vm6 = vcmp.gt.f32.partialorder %v274_v23, 0.0  ;;  %v402_v31 = vmul.f32 0.2, %v274_v23 }
  0x5d   :  { %v206_v32 = vmul.f32 %v1045_v24, %v1306_v1  ;;  %v207_v33 = vmul.f32 %v1048_v25, %v1306_v1  ;;  %vm339_vm7 = vcmp.gt.f32.partialorder %v275_v27, 0.0  ;;  %v403_v34 = vmul.f32 0.2, %v275_v27 }
  0x5e   :  { %1274 = vst [vmem:[%s1634_s3 + $0xd0] sm:$0xff] %v1191_v26   ;;  %v276_v35 = vadd.f32 %v1320_v7, %v205_v28  ;;  %v208_v36 = vmul.f32 %v1049_v29, %v1306_v1  ;;  %v466_v37 = vsel %vm338_vm6, %v274_v23, %v402_v31  ;;  %v1052_v40 = vunpack.c.l.bf16 %v1247_v30 }
  0x5f   :  { %v277_v38 = vadd.f32 %v1320_v7, %v206_v32  ;;  %v278_v39 = vadd.f32 %v1320_v7, %v207_v33  ;;  %v467_v41 = vsel %vm339_vm7, %v275_v27, %v403_v34  ;;  %v1053_v51 = vunpack.c.h.bf16 %v1247_v30 }
  0x60   :  { %vm340_vm8 = vcmp.gt.f32.partialorder %v276_v35, 0.0  ;;  %v404_v42 = vmul.f32 0.2, %v276_v35  ;;  %v279_v43 = vadd.f32 %v1320_v7, %v208_v36  ;;  %v1196_v45 = vpack.c.bf16 %v467_v41, %v466_v37 }
  0x61   :  { %vm341_vm9 = vcmp.gt.f32.partialorder %v277_v38, 0.0  ;;  %v405_v46 = vmul.f32 0.2, %v277_v38  ;;  %vm342_vm10 = vcmp.gt.f32.partialorder %v278_v39, 0.0  ;;  %v406_v48 = vmul.f32 0.2, %v278_v39 }
  0x62   :  { %v468_v47 = vsel %vm340_vm8, %v276_v35, %v404_v42  ;;  %vm343_vm11 = vcmp.gt.f32.partialorder %v279_v43, 0.0  ;;  %v407_v49 = vmul.f32 0.2, %v279_v43  ;;  %1275 = vst [vmem:[%s1634_s3 + $0xd8] sm:$0xff] %v1196_v45   ;;  %v209_v52 = vmul.f32 %v1052_v40, %v1306_v1 }
  0x63   :  { %v469_v50 = vsel %vm341_vm9, %v277_v38, %v405_v46  ;;  %v1056_v53 = vunpack.c.l.bf16 %v1248_v44  ;;  %v470_v55 = vsel %vm342_vm10, %v278_v39, %v406_v48  ;;  %v1057_v57 = vunpack.c.h.bf16 %v1248_v44 }
  0x64   :  { %v1201_v54 = vpack.c.bf16 %v469_v50, %v468_v47  ;;  %v471_v56 = vsel %vm343_vm11, %v279_v43, %v407_v49  ;;  %v210_v59 = vmul.f32 %v1053_v51, %v1306_v1  ;;  %v280_v60 = vadd.f32 %v1320_v7, %v209_v52 }
  0x65   :  { %v1206_v58 = vpack.c.bf16 %v471_v56, %v470_v55  ;;  %v211_v61 = vmul.f32 %v1056_v53, %v1306_v1  ;;  %v212_v62 = vmul.f32 %v1057_v57, %v1306_v1 }
  0x66   :  { %1276 = vst [vmem:[%s1634_s3 + $0xe0] sm:$0xff] %v1201_v54   ;;  %v281_v63 = vadd.f32 %v1320_v7, %v210_v59  ;;  %vm344_vm12 = vcmp.gt.f32.partialorder %v280_v60, 0.0  ;;  %v408_v0 = vmul.f32 0.2, %v280_v60 }
  0x67   :  { %1277 = vst [vmem:[%s1634_s3 + $0xe8] sm:$0xff] %v1206_v58   ;;  %v282_v2 = vadd.f32 %v1320_v7, %v211_v61  ;;  %v283_v3 = vadd.f32 %v1320_v7, %v212_v62 }
  0x68   :  { %vm345_vm13 = vcmp.gt.f32.partialorder %v281_v63, 0.0  ;;  %v409_v4 = vmul.f32 0.2, %v281_v63  ;;  %v472_v5 = vsel %vm344_vm12, %v280_v60, %v408_v0 }
  0x69   :  { %vm346_vm14 = vcmp.gt.f32.partialorder %v282_v2, 0.0  ;;  %vm347_vm15 = vcmp.gt.f32.partialorder %v283_v3, 0.0  ;;  %v410_v6 = vmul.f32 0.2, %v282_v2  ;;  %v411_v8 = vmul.f32 0.2, %v283_v3 }
  0x6a   :  { %v473_v1 = vsel %vm345_vm13, %v281_v63, %v409_v4 }
  0x6b   :  { %v1211_v9 = vpack.c.bf16 %v473_v1, %v472_v5  ;;  %v474_v10 = vsel %vm346_vm14, %v282_v2, %v410_v6  ;;  %v475_v11 = vsel %vm347_vm15, %v283_v3, %v411_v8 }
  0x6c   :  { %v1216_v12 = vpack.c.bf16 %v475_v11, %v474_v10 }
  0x6d   :  { %1278 = vst [vmem:[%s1634_s3 + $0xf0] sm:$0xff] %v1211_v9  }
  0x6e   :  { %1279 = vst [vmem:[%s1634_s3 + $0xf8] sm:$0xff] %v1216_v12  }

// kernel: discriminator_forward.11
= control target key start
LH: loop header
LB: loop body
LE: loop exit
PB: predicated region body
PF: predicated region fallthrough
CT: control target
= control target key end

     0   :  { %s975_s1 = inlined_call_operand.vmem [shape: bf16[256,128], index: 1, kind: input, shape index: {}]   ;;  %s976_s0 = inlined_call_operand.vmem [shape: bf16[128,256], index: 0, kind: input, shape index: {}]   ;;  %s977_s2 = inlined_call_operand.vmem [shape: bf16[128,128], index: 2, kind: output, shape index: {0}]   ;;  %s978_s3 = inlined_call_operand.vmem [shape: f32[1,1,128], index: 3, kind: output, shape index: {1}]   ;;  %s979_s4 = inlined_call_operand.vmem [shape: f32[1,1,128], index: 4, kind: output, shape index: {2}]  }
   0x1   :  { %v766_v0 = vld [vmem:[%s975_s1 + $0x40] sm:$0xff]   ;;  %v768_v2 = vld [vmem:[%s975_s1 + $0x48] sm:$0xff]   ;;  %v770_v4 = vld [vmem:[%s975_s1 + $0x50] sm:$0xff]  }
   0x2   :  { %v767_v1 = vld [vmem:[%s975_s1] sm:$0xff]   ;;  %686 = vmatprep.subr.bf16.mxu0 %v766_v0  ;;  %750 = vmatprep.subr.bf16.mxu1 %v766_v0  ;;  %v769_v3 = vld [vmem:[%s975_s1 + $0x8] sm:$0xff]   ;;  %v771_v5 = vld [vmem:[%s975_s1 + $0x10] sm:$0xff]  }
   0x3   :  { %687 = vmatpush3.bf16.msra.mxu0 %v767_v1  ;;  %758 = vmatpush3.bf16.msra.mxu1 %v767_v1  ;;  %v772_v6 = vld [vmem:[%s975_s1 + $0x58] sm:$0xff]   ;;  %v774_v8 = vld [vmem:[%s975_s1 + $0x60] sm:$0xff]   ;;  %v776_v10 = vld [vmem:[%s975_s1 + $0x68] sm:$0xff]  }
   0x4   :  { %688 = vmatprep.subr.bf16.mxu0 %v768_v2  ;;  %751 = vmatprep.subr.bf16.mxu1 %v768_v2  ;;  %v773_v7 = vld [vmem:[%s975_s1 + $0x18] sm:$0xff]   ;;  %v775_v9 = vld [vmem:[%s975_s1 + $0x20] sm:$0xff]   ;;  %v777_v12 = vld [vmem:[%s975_s1 + $0x28] sm:$0xff]  }
   0x5   :  { %v784_v11 = vld [vmem:[%s976_s0 + $0x4] ss:$8 sps:$4 sm:$0xff]   ;;  %v778_v14 = vld [vmem:[%s975_s1 + $0x70] sm:$0xff]   ;;  %v780_v16 = vld [vmem:[%s975_s1 + $0x78] sm:$0xff]  }
   0x6   :  { %v790_v13 = vld [vmem:[%s976_s0 + $0x44] ss:$8 sps:$4 sm:$0xff]   ;;  %307 = vmatprep.mubr.bf16.mxu0 %v784_v11  ;;  %v779_v15 = vld [vmem:[%s975_s1 + $0x30] sm:$0xff]   ;;  %v781_v17 = vld [vmem:[%s975_s1 + $0x38] sm:$0xff]  }
   0x7   :  { %689 = vmatpush3.bf16.msra.mxu0 %v769_v3  ;;  %759 = vmatpush3.bf16.msra.mxu1 %v769_v3  ;;  %v782_v18 = vld [vmem:[%s976_s0] ss:$8 sps:$4 sm:$0xff]   ;;  %v785_v20 = vld [vmem:[%s976_s0 + $0x14] ss:$8 sps:$4 sm:$0xff]   ;;  %v787_v22 = vld [vmem:[%s976_s0 + $0x10] ss:$8 sps:$4 sm:$0xff]  }
   0x8   :  { %690 = vmatprep.subr.bf16.mxu0 %v770_v4  ;;  %752 = vmatprep.subr.bf16.mxu1 %v770_v4  ;;  %v788_v19 = vld [vmem:[%s976_s0 + $0x40] ss:$8 sps:$4 sm:$0xff]   ;;  %v794_v21 = vld [vmem:[%s976_s0 + $0x54] ss:$8 sps:$4 sm:$0xff]   ;;  %v796_v23 = vld [vmem:[%s976_s0 + $0x50] ss:$8 sps:$4 sm:$0xff]  }
   0x9   :  { %339 = vmatprep.mubr.bf16.mxu1 %v790_v13  ;;  %v791_v24 = vld [vmem:[%s976_s0 + $0x24] ss:$8 sps:$4 sm:$0xff]   ;;  %v793_v26 = vld [vmem:[%s976_s0 + $0x20] ss:$8 sps:$4 sm:$0xff]   ;;  %v797_v28 = vld [vmem:[%s976_s0 + $0x34] ss:$8 sps:$4 sm:$0xff]  }
   0xa   :  { %v800_v25 = vld [vmem:[%s976_s0 + $0x64] ss:$8 sps:$4 sm:$0xff]   ;;  %v802_v27 = vld [vmem:[%s976_s0 + $0x60] ss:$8 sps:$4 sm:$0xff]   ;;  %v803_v29 = vld [vmem:[%s976_s0 + $0x74] ss:$8 sps:$4 sm:$0xff]  }
   0xb   :  { %691 = vmatpush3.bf16.msra.mxu0 %v771_v5  ;;  %760 = vmatpush3.bf16.msra.mxu1 %v771_v5  ;;  %v799_v30 = vld [vmem:[%s976_s0 + $0x30] ss:$8 sps:$4 sm:$0xff]  }
   0xc   :  { %692 = vmatprep.subr.bf16.mxu0 %v772_v6  ;;  %753 = vmatprep.subr.bf16.mxu1 %v772_v6  ;;  %v805_v31 = vld [vmem:[%s976_s0 + $0x70] ss:$8 sps:$4 sm:$0xff]  }
   0xf   :  { %693 = vmatpush3.bf16.msra.mxu0 %v773_v7  ;;  %761 = vmatpush3.bf16.msra.mxu1 %v773_v7 }
  0x10   :  { %694 = vmatprep.subr.bf16.mxu0 %v774_v8  ;;  %754 = vmatprep.subr.bf16.mxu1 %v774_v8 }
  0x13   :  { %695 = vmatpush3.bf16.msra.mxu0 %v775_v9  ;;  %762 = vmatpush3.bf16.msra.mxu1 %v775_v9 }
  0x14   :  { %696 = vmatprep.subr.bf16.mxu0 %v776_v10  ;;  %755 = vmatprep.subr.bf16.mxu1 %v776_v10 }
  0x17   :  { %697 = vmatpush3.bf16.msra.mxu0 %v777_v12  ;;  %763 = vmatpush3.bf16.msra.mxu1 %v777_v12 }
  0x18   :  { %698 = vmatprep.subr.bf16.mxu0 %v778_v14  ;;  %756 = vmatprep.subr.bf16.mxu1 %v778_v14 }
  0x1b   :  { %699 = vmatpush3.bf16.msra.mxu0 %v779_v15  ;;  %764 = vmatpush3.bf16.msra.mxu1 %v779_v15 }
  0x1c   :  { %700 = vmatprep.subr.bf16.mxu0 %v780_v16  ;;  %757 = vmatprep.subr.bf16.mxu1 %v780_v16 }
  0x1f   :  { %701 = vmatpush3.bf16.msra.mxu0 %v781_v17  ;;  %765 = vmatpush3.bf16.msra.mxu1 %v781_v17 }
  0x22   :  { %308 = vmatmul.mubr.bf16.vlgmr.msra.gmra.mrb[0].mxu0 %v782_v18  ;;  %340 = vmatmul.mubr.bf16.vlgmr.msra.gmra.mrb[0].mxu1 %v788_v19 }
  0x23   :  { %315 = vmatprep.mubr.bf16.mxu0 %v785_v20  ;;  %347 = vmatprep.mubr.bf16.mxu1 %v794_v21 }
  0x2a   :  { %316 = vmatmul.mubr.bf16.gmra.mrb[4].mxu0 %v787_v22  ;;  %348 = vmatmul.mubr.bf16.gmra.mrb[4].mxu1 %v796_v23 }
  0x2b   :  { %323 = vmatprep.mubr.bf16.mxu0 %v791_v24  ;;  %355 = vmatprep.mubr.bf16.mxu1 %v800_v25 }
  0x32   :  { %324 = vmatmul.mubr.bf16.gmra.mrb[8].mxu0 %v793_v26  ;;  %356 = vmatmul.mubr.bf16.gmra.mrb[8].mxu1 %v802_v27 }
  0x33   :  { %331 = vmatprep.mubr.bf16.mxu0 %v797_v28  ;;  %363 = vmatprep.mubr.bf16.mxu1 %v803_v29 }
  0x3a   :  { %332 = vmatmul.mubr.bf16.gmra.mrb[12].mxu0 %v799_v30  ;;  %364 = vmatmul.mubr.bf16.gmra.mrb[12].mxu1 %v805_v31 }
  0xf5   :  { %v702_v32 = vpop.f32.mrb[0].mxu0  ;;  %v726_v33 = vpop.f32.mrb[0].mxu1 }
  0xf6   :  { %v703_v34 = vpop.f32.mrb[1].mxu0  ;;  %v727_v35 = vpop.f32.mrb[1].mxu1 }
  0xf7   :  { %v704_v36 = vadd.f32 %v703_v34, %v702_v32  ;;  %v705_v37 = vpop.f32.mrb[2].mxu0  ;;  %v927_v38 = vadd.f32 %v727_v35, %v726_v33  ;;  %v729_v39 = vpop.f32.mrb[2].mxu1 }
  0xf8   :  { %v706_v40 = vpop.f32.mrb[3].mxu0  ;;  %v730_v41 = vpop.f32.mrb[3].mxu1 }
  0xf9   :  { %v707_v42 = vadd.f32 %v706_v40, %v705_v37  ;;  %v929_v43 = vadd.f32 %v730_v41, %v729_v39  ;;  %v525_v44 = vmul.f32 %v704_v36, %v704_v36 }
  0xfb   :  { %v642_v45 = vpack.c.bf16 %v707_v42, %v704_v36  ;;  %v503_v46 = vadd.f32 %v707_v42, %v704_v36  ;;  %v526_v47 = vmul.f32 %v707_v42, %v707_v42  ;;  %v662_v48 = vpack.c.bf16 %v929_v43, %v927_v38 }
  0xfd   :  { %643 = vst [vmem:[%s977_s2] sm:$0xff] %v642_v45   ;;  %v541_v49 = vadd.f32 %v526_v47, %v525_v44  ;;  %v708_v50 = vpop.f32.mrb[4].mxu0  ;;  %682 = vst [vmem:[%s977_s2 + $0x20] sm:$0xff] %v662_v48   ;;  %v732_v51 = vpop.f32.mrb[4].mxu1  ;;  %v533_v47 = vmul.f32 %v927_v38, %v927_v38 }
  0xfe   :  { %v709_v52 = vpop.f32.mrb[5].mxu0  ;;  %v733_v53 = vpop.f32.mrb[5].mxu1 }
  0xff   :  { %v710_v54 = vadd.f32 %v709_v52, %v708_v50  ;;  %v711_v55 = vpop.f32.mrb[6].mxu0  ;;  %v939_v56 = vadd.f32 %v733_v53, %v732_v51  ;;  %v735_v57 = vpop.f32.mrb[6].mxu1  ;;  %v534_v50 = vmul.f32 %v929_v43, %v929_v43 }
 0x100   :  { %v712_v58 = vpop.f32.mrb[7].mxu0  ;;  %v736_v59 = vpop.f32.mrb[7].mxu1 }
 0x101   :  { %v504_v60 = vadd.f32 %v710_v54, %v503_v46  ;;  %v527_v61 = vmul.f32 %v710_v54, %v710_v54  ;;  %v713_v62 = vadd.f32 %v712_v58, %v711_v55  ;;  %v737_v63 = vadd.f32 %v736_v59, %v735_v57 }
 0x102   :  { %v535_v53 = vmul.f32 %v939_v56, %v939_v56 }
 0x103   :  { %v542_v0 = vadd.f32 %v541_v49, %v527_v61  ;;  %v647_v1 = vpack.c.bf16 %v713_v62, %v710_v54  ;;  %v505_v2 = vadd.f32 %v713_v62, %v504_v60  ;;  %v528_v3 = vmul.f32 %v713_v62, %v713_v62 }
 0x104   :  { %v667_v4 = vpack.c.bf16 %v737_v63, %v939_v56  ;;  %v536_v57 = vmul.f32 %v737_v63, %v737_v63 }
 0x105   :  { %679 = vst [vmem:[%s977_s2 + $0x8] sm:$0xff] %v647_v1   ;;  %v543_v5 = vadd.f32 %v542_v0, %v528_v3  ;;  %v714_v6 = vpop.f32.mrb[8].mxu0  ;;  %v738_v7 = vpop.f32.mrb[8].mxu1 }
 0x106   :  { %v715_v8 = vpop.f32.mrb[9].mxu0  ;;  %683 = vst [vmem:[%s977_s2 + $0x28] sm:$0xff] %v667_v4   ;;  %v739_v9 = vpop.f32.mrb[9].mxu1 }
 0x107   :  { %v716_v10 = vadd.f32 %v715_v8, %v714_v6  ;;  %v717_v11 = vpop.f32.mrb[10].mxu0  ;;  %v740_v12 = vadd.f32 %v739_v9, %v738_v7  ;;  %v741_v13 = vpop.f32.mrb[10].mxu1 }
 0x108   :  { %v718_v14 = vpop.f32.mrb[11].mxu0  ;;  %v742_v15 = vpop.f32.mrb[11].mxu1 }
 0x109   :  { %v506_v16 = vadd.f32 %v716_v10, %v505_v2  ;;  %v529_v17 = vmul.f32 %v716_v10, %v716_v10  ;;  %v719_v18 = vadd.f32 %v718_v14, %v717_v11  ;;  %v743_v19 = vadd.f32 %v742_v15, %v741_v13 }
 0x10a   :  { %v537_v60 = vmul.f32 %v740_v12, %v740_v12 }
 0x10b   :  { %v544_v20 = vadd.f32 %v543_v5, %v529_v17  ;;  %v652_v21 = vpack.c.bf16 %v719_v18, %v716_v10  ;;  %v507_v22 = vadd.f32 %v719_v18, %v506_v16  ;;  %v530_v23 = vmul.f32 %v719_v18, %v719_v18 }
 0x10c   :  { %v672_v24 = vpack.c.bf16 %v743_v19, %v740_v12  ;;  %v538_v1 = vmul.f32 %v743_v19, %v743_v19 }
 0x10d   :  { %680 = vst [vmem:[%s977_s2 + $0x10] sm:$0xff] %v652_v21   ;;  %v545_v25 = vadd.f32 %v544_v20, %v530_v23  ;;  %v720_v26 = vpop.f32.mrb[12].mxu0  ;;  %v744_v27 = vpop.f32.mrb[12].mxu1 }
 0x10e   :  { %v721_v28 = vpop.f32.mrb[13].mxu0  ;;  %684 = vst [vmem:[%s977_s2 + $0x30] sm:$0xff] %v672_v24   ;;  %v745_v29 = vpop.f32.mrb[13].mxu1 }
 0x10f   :  { %v722_v30 = vadd.f32 %v721_v28, %v720_v26  ;;  %v723_v31 = vpop.f32.mrb[14].mxu0  ;;  %v746_v32 = vadd.f32 %v745_v29, %v744_v27  ;;  %v747_v33 = vpop.f32.mrb[14].mxu1 }
 0x110   :  { %v724_v34 = vpop.f32.mrb[15].mxu0  ;;  %v748_v35 = vpop.f32.mrb[15].mxu1 }
 0x111   :  { %v508_v36 = vadd.f32 %v722_v30, %v507_v22  ;;  %v531_v37 = vmul.f32 %v722_v30, %v722_v30  ;;  %v725_v39 = vadd.f32 %v724_v34, %v723_v31  ;;  %v749_v40 = vadd.f32 %v748_v35, %v747_v33 }
 0x112   :  { %v539_v2 = vmul.f32 %v746_v32, %v746_v32 }
 0x113   :  { %v546_v41 = vadd.f32 %v545_v25, %v531_v37  ;;  %v657_v42 = vpack.c.bf16 %v725_v39, %v722_v30  ;;  %v509_v44 = vadd.f32 %v725_v39, %v508_v36  ;;  %v532_v45 = vmul.f32 %v725_v39, %v725_v39 }
 0x114   :  { %v677_v46 = vpack.c.bf16 %v749_v40, %v746_v32  ;;  %v540_v6 = vmul.f32 %v749_v40, %v749_v40 }
 0x115   :  { %681 = vst [vmem:[%s977_s2 + $0x18] sm:$0xff] %v657_v42   ;;  %v510_v48 = vadd.f32 %v927_v38, %v509_v44  ;;  %v547_v49 = vadd.f32 %v546_v41, %v532_v45 }
 0x116   :  { %685 = vst [vmem:[%s977_s2 + $0x38] sm:$0xff] %v677_v46  }
 0x117   :  { %v511_v51 = vadd.f32 %v929_v43, %v510_v48  ;;  %v548_v52 = vadd.f32 %v547_v49, %v533_v47 }
 0x119   :  { %v549_v54 = vadd.f32 %v548_v52, %v534_v50  ;;  %v512_v55 = vadd.f32 %v939_v56, %v511_v51 }
 0x11b   :  { %v513_v58 = vadd.f32 %v737_v63, %v512_v55  ;;  %v550_v38 = vadd.f32 %v549_v54, %v535_v53 }
 0x11d   :  { %v514_v59 = vadd.f32 %v740_v12, %v513_v58  ;;  %v551_v61 = vadd.f32 %v550_v38, %v536_v57 }
 0x11f   :  { %v552_v62 = vadd.f32 %v551_v61, %v537_v60  ;;  %v515_v0 = vadd.f32 %v743_v19, %v514_v59 }
 0x121   :  { %v553_v3 = vadd.f32 %v552_v62, %v538_v1  ;;  %v516_v4 = vadd.f32 %v746_v32, %v515_v0 }
 0x123   :  { %v554_v43 = vadd.f32 %v553_v3, %v539_v2  ;;  %v517_v5 = vadd.f32 %v749_v40, %v516_v4 }
 0x125   :  { %v518_v7 = vrot.slane %v517_v5, 4  ;;  %v555_v8 = vadd.f32 %v554_v43, %v540_v6 }
 0x127   :  { %v519_v9 = vadd.f32 %v518_v7, %v517_v5  ;;  %v556_v10 = vrot.slane %v555_v8, 4 }
 0x129   :  { %v520_v56 = vrot.slane %v519_v9, 2  ;;  %v557_v11 = vadd.f32 %v556_v10, %v555_v8 }
 0x12b   :  { %v521_v63 = vadd.f32 %v520_v56, %v519_v9  ;;  %v558_v13 = vrot.slane %v557_v11, 2 }
 0x12d   :  { %v522_v14 = vrot.slane %v521_v63, 1  ;;  %v559_v12 = vadd.f32 %v558_v13, %v557_v11 }
 0x12f   :  { %v523_v15 = vadd.f32 %v522_v14, %v521_v63  ;;  %v560_v16 = vrot.slane %v559_v12, 1 }
 0x131   :  { %524 = vst [vmem:[%s978_s3] sm:$0x1] %v523_v15  ;;  %v561_v17 = vadd.f32 %v560_v16, %v559_v12 }
 0x133   :  { %562 = vst [vmem:[%s979_s4] sm:$0x1] %v561_v17 }

// kernel: discriminator_forward.12
= control target key start
LH: loop header
LB: loop body
LE: loop exit
PB: predicated region body
PF: predicated region fallthrough
CT: control target
= control target key end

     0   :  { %s455_s0 = inlined_call_operand.vmem [shape: bf16[128,128], index: 0, kind: input, shape index: {}]   ;;  %s456_s1 = inlined_call_operand.vmem [shape: f32[1,128], index: 1, kind: input, shape index: {}]   ;;  %s457_s2 = inlined_call_operand.vmem [shape: f32[1,128], index: 2, kind: input, shape index: {}]   ;;  %s458_s3 = inlined_call_operand.vmem [shape: bf16[128,128], index: 3, kind: output, shape index: {}]  }
   0x1   :  { %v259_v0 = vld [vmem:[%s455_s0] sm:$0xff]   ;;  %v330_v4 = vld [vmem:[%s455_s0 + $0x8] sm:$0xff]   ;;  %v331_v5 = vld [vmem:[%s455_s0 + $0x10] sm:$0xff]  }
   0x2   :  { %v370_v1 = vld [vmem:[%s456_s1] ss:$0 sm:$0xff]  ;;  %v260_v2 = vunpack.c.l.bf16 %v259_v0  ;;  %v261_v3 = vunpack.c.h.bf16 %v259_v0  ;;  %v332_v6 = vld [vmem:[%s455_s0 + $0x18] sm:$0xff]   ;;  %v264_v8 = vunpack.c.l.bf16 %v330_v4  ;;  %v265_v9 = vunpack.c.h.bf16 %v330_v4  ;;  %v334_v35 = vld [vmem:[%s455_s0 + $0x28] sm:$0xff]  }
   0x3   :  { %v384_v7 = vld [vmem:[%s457_s2] ss:$0 sm:$0xff]  ;;  %v268_v10 = vunpack.c.l.bf16 %v331_v5  ;;  %v269_v11 = vunpack.c.h.bf16 %v331_v5  ;;  %v272_v14 = vunpack.c.l.bf16 %v332_v6  ;;  %v273_v15 = vunpack.c.h.bf16 %v332_v6  ;;  %v335_v48 = vld [vmem:[%s455_s0 + $0x30] sm:$0xff]   ;;  %v336_v4 = vld [vmem:[%s455_s0 + $0x38] sm:$0xff]  }
   0x4   :  { %v53_v12 = vmul.f32 %v260_v2, %v370_v1  ;;  %v54_v13 = vmul.f32 %v261_v3, %v370_v1  ;;  %v55_v16 = vmul.f32 %v264_v8, %v370_v1  ;;  %v56_v17 = vmul.f32 %v265_v9, %v370_v1  ;;  %v333_v34 = vld [vmem:[%s455_s0 + $0x20] sm:$0xff]  }
   0x5   :  { %v57_v18 = vmul.f32 %v268_v10, %v370_v1  ;;  %v58_v19 = vmul.f32 %v269_v11, %v370_v1  ;;  %v59_v22 = vmul.f32 %v272_v14, %v370_v1  ;;  %v60_v23 = vmul.f32 %v273_v15, %v370_v1 }
   0x6   :  { %v76_v20 = vadd.f32 %v384_v7, %v53_v12  ;;  %v77_v21 = vadd.f32 %v384_v7, %v54_v13  ;;  %v78_v24 = vadd.f32 %v384_v7, %v55_v16  ;;  %v79_v25 = vadd.f32 %v384_v7, %v56_v17 }
   0x7   :  { %v80_v26 = vadd.f32 %v384_v7, %v57_v18  ;;  %v81_v27 = vadd.f32 %v384_v7, %v58_v19  ;;  %v82_v42 = vadd.f32 %v384_v7, %v59_v22  ;;  %v83_v43 = vadd.f32 %v384_v7, %v60_v23 }
   0x8   :  { %vm92_vm0 = vcmp.gt.f32.partialorder %v76_v20, 0.0  ;;  %vm93_vm1 = vcmp.gt.f32.partialorder %v77_v21, 0.0  ;;  %v108_v28 = vmul.f32 0.2, %v76_v20  ;;  %v109_v29 = vmul.f32 0.2, %v77_v21 }
   0x9   :  { %vm94_vm2 = vcmp.gt.f32.partialorder %v78_v24, 0.0  ;;  %vm95_vm3 = vcmp.gt.f32.partialorder %v79_v25, 0.0  ;;  %v110_v30 = vmul.f32 0.2, %v78_v24  ;;  %v111_v31 = vmul.f32 0.2, %v79_v25 }
   0xa   :  { %v124_v32 = vsel %vm92_vm0, %v76_v20, %v108_v28  ;;  %v125_v33 = vsel %vm93_vm1, %v77_v21, %v109_v29  ;;  %vm96_vm4 = vcmp.gt.f32.partialorder %v80_v26, 0.0  ;;  %vm97_vm5 = vcmp.gt.f32.partialorder %v81_v27, 0.0 }
   0xb   :  { %v293_v36 = vpack.c.bf16 %v125_v33, %v124_v32  ;;  %v126_v37 = vsel %vm94_vm2, %v78_v24, %v110_v30  ;;  %v127_v38 = vsel %vm95_vm3, %v79_v25, %v111_v31  ;;  %v112_v39 = vmul.f32 0.2, %v80_v26 }
   0xc   :  { %v298_v40 = vpack.c.bf16 %v127_v38, %v126_v37  ;;  %v113_v41 = vmul.f32 0.2, %v81_v27  ;;  %v276_v45 = vunpack.c.l.bf16 %v333_v34  ;;  %v277_v46 = vunpack.c.h.bf16 %v333_v34 }
   0xd   :  { %294 = vst [vmem:[%s458_s3] sm:$0xff] %v293_v36   ;;  %v128_v44 = vsel %vm96_vm4, %v80_v26, %v112_v39  ;;  %v280_v47 = vunpack.c.l.bf16 %v334_v35  ;;  %vm98_vm6 = vcmp.gt.f32.partialorder %v82_v42, 0.0  ;;  %vm99_vm7 = vcmp.gt.f32.partialorder %v83_v43, 0.0 }
   0xe   :  { %337 = vst [vmem:[%s458_s3 + $0x8] sm:$0xff] %v298_v40   ;;  %v129_v49 = vsel %vm97_vm5, %v81_v27, %v113_v41  ;;  %v114_v50 = vmul.f32 0.2, %v82_v42  ;;  %v115_v52 = vmul.f32 0.2, %v83_v43  ;;  %v61_v53 = vmul.f32 %v276_v45, %v370_v1 }
   0xf   :  { %v303_v51 = vpack.c.bf16 %v129_v49, %v128_v44  ;;  %v62_v54 = vmul.f32 %v277_v46, %v370_v1  ;;  %v281_v56 = vunpack.c.h.bf16 %v334_v35  ;;  %v63_v57 = vmul.f32 %v280_v47, %v370_v1 }
  0x10   :  { %v130_v55 = vsel %vm98_vm6, %v82_v42, %v114_v50  ;;  %v284_v58 = vunpack.c.l.bf16 %v335_v48  ;;  %v131_v59 = vsel %vm99_vm7, %v83_v43, %v115_v52  ;;  %v84_v60 = vadd.f32 %v384_v7, %v61_v53 }
  0x11   :  { %338 = vst [vmem:[%s458_s3 + $0x10] sm:$0xff] %v303_v51   ;;  %v85_v61 = vadd.f32 %v384_v7, %v62_v54  ;;  %v285_v62 = vunpack.c.h.bf16 %v335_v48  ;;  %v308_v63 = vpack.c.bf16 %v131_v59, %v130_v55  ;;  %v64_v0 = vmul.f32 %v281_v56, %v370_v1 }
  0x12   :  { %v86_v2 = vadd.f32 %v384_v7, %v63_v57  ;;  %v65_v3 = vmul.f32 %v284_v58, %v370_v1  ;;  %vm100_vm8 = vcmp.gt.f32.partialorder %v84_v60, 0.0  ;;  %v116_v5 = vmul.f32 0.2, %v84_v60 }
  0x13   :  { %vm101_vm9 = vcmp.gt.f32.partialorder %v85_v61, 0.0  ;;  %v117_v6 = vmul.f32 0.2, %v85_v61  ;;  %339 = vst [vmem:[%s458_s3 + $0x18] sm:$0xff] %v308_v63   ;;  %v87_v8 = vadd.f32 %v384_v7, %v64_v0  ;;  %v66_v10 = vmul.f32 %v285_v62, %v370_v1 }
  0x14   :  { %vm102_vm10 = vcmp.gt.f32.partialorder %v86_v2, 0.0  ;;  %v118_v9 = vmul.f32 0.2, %v86_v2  ;;  %v132_v11 = vsel %vm100_vm8, %v84_v60, %v116_v5  ;;  %v88_v13 = vadd.f32 %v384_v7, %v65_v3 }
  0x15   :  { %v133_v12 = vsel %vm101_vm9, %v85_v61, %v117_v6  ;;  %v288_v14 = vunpack.c.l.bf16 %v336_v4  ;;  %vm103_vm11 = vcmp.gt.f32.partialorder %v87_v8, 0.0  ;;  %v119_v16 = vmul.f32 0.2, %v87_v8 }
  0x16   :  { %v313_v15 = vpack.c.bf16 %v133_v12, %v132_v11  ;;  %v134_v17 = vsel %vm102_vm10, %v86_v2, %v118_v9  ;;  %v89_v18 = vadd.f32 %v384_v7, %v66_v10  ;;  %vm104_vm12 = vcmp.gt.f32.partialorder %v88_v13, 0.0 }
  0x17   :  { %v120_v19 = vmul.f32 0.2, %v88_v13  ;;  %v289_v20 = vunpack.c.h.bf16 %v336_v4  ;;  %v135_v21 = vsel %vm103_vm11, %v87_v8, %v119_v16  ;;  %v67_v22 = vmul.f32 %v288_v14, %v370_v1 }
  0x18   :  { %340 = vst [vmem:[%s458_s3 + $0x20] sm:$0xff] %v313_v15   ;;  %v318_v23 = vpack.c.bf16 %v135_v21, %v134_v17  ;;  %vm105_vm13 = vcmp.gt.f32.partialorder %v89_v18, 0.0  ;;  %v121_v24 = vmul.f32 0.2, %v89_v18 }
  0x19   :  { %v136_v25 = vsel %vm104_vm12, %v88_v13, %v120_v19  ;;  %v68_v26 = vmul.f32 %v289_v20, %v370_v1  ;;  %v90_v27 = vadd.f32 %v384_v7, %v67_v22 }
  0x1a   :  { %341 = vst [vmem:[%s458_s3 + $0x28] sm:$0xff] %v318_v23   ;;  %v137_v28 = vsel %vm105_vm13, %v89_v18, %v121_v24 }
  0x1b   :  { %v323_v29 = vpack.c.bf16 %v137_v28, %v136_v25  ;;  %v91_v30 = vadd.f32 %v384_v7, %v68_v26  ;;  %vm106_vm14 = vcmp.gt.f32.partialorder %v90_v27, 0.0  ;;  %v122_v31 = vmul.f32 0.2, %v90_v27 }
  0x1d   :  { %342 = vst [vmem:[%s458_s3 + $0x30] sm:$0xff] %v323_v29   ;;  %vm107_vm15 = vcmp.gt.f32.partialorder %v91_v30, 0.0  ;;  %v123_v32 = vmul.f32 0.2, %v91_v30  ;;  %v138_v33 = vsel %vm106_vm14, %v90_v27, %v122_v31 }
  0x1f   :  { %v139_v1 = vsel %vm107_vm15, %v91_v30, %v123_v32 }
  0x20   :  { %v328_v34 = vpack.c.bf16 %v139_v1, %v138_v33 }
  0x22   :  { %343 = vst [vmem:[%s458_s3 + $0x38] sm:$0xff] %v328_v34  }

// kernel: discriminator_forward.13
= control target key start
LH: loop header
LB: loop body
LE: loop exit
PB: predicated region body
PF: predicated region fallthrough
CT: control target
= control target key end

     0   :  { %s816_s1 = inlined_call_operand.vmem [shape: bf16[512,128], index: 1, kind: input, shape index: {}]   ;;  %s817_s0 = inlined_call_operand.vmem [shape: bf16[32,512], index: 0, kind: input, shape index: {}]   ;;  %s818_s2 = inlined_call_operand.vmem [shape: bf16[32,128], index: 2, kind: output, shape index: {0}]   ;;  %s819_s3 = inlined_call_operand.vmem [shape: f32[1,1,128], index: 3, kind: output, shape index: {1}]   ;;  %s820_s4 = inlined_call_operand.vmem [shape: f32[1,1,128], index: 4, kind: output, shape index: {2}]  }
   0x1   :  { %v615_v0 = vld [vmem:[%s816_s1 + $0x40] sm:$0xff]   ;;  %v619_v4 = vld [vmem:[%s816_s1 + $0x48] sm:$0xff]   ;;  %v623_v8 = vld [vmem:[%s816_s1 + $0x50] sm:$0xff]  }
   0x2   :  { %v616_v1 = vld [vmem:[%s816_s1 + $0xc0] sm:$0xff]   ;;  %559 = vmatprep.subr.bf16.mxu0 %v615_v0  ;;  %v620_v5 = vld [vmem:[%s816_s1 + $0xc8] sm:$0xff]   ;;  %v624_v9 = vld [vmem:[%s816_s1 + $0xd0] sm:$0xff]  }
   0x3   :  { %v617_v2 = vld [vmem:[%s816_s1] sm:$0xff]   ;;  %587 = vmatprep.subr.bf16.mxu1 %v616_v1  ;;  %v621_v6 = vld [vmem:[%s816_s1 + $0x8] sm:$0xff]   ;;  %v625_v10 = vld [vmem:[%s816_s1 + $0x10] sm:$0xff]  }
   0x4   :  { %v618_v3 = vld [vmem:[%s816_s1 + $0x80] sm:$0xff]   ;;  %560 = vmatpush3.bf16.msra.mxu0 %v617_v2  ;;  %v622_v7 = vld [vmem:[%s816_s1 + $0x88] sm:$0xff]   ;;  %v626_v11 = vld [vmem:[%s816_s1 + $0x90] sm:$0xff]  }
   0x5   :  { %588 = vmatpush3.bf16.msra.mxu1 %v618_v3  ;;  %561 = vmatprep.subr.bf16.mxu0 %v619_v4  ;;  %v627_v12 = vld [vmem:[%s816_s1 + $0x58] sm:$0xff]   ;;  %v631_v16 = vld [vmem:[%s816_s1 + $0x60] sm:$0xff]   ;;  %v635_v20 = vld [vmem:[%s816_s1 + $0x68] sm:$0xff]  }
   0x6   :  { %589 = vmatprep.subr.bf16.mxu1 %v620_v5  ;;  %v628_v13 = vld [vmem:[%s816_s1 + $0xd8] sm:$0xff]   ;;  %v632_v17 = vld [vmem:[%s816_s1 + $0xe0] sm:$0xff]   ;;  %v636_v21 = vld [vmem:[%s816_s1 + $0xe8] sm:$0xff]  }
   0x7   :  { %v629_v14 = vld [vmem:[%s816_s1 + $0x18] sm:$0xff]   ;;  %v633_v18 = vld [vmem:[%s816_s1 + $0x20] sm:$0xff]   ;;  %v637_v22 = vld [vmem:[%s816_s1 + $0x28] sm:$0xff]  }
   0x8   :  { %562 = vmatpush3.bf16.msra.mxu0 %v621_v6  ;;  %v630_v15 = vld [vmem:[%s816_s1 + $0x98] sm:$0xff]   ;;  %v634_v19 = vld [vmem:[%s816_s1 + $0xa0] sm:$0xff]   ;;  %v638_v23 = vld [vmem:[%s816_s1 + $0xa8] sm:$0xff]  }
   0x9   :  { %590 = vmatpush3.bf16.msra.mxu1 %v622_v7  ;;  %563 = vmatprep.subr.bf16.mxu0 %v623_v8  ;;  %v639_v24 = vld [vmem:[%s816_s1 + $0x70] sm:$0xff]   ;;  %v643_v28 = vld [vmem:[%s816_s1 + $0x78] sm:$0xff]  }
   0xa   :  { %591 = vmatprep.subr.bf16.mxu1 %v624_v9  ;;  %v640_v25 = vld [vmem:[%s816_s1 + $0xf0] sm:$0xff]   ;;  %v644_v29 = vld [vmem:[%s816_s1 + $0xf8] sm:$0xff]  }
   0xb   :  { %v641_v26 = vld [vmem:[%s816_s1 + $0x30] sm:$0xff]   ;;  %v645_v30 = vld [vmem:[%s816_s1 + $0x38] sm:$0xff]  }
   0xc   :  { %564 = vmatpush3.bf16.msra.mxu0 %v625_v10  ;;  %v642_v27 = vld [vmem:[%s816_s1 + $0xb0] sm:$0xff]   ;;  %v646_v31 = vld [vmem:[%s816_s1 + $0xb8] sm:$0xff]  }
   0xd   :  { %592 = vmatpush3.bf16.msra.mxu1 %v626_v11  ;;  %565 = vmatprep.subr.bf16.mxu0 %v627_v12  ;;  %v647_v32 = vld [vmem:[%s817_s0] ss:$16 sps:$4 sm:$0xff]   ;;  %v649_v33 = vld [vmem:[%s817_s0 + $0x4] ss:$16 sps:$4 sm:$0xff]   ;;  %v650_v34 = vld [vmem:[%s817_s0 + $0x8] ss:$16 sps:$4 sm:$0xff]  }
   0xe   :  { %593 = vmatprep.subr.bf16.mxu1 %v628_v13  ;;  %v652_v35 = vld [vmem:[%s817_s0 + $0xc] ss:$16 sps:$4 sm:$0xff]   ;;  %363 = vmatprep.mubr.bf16.mxu0 %v649_v33  ;;  %v653_v36 = vld [vmem:[%s817_s0 + $0x24] ss:$16 sps:$4 sm:$0xff]   ;;  %v657_v38 = vld [vmem:[%s817_s0 + $0x20] ss:$16 sps:$4 sm:$0xff]  }
   0xf   :  { %412 = vmatprep.mubr.bf16.mxu1 %v652_v35  ;;  %v655_v37 = vld [vmem:[%s817_s0 + $0x2c] ss:$16 sps:$4 sm:$0xff]   ;;  %v658_v39 = vld [vmem:[%s817_s0 + $0x28] ss:$16 sps:$4 sm:$0xff]  }
  0x10   :  { %566 = vmatpush3.bf16.msra.mxu0 %v629_v14 }
  0x11   :  { %594 = vmatpush3.bf16.msra.mxu1 %v630_v15  ;;  %567 = vmatprep.subr.bf16.mxu0 %v631_v16 }
  0x12   :  { %595 = vmatprep.subr.bf16.mxu1 %v632_v17 }
  0x14   :  { %568 = vmatpush3.bf16.msra.mxu0 %v633_v18 }
  0x15   :  { %596 = vmatpush3.bf16.msra.mxu1 %v634_v19  ;;  %569 = vmatprep.subr.bf16.mxu0 %v635_v20 }
  0x16   :  { %597 = vmatprep.subr.bf16.mxu1 %v636_v21 }
  0x18   :  { %570 = vmatpush3.bf16.msra.mxu0 %v637_v22 }
  0x19   :  { %598 = vmatpush3.bf16.msra.mxu1 %v638_v23  ;;  %571 = vmatprep.subr.bf16.mxu0 %v639_v24 }
  0x1a   :  { %599 = vmatprep.subr.bf16.mxu1 %v640_v25 }
  0x1c   :  { %572 = vmatpush3.bf16.msra.mxu0 %v641_v26 }
  0x1d   :  { %600 = vmatpush3.bf16.msra.mxu1 %v642_v27  ;;  %573 = vmatprep.subr.bf16.mxu0 %v643_v28 }
  0x1e   :  { %601 = vmatprep.subr.bf16.mxu1 %v644_v29 }
  0x20   :  { %574 = vmatpush3.bf16.msra.mxu0 %v645_v30 }
  0x21   :  { %602 = vmatpush3.bf16.msra.mxu1 %v646_v31 }
  0x23   :  { %364 = vmatmul.mubr.bf16.vlgmr.msra.gmra.mrb[0].mxu0 %v647_v32 }
  0x24   :  { %413 = vmatmul.mubr.bf16.vlgmr.msra.gmra.mrb[0].mxu1 %v650_v34  ;;  %371 = vmatprep.mubr.bf16.mxu0 %v653_v36 }
  0x25   :  { %420 = vmatprep.mubr.bf16.mxu1 %v655_v37 }
  0x2b   :  { %372 = vmatmul.mubr.bf16.gmra.mrb[4].mxu0 %v657_v38 }
  0x2c   :  { %421 = vmatmul.mubr.bf16.gmra.mrb[4].mxu1 %v658_v39 }
  0xf6   :  { %v575_v40 = vpop.f32.mrb[0].mxu0 }
  0xf7   :  { %v603_v41 = vpop.f32.mrb[0].mxu1  ;;  %v576_v42 = vpop.f32.mrb[1].mxu0 }
  0xf8   :  { %v577_v43 = vadd.f32 %v576_v42, %v575_v40  ;;  %v604_v44 = vpop.f32.mrb[1].mxu1  ;;  %v578_v45 = vpop.f32.mrb[2].mxu0 }
  0xf9   :  { %v605_v46 = vadd.f32 %v604_v44, %v603_v41  ;;  %v606_v47 = vpop.f32.mrb[2].mxu1  ;;  %v579_v48 = vpop.f32.mrb[3].mxu0 }
  0xfa   :  { %v580_v49 = vadd.f32 %v579_v48, %v578_v45  ;;  %v607_v50 = vpop.f32.mrb[3].mxu1 }
  0xfb   :  { %v415_v51 = vadd.f32 %v605_v46, %v577_v43  ;;  %v608_v52 = vadd.f32 %v607_v50, %v606_v47 }
  0xfd   :  { %v418_v53 = vadd.f32 %v608_v52, %v580_v49  ;;  %v474_v55 = vmul.f32 %v415_v51, %v415_v51 }
  0xfe   :  { %v581_v54 = vpop.f32.mrb[4].mxu0 }
  0xff   :  { %v551_v56 = vpack.c.bf16 %v418_v53, %v415_v51  ;;  %v464_v57 = vadd.f32 %v418_v53, %v415_v51  ;;  %v475_v58 = vmul.f32 %v418_v53, %v418_v53  ;;  %v609_v59 = vpop.f32.mrb[4].mxu1  ;;  %v582_v60 = vpop.f32.mrb[5].mxu0 }
 0x100   :  { %v583_v61 = vadd.f32 %v582_v60, %v581_v54  ;;  %v610_v62 = vpop.f32.mrb[5].mxu1  ;;  %v584_v63 = vpop.f32.mrb[6].mxu0 }
 0x101   :  { %552 = vst [vmem:[%s818_s2] sm:$0xff] %v551_v56   ;;  %v478_v0 = vadd.f32 %v475_v58, %v474_v55  ;;  %v611_v1 = vadd.f32 %v610_v62, %v609_v59  ;;  %v612_v2 = vpop.f32.mrb[6].mxu1  ;;  %v585_v3 = vpop.f32.mrb[7].mxu0 }
 0x102   :  { %v586_v4 = vadd.f32 %v585_v3, %v584_v63  ;;  %v613_v5 = vpop.f32.mrb[7].mxu1 }
 0x103   :  { %v423_v6 = vadd.f32 %v611_v1, %v583_v61  ;;  %v614_v7 = vadd.f32 %v613_v5, %v612_v2 }
 0x105   :  { %v465_v8 = vadd.f32 %v464_v57, %v423_v6  ;;  %v476_v9 = vmul.f32 %v423_v6, %v423_v6  ;;  %v426_v10 = vadd.f32 %v614_v7, %v586_v4 }
 0x107   :  { %v479_v11 = vadd.f32 %v478_v0, %v476_v9  ;;  %v556_v12 = vpack.c.bf16 %v426_v10, %v423_v6  ;;  %v466_v13 = vadd.f32 %v465_v8, %v426_v10  ;;  %v477_v14 = vmul.f32 %v426_v10, %v426_v10 }
 0x109   :  { %558 = vst [vmem:[%s818_s2 + $0x8] sm:$0xff] %v556_v12   ;;  %v467_v15 = vrot.slane %v466_v13, 4  ;;  %v480_v16 = vadd.f32 %v479_v11, %v477_v14 }
 0x10b   :  { %v468_v17 = vadd.f32 %v467_v15, %v466_v13  ;;  %v481_v18 = vrot.slane %v480_v16, 4 }
 0x10d   :  { %v469_v19 = vrot.slane %v468_v17, 2  ;;  %v482_v20 = vadd.f32 %v481_v18, %v480_v16 }
 0x10f   :  { %v470_v21 = vadd.f32 %v469_v19, %v468_v17  ;;  %v483_v22 = vrot.slane %v482_v20, 2 }
 0x111   :  { %v471_v23 = vrot.slane %v470_v21, 1  ;;  %v484_v24 = vadd.f32 %v483_v22, %v482_v20 }
 0x113   :  { %v472_v25 = vadd.f32 %v471_v23, %v470_v21  ;;  %v485_v26 = vrot.slane %v484_v24, 1 }
 0x115   :  { %473 = vst [vmem:[%s819_s3] sm:$0x1] %v472_v25  ;;  %v486_v27 = vadd.f32 %v485_v26, %v484_v24 }
 0x117   :  { %487 = vst [vmem:[%s820_s4] sm:$0x1] %v486_v27 }

// kernel: discriminator_forward.14
= control target key start
LH: loop header
LB: loop body
LE: loop exit
PB: predicated region body
PF: predicated region fallthrough
CT: control target
= control target key end

     0   :  { %s148_s0 = inlined_call_operand.vmem [shape: bf16[32,128], index: 0, kind: input, shape index: {}]   ;;  %s149_s1 = inlined_call_operand.vmem [shape: f32[1,128], index: 1, kind: input, shape index: {}]   ;;  %s150_s2 = inlined_call_operand.vmem [shape: f32[1,128], index: 2, kind: input, shape index: {}]   ;;  %s151_s3 = inlined_call_operand.vmem [shape: bf16[32,128], index: 3, kind: output, shape index: {}]  }
   0x1   :  { %v91_v0 = vld [vmem:[%s148_s0] sm:$0xff]   ;;  %v108_v4 = vld [vmem:[%s148_s0 + $0x8] sm:$0xff]  }
   0x2   :  { %v80_v1 = vld [vmem:[%s149_s1] ss:$0 sm:$0xff]  ;;  %v92_v2 = vunpack.c.l.bf16 %v91_v0  ;;  %v93_v3 = vunpack.c.h.bf16 %v91_v0  ;;  %v96_v6 = vunpack.c.l.bf16 %v108_v4  ;;  %v97_v7 = vunpack.c.h.bf16 %v108_v4 }
   0x3   :  { %v81_v5 = vld [vmem:[%s150_s2] ss:$0 sm:$0xff] }
   0x4   :  { %v29_v8 = vmul.f32 %v92_v2, %v80_v1  ;;  %v30_v9 = vmul.f32 %v93_v3, %v80_v1  ;;  %v31_v10 = vmul.f32 %v96_v6, %v80_v1  ;;  %v32_v11 = vmul.f32 %v97_v7, %v80_v1 }
   0x6   :  { %v40_v12 = vadd.f32 %v81_v5, %v29_v8  ;;  %v41_v13 = vadd.f32 %v81_v5, %v30_v9  ;;  %v42_v14 = vadd.f32 %v81_v5, %v31_v10  ;;  %v43_v15 = vadd.f32 %v81_v5, %v32_v11 }
   0x8   :  { %vm44_vm0 = vcmp.gt.f32.partialorder %v40_v12, 0.0  ;;  %vm45_vm1 = vcmp.gt.f32.partialorder %v41_v13, 0.0  ;;  %v48_v16 = vmul.f32 0.2, %v40_v12  ;;  %v49_v17 = vmul.f32 0.2, %v41_v13 }
   0x9   :  { %vm46_vm2 = vcmp.gt.f32.partialorder %v42_v14, 0.0  ;;  %vm47_vm3 = vcmp.gt.f32.partialorder %v43_v15, 0.0  ;;  %v50_v18 = vmul.f32 0.2, %v42_v14  ;;  %v51_v19 = vmul.f32 0.2, %v43_v15 }
   0xa   :  { %v52_v20 = vsel %vm44_vm0, %v40_v12, %v48_v16  ;;  %v53_v21 = vsel %vm45_vm1, %v41_v13, %v49_v17 }
   0xb   :  { %v101_v22 = vpack.c.bf16 %v53_v21, %v52_v20  ;;  %v54_v23 = vsel %vm46_vm2, %v42_v14, %v50_v18  ;;  %v55_v24 = vsel %vm47_vm3, %v43_v15, %v51_v19 }
   0xc   :  { %v106_v25 = vpack.c.bf16 %v55_v24, %v54_v23 }
   0xd   :  { %102 = vst [vmem:[%s151_s3] sm:$0xff] %v101_v22  }
   0xe   :  { %109 = vst [vmem:[%s151_s3 + $0x8] sm:$0xff] %v106_v25  }

// kernel: discriminator_forward.15
= control target key start
LH: loop header
LB: loop body
LE: loop exit
PB: predicated region body
PF: predicated region fallthrough
CT: control target
= control target key end

     0   :  { %s1186_s1 = inlined_call_operand.vmem [shape: bf16[1024,128], index: 1, kind: input, shape index: {}]   ;;  %s1187_s0 = inlined_call_operand.vmem [shape: bf16[8,1024], index: 0, kind: input, shape index: {}]   ;;  %s1188_s2 = inlined_call_operand.vmem [shape: f32[8,128], index: 2, kind: output, shape index: {}]  }
   0x1   :  { %v888_v0 = vld [vmem:[%s1186_s1 + $0x40] sm:$0xff]   ;;  %v892_v4 = vld [vmem:[%s1186_s1 + $0x48] sm:$0xff]   ;;  %v896_v8 = vld [vmem:[%s1186_s1 + $0x50] sm:$0xff]  }
   0x2   :  { %v889_v1 = vld [vmem:[%s1186_s1 + $0xc0] sm:$0xff]   ;;  %800 = vmatprep.subr.bf16.mxu0 %v888_v0  ;;  %v893_v5 = vld [vmem:[%s1186_s1 + $0xc8] sm:$0xff]   ;;  %v897_v9 = vld [vmem:[%s1186_s1 + $0xd0] sm:$0xff]  }
   0x3   :  { %v890_v2 = vld [vmem:[%s1186_s1] sm:$0xff]   ;;  %822 = vmatprep.subr.bf16.mxu1 %v889_v1  ;;  %v894_v6 = vld [vmem:[%s1186_s1 + $0x8] sm:$0xff]   ;;  %v898_v10 = vld [vmem:[%s1186_s1 + $0x10] sm:$0xff]  }
   0x4   :  { %v891_v3 = vld [vmem:[%s1186_s1 + $0x80] sm:$0xff]   ;;  %801 = vmatpush3.bf16.msra.mxu0 %v890_v2  ;;  %v895_v7 = vld [vmem:[%s1186_s1 + $0x88] sm:$0xff]   ;;  %v899_v11 = vld [vmem:[%s1186_s1 + $0x90] sm:$0xff]  }
   0x5   :  { %823 = vmatpush3.bf16.msra.mxu1 %v891_v3  ;;  %802 = vmatprep.subr.bf16.mxu0 %v892_v4  ;;  %v900_v12 = vld [vmem:[%s1186_s1 + $0x58] sm:$0xff]   ;;  %v904_v16 = vld [vmem:[%s1186_s1 + $0x60] sm:$0xff]   ;;  %v908_v20 = vld [vmem:[%s1186_s1 + $0x68] sm:$0xff]  }
   0x6   :  { %824 = vmatprep.subr.bf16.mxu1 %v893_v5  ;;  %v901_v13 = vld [vmem:[%s1186_s1 + $0xd8] sm:$0xff]   ;;  %v905_v17 = vld [vmem:[%s1186_s1 + $0xe0] sm:$0xff]   ;;  %v909_v21 = vld [vmem:[%s1186_s1 + $0xe8] sm:$0xff]  }
   0x7   :  { %v902_v14 = vld [vmem:[%s1186_s1 + $0x18] sm:$0xff]   ;;  %v906_v18 = vld [vmem:[%s1186_s1 + $0x20] sm:$0xff]   ;;  %v910_v22 = vld [vmem:[%s1186_s1 + $0x28] sm:$0xff]  }
   0x8   :  { %803 = vmatpush3.bf16.msra.mxu0 %v894_v6  ;;  %v903_v15 = vld [vmem:[%s1186_s1 + $0x98] sm:$0xff]   ;;  %v907_v19 = vld [vmem:[%s1186_s1 + $0xa0] sm:$0xff]   ;;  %v911_v23 = vld [vmem:[%s1186_s1 + $0xa8] sm:$0xff]  }
   0x9   :  { %825 = vmatpush3.bf16.msra.mxu1 %v895_v7  ;;  %804 = vmatprep.subr.bf16.mxu0 %v896_v8  ;;  %v912_v24 = vld [vmem:[%s1186_s1 + $0x70] sm:$0xff]   ;;  %v916_v28 = vld [vmem:[%s1186_s1 + $0x78] sm:$0xff]   ;;  %v12_v32 = vld [vmem:[%s1187_s0] sm:$0xff] }
   0xa   :  { %826 = vmatprep.subr.bf16.mxu1 %v897_v9  ;;  %v913_v25 = vld [vmem:[%s1186_s1 + $0xf0] sm:$0xff]   ;;  %v917_v29 = vld [vmem:[%s1186_s1 + $0xf8] sm:$0xff]   ;;  %v13_v33 = vld [vmem:[%s1187_s0 + $0x8] sm:$0xff]  ;;  %v728_v34 = vcombine.low %v12_v32, %v12_v32  ;;  %v729_v35 = vcombine.high %v12_v32, %v12_v32 }
   0xb   :  { %v914_v26 = vld [vmem:[%s1186_s1 + $0x30] sm:$0xff]   ;;  %v918_v30 = vld [vmem:[%s1186_s1 + $0x38] sm:$0xff]   ;;  %v730_v36 = vcombine.low %v13_v33, %v13_v33  ;;  %v731_v37 = vcombine.high %v13_v33, %v13_v33  ;;  %v924_v38 = vld [vmem:[%s1186_s1 + $0x140] sm:$0xff]  }
   0xc   :  { %805 = vmatpush3.bf16.msra.mxu0 %v898_v10  ;;  %v915_v27 = vld [vmem:[%s1186_s1 + $0xb0] sm:$0xff]   ;;  %v919_v31 = vld [vmem:[%s1186_s1 + $0xb8] sm:$0xff]   ;;  %v925_v39 = vld [vmem:[%s1186_s1 + $0x1c0] sm:$0xff]   ;;  %588 = vmatprep.mubr.bf16.mxu0 %v729_v35 }
   0xd   :  { %827 = vmatpush3.bf16.msra.mxu1 %v899_v11  ;;  %806 = vmatprep.subr.bf16.mxu0 %v900_v12  ;;  %v926_v40 = vld [vmem:[%s1186_s1 + $0x100] sm:$0xff]   ;;  %v928_v42 = vld [vmem:[%s1186_s1 + $0x148] sm:$0xff]   ;;  %v932_v46 = vld [vmem:[%s1186_s1 + $0x150] sm:$0xff]  }
   0xe   :  { %828 = vmatprep.subr.bf16.mxu1 %v901_v13  ;;  %628 = vmatprep.mubr.bf16.mxu1 %v731_v37  ;;  %v927_v41 = vld [vmem:[%s1186_s1 + $0x180] sm:$0xff]   ;;  %v929_v43 = vld [vmem:[%s1186_s1 + $0x1c8] sm:$0xff]   ;;  %v933_v47 = vld [vmem:[%s1186_s1 + $0x1d0] sm:$0xff]  }
   0xf   :  { %v930_v44 = vld [vmem:[%s1186_s1 + $0x108] sm:$0xff]   ;;  %v934_v48 = vld [vmem:[%s1186_s1 + $0x110] sm:$0xff]   ;;  %v936_v50 = vld [vmem:[%s1186_s1 + $0x158] sm:$0xff]  }
  0x10   :  { %807 = vmatpush3.bf16.msra.mxu0 %v902_v14  ;;  %v931_v45 = vld [vmem:[%s1186_s1 + $0x188] sm:$0xff]   ;;  %v935_v49 = vld [vmem:[%s1186_s1 + $0x190] sm:$0xff]   ;;  %v937_v51 = vld [vmem:[%s1186_s1 + $0x1d8] sm:$0xff]  }
  0x11   :  { %829 = vmatpush3.bf16.msra.mxu1 %v903_v15  ;;  %808 = vmatprep.subr.bf16.mxu0 %v904_v16  ;;  %v938_v52 = vld [vmem:[%s1186_s1 + $0x118] sm:$0xff]   ;;  %v940_v54 = vld [vmem:[%s1186_s1 + $0x160] sm:$0xff]   ;;  %v944_v58 = vld [vmem:[%s1186_s1 + $0x168] sm:$0xff]  }
  0x12   :  { %830 = vmatprep.subr.bf16.mxu1 %v905_v17  ;;  %v939_v53 = vld [vmem:[%s1186_s1 + $0x198] sm:$0xff]   ;;  %v941_v55 = vld [vmem:[%s1186_s1 + $0x1e0] sm:$0xff]   ;;  %v945_v59 = vld [vmem:[%s1186_s1 + $0x1e8] sm:$0xff]  }
  0x13   :  { %v942_v56 = vld [vmem:[%s1186_s1 + $0x120] sm:$0xff]   ;;  %v946_v60 = vld [vmem:[%s1186_s1 + $0x128] sm:$0xff]   ;;  %v948_v62 = vld [vmem:[%s1186_s1 + $0x170] sm:$0xff]  }
  0x14   :  { %809 = vmatpush3.bf16.msra.mxu0 %v906_v18  ;;  %v943_v57 = vld [vmem:[%s1186_s1 + $0x1a0] sm:$0xff]   ;;  %v947_v61 = vld [vmem:[%s1186_s1 + $0x1a8] sm:$0xff]   ;;  %v949_v63 = vld [vmem:[%s1186_s1 + $0x1f0] sm:$0xff]  }
  0x15   :  { %831 = vmatpush3.bf16.msra.mxu1 %v907_v19  ;;  %810 = vmatprep.subr.bf16.mxu0 %v908_v20  ;;  %v950_v0 = vld [vmem:[%s1186_s1 + $0x130] sm:$0xff]   ;;  %v952_v2 = vld [vmem:[%s1186_s1 + $0x178] sm:$0xff]  }
  0x16   :  { %832 = vmatprep.subr.bf16.mxu1 %v909_v21  ;;  %v951_v1 = vld [vmem:[%s1186_s1 + $0x1b0] sm:$0xff]   ;;  %v953_v3 = vld [vmem:[%s1186_s1 + $0x1f8] sm:$0xff]  }
  0x17   :  { %v954_v4 = vld [vmem:[%s1186_s1 + $0x138] sm:$0xff]   ;;  %v14_v6 = vld [vmem:[%s1187_s0 + $0x10] sm:$0xff] }
  0x18   :  { %811 = vmatpush3.bf16.msra.mxu0 %v910_v22  ;;  %v955_v5 = vld [vmem:[%s1186_s1 + $0x1b8] sm:$0xff]   ;;  %v732_v7 = vcombine.low %v14_v6, %v14_v6  ;;  %v733_v8 = vcombine.high %v14_v6, %v14_v6 }
  0x19   :  { %833 = vmatpush3.bf16.msra.mxu1 %v911_v23  ;;  %812 = vmatprep.subr.bf16.mxu0 %v912_v24  ;;  %v15_v9 = vld [vmem:[%s1187_s0 + $0x18] sm:$0xff] }
  0x1a   :  { %834 = vmatprep.subr.bf16.mxu1 %v913_v25  ;;  %v734_v10 = vcombine.low %v15_v9, %v15_v9  ;;  %v735_v11 = vcombine.high %v15_v9, %v15_v9 }
  0x1c   :  { %813 = vmatpush3.bf16.msra.mxu0 %v914_v26 }
  0x1d   :  { %835 = vmatpush3.bf16.msra.mxu1 %v915_v27  ;;  %814 = vmatprep.subr.bf16.mxu0 %v916_v28 }
  0x1e   :  { %836 = vmatprep.subr.bf16.mxu1 %v917_v29 }
  0x20   :  { %815 = vmatpush3.bf16.msra.mxu0 %v918_v30 }
  0x21   :  { %837 = vmatpush3.bf16.msra.mxu1 %v919_v31  ;;  %844 = vmatprep.subr.bf16.mxu0 %v924_v38 }
  0x22   :  { %866 = vmatprep.subr.bf16.mxu1 %v925_v39 }
  0x23   :  { %589 = vmatmul.mubr.bf16.vlgmr.msra.gmra.mrb[0].mxu0 %v728_v34 }
  0x24   :  { %629 = vmatmul.mubr.bf16.vlgmr.msra.gmra.mrb[0].mxu1 %v730_v36  ;;  %845 = vmatpush3.bf16.msra.mxu0 %v926_v40 }
  0x25   :  { %867 = vmatpush3.bf16.msra.mxu1 %v927_v41  ;;  %846 = vmatprep.subr.bf16.mxu0 %v928_v42 }
  0x26   :  { %868 = vmatprep.subr.bf16.mxu1 %v929_v43  ;;  %668 = vmatprep.mubr.bf16.mxu0 %v733_v8 }
  0x27   :  { %708 = vmatprep.mubr.bf16.mxu1 %v735_v11 }
  0x28   :  { %847 = vmatpush3.bf16.msra.mxu0 %v930_v44 }
  0x29   :  { %869 = vmatpush3.bf16.msra.mxu1 %v931_v45  ;;  %848 = vmatprep.subr.bf16.mxu0 %v932_v46 }
  0x2a   :  { %870 = vmatprep.subr.bf16.mxu1 %v933_v47 }
  0x2c   :  { %849 = vmatpush3.bf16.msra.mxu0 %v934_v48 }
  0x2d   :  { %871 = vmatpush3.bf16.msra.mxu1 %v935_v49  ;;  %850 = vmatprep.subr.bf16.mxu0 %v936_v50 }
  0x2e   :  { %872 = vmatprep.subr.bf16.mxu1 %v937_v51 }
  0x30   :  { %851 = vmatpush3.bf16.msra.mxu0 %v938_v52 }
  0x31   :  { %873 = vmatpush3.bf16.msra.mxu1 %v939_v53  ;;  %852 = vmatprep.subr.bf16.mxu0 %v940_v54 }
  0x32   :  { %874 = vmatprep.subr.bf16.mxu1 %v941_v55 }
  0x34   :  { %853 = vmatpush3.bf16.msra.mxu0 %v942_v56 }
  0x35   :  { %875 = vmatpush3.bf16.msra.mxu1 %v943_v57  ;;  %854 = vmatprep.subr.bf16.mxu0 %v944_v58 }
  0x36   :  { %876 = vmatprep.subr.bf16.mxu1 %v945_v59 }
  0x38   :  { %855 = vmatpush3.bf16.msra.mxu0 %v946_v60 }
  0x39   :  { %877 = vmatpush3.bf16.msra.mxu1 %v947_v61  ;;  %856 = vmatprep.subr.bf16.mxu0 %v948_v62 }
  0x3a   :  { %878 = vmatprep.subr.bf16.mxu1 %v949_v63 }
  0x3c   :  { %857 = vmatpush3.bf16.msra.mxu0 %v950_v0 }
  0x3d   :  { %879 = vmatpush3.bf16.msra.mxu1 %v951_v1  ;;  %858 = vmatprep.subr.bf16.mxu0 %v952_v2 }
  0x3e   :  { %880 = vmatprep.subr.bf16.mxu1 %v953_v3 }
  0x40   :  { %859 = vmatpush3.bf16.msra.mxu0 %v954_v4 }
  0x41   :  { %881 = vmatpush3.bf16.msra.mxu1 %v955_v5 }
  0x43   :  { %669 = vmatmul.mubr.bf16.vlgmr.msra.gmra.mrb[4].mxu0 %v732_v7 }
  0x44   :  { %709 = vmatmul.mubr.bf16.vlgmr.msra.gmra.mrb[4].mxu1 %v734_v10 }
  0xf6   :  { %v816_v12 = vpop.f32.mrb[0].mxu0 }
  0xf7   :  { %v838_v13 = vpop.f32.mrb[0].mxu1  ;;  %v817_v14 = vpop.f32.mrb[1].mxu0 }
  0xf8   :  { %v839_v15 = vpop.f32.mrb[1].mxu1  ;;  %v818_v16 = vadd.f32 %v817_v14, %v816_v12  ;;  %v819_v18 = vpop.f32.mrb[2].mxu0 }
  0xf9   :  { %v840_v17 = vadd.f32 %v839_v15, %v838_v13  ;;  %v841_v19 = vpop.f32.mrb[2].mxu1  ;;  %v820_v20 = vpop.f32.mrb[3].mxu0 }
  0xfa   :  { %v842_v21 = vpop.f32.mrb[3].mxu1 }
  0xfb   :  { %v631_v22 = vadd.f32 %v840_v17, %v818_v16 }
 0x116   :  { %v860_v23 = vpop.f32.mrb[4].mxu0 }
 0x117   :  { %v882_v24 = vpop.f32.mrb[4].mxu1  ;;  %v861_v25 = vpop.f32.mrb[5].mxu0 }
 0x118   :  { %v883_v26 = vpop.f32.mrb[5].mxu1  ;;  %v862_v27 = vadd.f32 %v861_v25, %v860_v23  ;;  %v863_v29 = vpop.f32.mrb[6].mxu0 }
 0x119   :  { %v884_v28 = vadd.f32 %v883_v26, %v882_v24  ;;  %v885_v30 = vpop.f32.mrb[6].mxu1  ;;  %v864_v31 = vpop.f32.mrb[7].mxu0 }
 0x11a   :  { %v886_v32 = vpop.f32.mrb[7].mxu1  ;;  %v671_v33 = vadd.f32 %v862_v27, %v631_v22 }
 0x11c   :  { %v711_v34 = vadd.f32 %v884_v28, %v671_v33 }
 0x11e   :  { %v716_v35 = vsub.f32 0.0, %v711_v34 }
 0x120   :  { %v717_v36 = vmul.f32 1.442695, %v716_v35 }
 0x122   :  { %960 = vpow2.f32 %v717_v36 }
 0x12c   :  { %v961_v37 = vpop.eup %960 }
 0x12d   :  { %v719_v38 = vadd.f32 1.0, %v961_v37 }
 0x12f   :  { %962 = vrcp.f32 %v719_v38 }
 0x139   :  { %v963_v39 = vpop.eup %962 }
 0x13a   :  { %v721_v40 = vmax.f32 %v963_v39, 0.0 }
 0x13c   :  { %v722_v41 = vmin.f32 %v721_v40, 1.0 }
 0x13e   :  { %723 = vst [vmem:[%s1188_s2] sm:$0xff] %v722_v41 }

</bundles_post_ra>
